<compile_context>
chip_gen: v6e
topology: v6e:2x2x1
jax: 0.10.0
libtpu: 0.0.40
codegen_flags: <defaults>
</compile_context>

<pallas_src>
import math

import jax
import jax.numpy as jnp
import numpy as np
from jax import lax
from jax.experimental import pallas as pl
from jax.experimental.pallas import tpu as pltpu


# ---------------------------------------------------------------------------
# Helpers
# ---------------------------------------------------------------------------

def _vmem_limit_bytes():
    """~half of physical VMEM (32 MiB on v7x, 64 MiB on v5e/v6e)."""
    try:
        cap = pltpu.get_tpu_info().vmem_capacity_bytes
        return int(min(cap // 2, 64 << 20))
    except Exception:
        return 32 << 20


def _pick_row_tile_conv(H, W, cin, t_cout, out_bytes, budget=8 << 20):
    """Largest divisor of H whose per-band working set fits the budget."""
    best = 1
    for t in range(1, H + 1):
        if H % t:
            continue
        est = (2 * 4 * t * W * t_cout * out_bytes   # double-buffered out block
               + 4 * t * W * t_cout * 4             # fp32 phase accumulators
               + 13 * t * W * cin * 2)              # 9 taps + fused-K concat
        if est <= budget:
            best = t
    return best


def _pick_row_tile_noconv(H, W, C, out_bytes, budget=8 << 20):
    best = 1
    for t in range(1, H + 1):
        if H % t:
            continue
        if 2 * 5 * t * W * C * out_bytes <= budget:
            best = t
    return best


# ---------------------------------------------------------------------------
# Kernels
# ---------------------------------------------------------------------------

def _upsample_only_kernel(x_ref, o_ref):
    # x_ref: (1, tH, W, C)   o_ref: (1, 4, tH, W, C) phase-major nearest copy.
    x = x_ref[0]
    for phase in range(4):
        o_ref[0, phase] = x


def _upsample_conv_kernel(xp_ref, w_ref, b_ref, o_ref):
    """Fused nearest-2x upsample + 3x3 conv via sub-pixel phase decomposition.

    xp_ref: (1, H+2, W+2, Cin)   zero-padded input, whole image (resident).
    w_ref : (4, 4, Cin, tCout)   [phase = 2*py+px, tap = 2*ty+tx] weights.
    b_ref : (1, tCout)           fp32 bias.
    o_ref : (1, 4, tH, W, tCout) phase-major output row band:
            out[2*(h0+i)+py, 2*j+px] == o[2*py+px, i, j].
    """
    _, _, Wp2, cin = xp_ref.shape
    W = Wp2 - 2
    _, _, t_h, _, t_cout = o_ref.shape

    # Fuse the 4 taps of a phase along K only when the lane-concat is aligned
    # (Cin a multiple of 128) and K=Cin alone under-fills the MXU depth.
    fuse_k = (cin % 128 == 0) and (cin < 256)

    h0 = pl.multiple_of(pl.program_id(2) * t_h, t_h)

    # Dedup: the 16 (phase, tap) windows touch only 9 distinct (dy, dx) shifts.
    taps = [[xp_ref[0, pl.ds(h0 + dy, t_h), pl.ds(dx, W), :]
             .reshape(t_h * W, cin)
             for dx in range(3)] for dy in range(3)]

    # Bias broadcast hoisted out of the phase loops; kept in fp32.
    bias = jnp.broadcast_to(b_ref[...].astype(jnp.float32), (t_h * W, t_cout))

    for py in range(2):
        for px in range(2):
            phase = 2 * py + px
            if fuse_k:
                big = jnp.concatenate(
                    [taps[py + ty][px + tx]
                     for ty in range(2) for tx in range(2)],
                    axis=-1)                                   # (tH*W, 4*Cin)
                acc = jnp.dot(big, w_ref[phase].reshape(4 * cin, t_cout),
                              preferred_element_type=jnp.float32)
            else:
                acc = None
                for ty in range(2):
                    for tx in range(2):
                        p = jnp.dot(taps[py + ty][px + tx],
                                    w_ref[phase, 2 * ty + tx],
                                    preferred_element_type=jnp.float32)
                        acc = p if acc is None else acc + p
            acc = acc + bias
            o_ref[0, phase] = acc.reshape(t_h, W, t_cout).astype(o_ref.dtype)


# ---------------------------------------------------------------------------
# Module wrapper
# ---------------------------------------------------------------------------

class UpsamplePallas:
    """Pallas port of the PyTorch Upsample module (dims=2, padding=1)."""

    def __init__(self, channels, use_conv, dims=2, out_channels=None,
                 padding=1, *, key=None, compute_dtype=jnp.bfloat16,
                 weight=None, bias=None, cout_tile=None, row_tile=None):
        assert dims == 2, "only dims=2 implemented"  # TODO(synk): dims=1/3
        self.channels = channels
        self.out_channels = out_channels or channels
        self.use_conv = use_conv
        self.compute_dtype = jnp.dtype(compute_dtype)
        self.cout_tile = cout_tile
        self.row_tile = row_tile

        if use_conv:
            assert padding == 1, "only padding=1 implemented"  # TODO(synk)
            cout = self.out_channels
            if weight is None or bias is None:
                if key is None:
                    key = jax.random.PRNGKey(0)
                kw_key, kb_key = jax.random.split(key)
                fan_in = channels * 9
                bound = 1.0 / math.sqrt(fan_in)
                if weight is None:  # HWIO, torch Conv2d default init range
                    weight = jax.random.uniform(
                        kw_key, (3, 3, channels, cout), jnp.float32,
                        -bound, bound)
                if bias is None:
                    bias = jax.random.uniform(
                        kb_key, (cout,), jnp.float32, -bound, bound)
            self.weight = jnp.asarray(weight, jnp.float32)     # (3,3,Cin,Cout)
            self.bias = jnp.asarray(bias, jnp.float32).reshape(cout)

            # Sub-pixel decomposition of (nearest-2x -> pad1 -> conv3x3):
            # output row 2i+py reads original rows i + (py - 1 + ty), ty in
            # {0,1}; A[p, t, k] = 1 iff 3x3 row-tap k maps to tap index t for
            # phase p (same combination applies independently to columns).
            A = jnp.array([[[1., 0., 0.], [0., 1., 1.]],
                           [[1., 1., 0.], [0., 0., 1.]]], jnp.float32)
            w_phase = jnp.einsum('ptk,qsl,klio->pqtsio', A, A, self.weight,
                                 precision=lax.Precision.HIGHEST)
            # (4 phases, 4 taps, Cin, Cout); MXU operands in compute_dtype.
            self.w_phase = w_phase.reshape(4, 4, channels, cout).astype(
                self.compute_dtype)
            self.bias2d = self.bias.reshape(1, cout)           # keep fp32

    # ---- adapters (depth-to-space folded into the output transpose) --------
    def __call__(self, x_nchw):
        assert x_nchw.shape[1] == self.channels
        x_nhwc = jnp.transpose(x_nchw, (0, 2, 3, 1))
        y = self._forward_phase_major(x_nhwc)           # (N, 4, H, W, Cout)
        N, _, H, W, C = y.shape
        y = y.reshape(N, 2, 2, H, W, C)
        y = jnp.transpose(y, (0, 5, 3, 1, 4, 2))         # (N, C, H, 2, W, 2)
        return y.reshape(N, C, 2 * H, 2 * W)

    def forward_nhwc(self, x_nhwc):
        y = self._forward_phase_major(x_nhwc)           # (N, 4, H, W, Cout)
        N, _, H, W, C = y.shape
        y = y.reshape(N, 2, 2, H, W, C)
        y = jnp.transpose(y, (0, 3, 1, 4, 2, 5))         # (N, H, 2, W, 2, C)
        return y.reshape(N, 2 * H, 2 * W, C)

    # ---- phase-major core ---------------------------------------------------
    def _forward_phase_major(self, x_nhwc):
        N, H, W, C = x_nhwc.shape
        assert C == self.channels
        out_dtype = x_nhwc.dtype
        out_bytes = jnp.dtype(out_dtype).itemsize
        vmem_limit = _vmem_limit_bytes()

        if not self.use_conv:
            t_h = self.row_tile or _pick_row_tile_noconv(H, W, C, out_bytes)
            assert H % t_h == 0
            n_h = H // t_h
            return pl.pallas_call(
                _upsample_only_kernel,
                out_shape=jax.ShapeDtypeStruct((N, 4, H, W, C), out_dtype),
                grid_spec=pltpu.PrefetchScalarGridSpec(
                    num_scalar_prefetch=0,
                    grid=(N, n_h),
                    in_specs=[pl.BlockSpec((1, t_h, W, C),
                                           lambda n, h: (n, h, 0, 0))],
                    out_specs=pl.BlockSpec((1, 4, t_h, W, C),
                                           lambda n, h: (n, 0, h, 0, 0))),
                compiler_params=pltpu.CompilerParams(
                    dimension_semantics=("parallel", "parallel"),
                    vmem_limit_bytes=vmem_limit),
            )(x_nhwc)

        Cout = self.out_channels
        t_cout = self.cout_tile
        if t_cout is None:
            t_cout = 128 if (Cout > 128 and Cout % 128 == 0) else Cout
        assert Cout % t_cout == 0
        n_co = Cout // t_cout

        t_h = self.row_tile or _pick_row_tile_conv(H, W, C, t_cout, out_bytes)
        assert H % t_h == 0
        n_h = H // t_h

        # MXU operands in compute dtype (bf16 by default); accumulate fp32.
        xc = x_nhwc.astype(self.compute_dtype)
        # Halo pad (1 original pixel) once, HBM-side.
        # TODO(synk): fold this pad into the input DMA to save one input
        #             HBM round trip.
        xp = jnp.pad(xc, ((0, 0), (1, 1), (1, 1), (0, 0)))

        return pl.pallas_call(
            _upsample_conv_kernel,
            out_shape=jax.ShapeDtypeStruct((N, 4, H, W, Cout), out_dtype),
            grid_spec=pltpu.PrefetchScalarGridSpec(
                num_scalar_prefetch=0,
                grid=(N, n_co, n_h),
                in_specs=[
                    # whole padded image, resident across (co, h)
                    pl.BlockSpec((1, H + 2, W + 2, C),
                                 lambda n, co, h: (n, 0, 0, 0)),
                    # weights resident across the inner h axis
                    pl.BlockSpec((4, 4, C, t_cout),
                                 lambda n, co, h: (0, 0, 0, co)),
                    pl.BlockSpec((1, t_cout), lambda n, co, h: (0, co)),
                ],
                out_specs=pl.BlockSpec((1, 4, t_h, W, t_cout),
                                       lambda n, co, h: (n, 0, h, 0, co))),
            compiler_params=pltpu.CompilerParams(
                dimension_semantics=("parallel", "parallel", "parallel"),
                vmem_limit_bytes=vmem_limit),
        )(xp, self.w_phase, self.bias2d)


# ---------------------------------------------------------------------------
# Pure-JAX reference (PyTorch semantics: nearest 2x + conv3x3 pad=1 + bias)
# ---------------------------------------------------------------------------

def _reference(x_nchw, mod: UpsamplePallas):
    x_up = jnp.repeat(jnp.repeat(x_nchw, 2, axis=2), 2, axis=3)
    if not mod.use_conv:
        return x_up
    y = lax.conv_general_dilated(
        x_up.astype(jnp.float32), mod.weight,
        window_strides=(1, 1),
        padding=((1, 1), (1, 1)),
        dimension_numbers=("NCHW", "HWIO", "NCHW"),
        precision=lax.Precision.HIGHEST)
    return y + mod.bias.reshape(1, -1, 1, 1)


if __name__ == "__main__":
    key = jax.random.PRNGKey(0)
    k_x, k_w, k_b = jax.random.split(key, 3)

    N, C, H, W = 2, 4, 16, 16
    x = jax.random.normal(k_x, (N, C, H, W), jnp.float32)
    # Round test data so the bf16 cast of MXU operands is lossless and the
    # comparison against the exact fp32 reference stays tight.
    x = lax.convert_element_type(
        lax.convert_element_type(x, jnp.bfloat16), jnp.float32)

    bound = 1.0 / math.sqrt(C * 9)
    w = jax.random.uniform(k_w, (3, 3, C, C), jnp.float32, -bound, bound)
    w = jnp.round(w * 64.0) / 64.0   # sums of taps stay exactly representable
    b = jax.random.uniform(k_b, (C,), jnp.float32, -bound, bound)

    # --- conv path ---------------------------------------------------------
    mod = UpsamplePallas(channels=C, use_conv=True, dims=2, out_channels=C,
                         padding=1, weight=w, bias=b)
    out = jax.block_until_ready(mod(x))
    assert out.shape == (N, C, 2 * H, 2 * W), out.shape
    ref = jax.block_until_ready(_reference(x, mod))
    np.testing.assert_allclose(np.asarray(out), np.asarray(ref),
                               rtol=2e-3, atol=2e-3)

    # --- no-conv path ------------------------------------------------------
    mod2 = UpsamplePallas(channels=C, use_conv=False, dims=2)
    out2 = jax.block_until_ready(mod2(x))
    assert out2.shape == (N, C, 2 * H, 2 * W), out2.shape
    ref2 = jax.block_until_ready(_reference(x, mod2))
    np.testing.assert_allclose(np.asarray(out2), np.asarray(ref2),
                               rtol=1e-6, atol=0)

    print("KERNEL_OK")
</pallas_src>

<mosaic_0001>
module attributes {stable_mosaic.version = 11 : i64} {
  func.func @_upsample_conv_kernel(%arg0: i32, %arg1: i32, %arg2: i32, %arg3: memref<1x18x18x4xbf16, #tpu.memory_space<vmem>>, %arg4: memref<4x4x4x4xbf16, #tpu.memory_space<vmem>>, %arg5: memref<1x4xf32, #tpu.memory_space<vmem>>, %arg6: memref<1x4x16x16x4xf32, #tpu.memory_space<vmem>>) attributes {dimension_semantics = [#tpu.dimension_semantics<parallel>, #tpu.dimension_semantics<parallel>, #tpu.dimension_semantics<parallel>], iteration_bounds = array<i64: 2, 1, 1>, scalar_prefetch = 0 : i64, scratch_operands = 0 : i64, tpu.core_type = #tpu.core_type<tc>, window_params = [{transform_indices = @transform_0, window_bounds = array<i64: 1, 18, 18, 4>}, {transform_indices = @transform_1, window_bounds = array<i64: 4, 4, 4, 4>}, {transform_indices = @transform_2, window_bounds = array<i64: 1, 4>}, {transform_indices = @transform_3, window_bounds = array<i64: 1, 4, 16, 16, 4>}]} {
    %c16_i32 = arith.constant 16 : i32
    %0 = arith.muli %arg2, %c16_i32 : i32
    %1 = tpu.assume_multiple %0, 16 : i32
    %c0_i32 = arith.constant 0 : i32
    %2 = arith.addi %1, %c0_i32 : i32
    %c0 = arith.constant 0 : index
    %3 = arith.index_cast %2 : i32 to index
    %c0_0 = arith.constant 0 : index
    %c0_1 = arith.constant 0 : index
    %4 = vector.load %arg3[%c0, %3, %c0_0, %c0_1] : memref<1x18x18x4xbf16, #tpu.memory_space<vmem>>, vector<1x16x16x4xbf16>
    %5 = vector.shape_cast %4 : vector<1x16x16x4xbf16> to vector<16x16x4xbf16>
    %6 = vector.shape_cast %5 : vector<16x16x4xbf16> to vector<256x4xbf16>
    %c0_i32_2 = arith.constant 0 : i32
    %7 = arith.addi %1, %c0_i32_2 : i32
    %c0_3 = arith.constant 0 : index
    %8 = arith.index_cast %7 : i32 to index
    %c1 = arith.constant 1 : index
    %c0_4 = arith.constant 0 : index
    %9 = vector.load %arg3[%c0_3, %8, %c1, %c0_4] : memref<1x18x18x4xbf16, #tpu.memory_space<vmem>>, vector<1x16x16x4xbf16>
    %10 = vector.shape_cast %9 : vector<1x16x16x4xbf16> to vector<16x16x4xbf16>
    %11 = vector.shape_cast %10 : vector<16x16x4xbf16> to vector<256x4xbf16>
    %c0_i32_5 = arith.constant 0 : i32
    %12 = arith.addi %1, %c0_i32_5 : i32
    %c0_6 = arith.constant 0 : index
    %13 = arith.index_cast %12 : i32 to index
    %c2 = arith.constant 2 : index
    %c0_7 = arith.constant 0 : index
    %14 = vector.load %arg3[%c0_6, %13, %c2, %c0_7] : memref<1x18x18x4xbf16, #tpu.memory_space<vmem>>, vector<1x16x16x4xbf16>
    %15 = vector.shape_cast %14 : vector<1x16x16x4xbf16> to vector<16x16x4xbf16>
    %16 = vector.shape_cast %15 : vector<16x16x4xbf16> to vector<256x4xbf16>
    %c1_i32 = arith.constant 1 : i32
    %17 = arith.addi %1, %c1_i32 : i32
    %c0_8 = arith.constant 0 : index
    %18 = arith.index_cast %17 : i32 to index
    %c0_9 = arith.constant 0 : index
    %c0_10 = arith.constant 0 : index
    %19 = vector.load %arg3[%c0_8, %18, %c0_9, %c0_10] : memref<1x18x18x4xbf16, #tpu.memory_space<vmem>>, vector<1x16x16x4xbf16>
    %20 = vector.shape_cast %19 : vector<1x16x16x4xbf16> to vector<16x16x4xbf16>
    %21 = vector.shape_cast %20 : vector<16x16x4xbf16> to vector<256x4xbf16>
    %c1_i32_11 = arith.constant 1 : i32
    %22 = arith.addi %1, %c1_i32_11 : i32
    %c0_12 = arith.constant 0 : index
    %23 = arith.index_cast %22 : i32 to index
    %c1_13 = arith.constant 1 : index
    %c0_14 = arith.constant 0 : index
    %24 = vector.load %arg3[%c0_12, %23, %c1_13, %c0_14] : memref<1x18x18x4xbf16, #tpu.memory_space<vmem>>, vector<1x16x16x4xbf16>
    %25 = vector.shape_cast %24 : vector<1x16x16x4xbf16> to vector<16x16x4xbf16>
    %26 = vector.shape_cast %25 : vector<16x16x4xbf16> to vector<256x4xbf16>
    %c1_i32_15 = arith.constant 1 : i32
    %27 = arith.addi %1, %c1_i32_15 : i32
    %c0_16 = arith.constant 0 : index
    %28 = arith.index_cast %27 : i32 to index
    %c2_17 = arith.constant 2 : index
    %c0_18 = arith.constant 0 : index
    %29 = vector.load %arg3[%c0_16, %28, %c2_17, %c0_18] : memref<1x18x18x4xbf16, #tpu.memory_space<vmem>>, vector<1x16x16x4xbf16>
    %30 = vector.shape_cast %29 : vector<1x16x16x4xbf16> to vector<16x16x4xbf16>
    %31 = vector.shape_cast %30 : vector<16x16x4xbf16> to vector<256x4xbf16>
    %c2_i32 = arith.constant 2 : i32
    %32 = arith.addi %1, %c2_i32 : i32
    %c0_19 = arith.constant 0 : index
    %33 = arith.index_cast %32 : i32 to index
    %c0_20 = arith.constant 0 : index
    %c0_21 = arith.constant 0 : index
    %34 = vector.load %arg3[%c0_19, %33, %c0_20, %c0_21] : memref<1x18x18x4xbf16, #tpu.memory_space<vmem>>, vector<1x16x16x4xbf16>
    %35 = vector.shape_cast %34 : vector<1x16x16x4xbf16> to vector<16x16x4xbf16>
    %36 = vector.shape_cast %35 : vector<16x16x4xbf16> to vector<256x4xbf16>
    %c2_i32_22 = arith.constant 2 : i32
    %37 = arith.addi %1, %c2_i32_22 : i32
    %c0_23 = arith.constant 0 : index
    %38 = arith.index_cast %37 : i32 to index
    %c1_24 = arith.constant 1 : index
    %c0_25 = arith.constant 0 : index
    %39 = vector.load %arg3[%c0_23, %38, %c1_24, %c0_25] : memref<1x18x18x4xbf16, #tpu.memory_space<vmem>>, vector<1x16x16x4xbf16>
    %40 = vector.shape_cast %39 : vector<1x16x16x4xbf16> to vector<16x16x4xbf16>
    %41 = vector.shape_cast %40 : vector<16x16x4xbf16> to vector<256x4xbf16>
    %c2_i32_26 = arith.constant 2 : i32
    %42 = arith.addi %1, %c2_i32_26 : i32
    %c0_27 = arith.constant 0 : index
    %43 = arith.index_cast %42 : i32 to index
    %c2_28 = arith.constant 2 : index
    %c0_29 = arith.constant 0 : index
    %44 = vector.load %arg3[%c0_27, %43, %c2_28, %c0_29] : memref<1x18x18x4xbf16, #tpu.memory_space<vmem>>, vector<1x16x16x4xbf16>
    %45 = vector.shape_cast %44 : vector<1x16x16x4xbf16> to vector<16x16x4xbf16>
    %46 = vector.shape_cast %45 : vector<16x16x4xbf16> to vector<256x4xbf16>
    %c0_30 = arith.constant 0 : index
    %c0_31 = arith.constant 0 : index
    %47 = vector.load %arg5[%c0_30, %c0_31] : memref<1x4xf32, #tpu.memory_space<vmem>>, vector<1x4xf32>
    %48 = vector.shape_cast %47 : vector<1x4xf32> to vector<1x4xf32>
    %49 = vector.broadcast %48 : vector<1x4xf32> to vector<256x4xf32>
    %c0_32 = arith.constant 0 : index
    %c0_33 = arith.constant 0 : index
    %c0_34 = arith.constant 0 : index
    %c0_35 = arith.constant 0 : index
    %50 = vector.load %arg4[%c0_32, %c0_33, %c0_34, %c0_35] : memref<4x4x4x4xbf16, #tpu.memory_space<vmem>>, vector<1x1x4x4xbf16>
    %51 = vector.shape_cast %50 : vector<1x1x4x4xbf16> to vector<4x4xbf16>
    %cst = arith.constant dense<0.000000e+00> : vector<256x4xf32>
    %52 = tpu.matmul %6, %51, %cst {dimension_numbers = #tpu.dot_dimension_numbers<[1], [0], [0], [1], [0, 0, 1, 1], [], []>} : vector<256x4xbf16>, vector<4x4xbf16>, vector<256x4xf32> -> vector<256x4xf32>
    %c0_36 = arith.constant 0 : index
    %c1_37 = arith.constant 1 : index
    %c0_38 = arith.constant 0 : index
    %c0_39 = arith.constant 0 : index
    %53 = vector.load %arg4[%c0_36, %c1_37, %c0_38, %c0_39] : memref<4x4x4x4xbf16, #tpu.memory_space<vmem>>, vector<1x1x4x4xbf16>
    %54 = vector.shape_cast %53 : vector<1x1x4x4xbf16> to vector<4x4xbf16>
    %cst_40 = arith.constant dense<0.000000e+00> : vector<256x4xf32>
    %55 = tpu.matmul %11, %54, %cst_40 {dimension_numbers = #tpu.dot_dimension_numbers<[1], [0], [0], [1], [0, 0, 1, 1], [], []>} : vector<256x4xbf16>, vector<4x4xbf16>, vector<256x4xf32> -> vector<256x4xf32>
    %56 = arith.addf %52, %55 : vector<256x4xf32>
    %c0_41 = arith.constant 0 : index
    %c2_42 = arith.constant 2 : index
    %c0_43 = arith.constant 0 : index
    %c0_44 = arith.constant 0 : index
    %57 = vector.load %arg4[%c0_41, %c2_42, %c0_43, %c0_44] : memref<4x4x4x4xbf16, #tpu.memory_space<vmem>>, vector<1x1x4x4xbf16>
    %58 = vector.shape_cast %57 : vector<1x1x4x4xbf16> to vector<4x4xbf16>
    %cst_45 = arith.constant dense<0.000000e+00> : vector<256x4xf32>
    %59 = tpu.matmul %21, %58, %cst_45 {dimension_numbers = #tpu.dot_dimension_numbers<[1], [0], [0], [1], [0, 0, 1, 1], [], []>} : vector<256x4xbf16>, vector<4x4xbf16>, vector<256x4xf32> -> vector<256x4xf32>
    %60 = arith.addf %56, %59 : vector<256x4xf32>
    %c0_46 = arith.constant 0 : index
    %c3 = arith.constant 3 : index
    %c0_47 = arith.constant 0 : index
    %c0_48 = arith.constant 0 : index
    %61 = vector.load %arg4[%c0_46, %c3, %c0_47, %c0_48] : memref<4x4x4x4xbf16, #tpu.memory_space<vmem>>, vector<1x1x4x4xbf16>
    %62 = vector.shape_cast %61 : vector<1x1x4x4xbf16> to vector<4x4xbf16>
    %cst_49 = arith.constant dense<0.000000e+00> : vector<256x4xf32>
    %63 = tpu.matmul %26, %62, %cst_49 {dimension_numbers = #tpu.dot_dimension_numbers<[1], [0], [0], [1], [0, 0, 1, 1], [], []>} : vector<256x4xbf16>, vector<4x4xbf16>, vector<256x4xf32> -> vector<256x4xf32>
    %64 = arith.addf %60, %63 : vector<256x4xf32>
    %65 = arith.addf %64, %49 : vector<256x4xf32>
    %66 = vector.shape_cast %65 : vector<256x4xf32> to vector<16x16x4xf32>
    %c0_50 = arith.constant 0 : index
    %c0_51 = arith.constant 0 : index
    %c0_52 = arith.constant 0 : index
    %c0_53 = arith.constant 0 : index
    %c0_54 = arith.constant 0 : index
    %67 = vector.load %arg6[%c0_50, %c0_51, %c0_52, %c0_53, %c0_54] : memref<1x4x16x16x4xf32, #tpu.memory_space<vmem>>, vector<1x1x16x16x4xf32>
    %68 = vector.shape_cast %67 : vector<1x1x16x16x4xf32> to vector<16x16x4xf32>
    %69 = vector.shape_cast %66 : vector<16x16x4xf32> to vector<1x1x16x16x4xf32>
    tpu.vector_store %arg6[%c0_50, %c0_51, %c0_52, %c0_53, %c0_54], %69 {strides = array<i32>} : memref<1x4x16x16x4xf32, #tpu.memory_space<vmem>>, vector<1x1x16x16x4xf32>,
    %c1_55 = arith.constant 1 : index
    %c0_56 = arith.constant 0 : index
    %c0_57 = arith.constant 0 : index
    %c0_58 = arith.constant 0 : index
    %70 = vector.load %arg4[%c1_55, %c0_56, %c0_57, %c0_58] : memref<4x4x4x4xbf16, #tpu.memory_space<vmem>>, vector<1x1x4x4xbf16>
    %71 = vector.shape_cast %70 : vector<1x1x4x4xbf16> to vector<4x4xbf16>
    %cst_59 = arith.constant dense<0.000000e+00> : vector<256x4xf32>
    %72 = tpu.matmul %11, %71, %cst_59 {dimension_numbers = #tpu.dot_dimension_numbers<[1], [0], [0], [1], [0, 0, 1, 1], [], []>} : vector<256x4xbf16>, vector<4x4xbf16>, vector<256x4xf32> -> vector<256x4xf32>
    %c1_60 = arith.constant 1 : index
    %c1_61 = arith.constant 1 : index
    %c0_62 = arith.constant 0 : index
    %c0_63 = arith.constant 0 : index
    %73 = vector.load %arg4[%c1_60, %c1_61, %c0_62, %c0_63] : memref<4x4x4x4xbf16, #tpu.memory_space<vmem>>, vector<1x1x4x4xbf16>
    %74 = vector.shape_cast %73 : vector<1x1x4x4xbf16> to vector<4x4xbf16>
    %cst_64 = arith.constant dense<0.000000e+00> : vector<256x4xf32>
    %75 = tpu.matmul %16, %74, %cst_64 {dimension_numbers = #tpu.dot_dimension_numbers<[1], [0], [0], [1], [0, 0, 1, 1], [], []>} : vector<256x4xbf16>, vector<4x4xbf16>, vector<256x4xf32> -> vector<256x4xf32>
    %76 = arith.addf %72, %75 : vector<256x4xf32>
    %c1_65 = arith.constant 1 : index
    %c2_66 = arith.constant 2 : index
    %c0_67 = arith.constant 0 : index
    %c0_68 = arith.constant 0 : index
    %77 = vector.load %arg4[%c1_65, %c2_66, %c0_67, %c0_68] : memref<4x4x4x4xbf16, #tpu.memory_space<vmem>>, vector<1x1x4x4xbf16>
    %78 = vector.shape_cast %77 : vector<1x1x4x4xbf16> to vector<4x4xbf16>
    %cst_69 = arith.constant dense<0.000000e+00> : vector<256x4xf32>
    %79 = tpu.matmul %26, %78, %cst_69 {dimension_numbers = #tpu.dot_dimension_numbers<[1], [0], [0], [1], [0, 0, 1, 1], [], []>} : vector<256x4xbf16>, vector<4x4xbf16>, vector<256x4xf32> -> vector<256x4xf32>
    %80 = arith.addf %76, %79 : vector<256x4xf32>
    %c1_70 = arith.constant 1 : index
    %c3_71 = arith.constant 3 : index
    %c0_72 = arith.constant 0 : index
    %c0_73 = arith.constant 0 : index
    %81 = vector.load %arg4[%c1_70, %c3_71, %c0_72, %c0_73] : memref<4x4x4x4xbf16, #tpu.memory_space<vmem>>, vector<1x1x4x4xbf16>
    %82 = vector.shape_cast %81 : vector<1x1x4x4xbf16> to vector<4x4xbf16>
    %cst_74 = arith.constant dense<0.000000e+00> : vector<256x4xf32>
    %83 = tpu.matmul %31, %82, %cst_74 {dimension_numbers = #tpu.dot_dimension_numbers<[1], [0], [0], [1], [0, 0, 1, 1], [], []>} : vector<256x4xbf16>, vector<4x4xbf16>, vector<256x4xf32> -> vector<256x4xf32>
    %84 = arith.addf %80, %83 : vector<256x4xf32>
    %85 = arith.addf %84, %49 : vector<256x4xf32>
    %86 = vector.shape_cast %85 : vector<256x4xf32> to vector<16x16x4xf32>
    %c0_75 = arith.constant 0 : index
    %c1_76 = arith.constant 1 : index
    %c0_77 = arith.constant 0 : index
    %c0_78 = arith.constant 0 : index
    %c0_79 = arith.constant 0 : index
    %87 = vector.load %arg6[%c0_75, %c1_76, %c0_77, %c0_78, %c0_79] : memref<1x4x16x16x4xf32, #tpu.memory_space<vmem>>, vector<1x1x16x16x4xf32>
    %88 = vector.shape_cast %87 : vector<1x1x16x16x4xf32> to vector<16x16x4xf32>
    %89 = vector.shape_cast %86 : vector<16x16x4xf32> to vector<1x1x16x16x4xf32>
    tpu.vector_store %arg6[%c0_75, %c1_76, %c0_77, %c0_78, %c0_79], %89 {strides = array<i32>} : memref<1x4x16x16x4xf32, #tpu.memory_space<vmem>>, vector<1x1x16x16x4xf32>,
    %c2_80 = arith.constant 2 : index
    %c0_81 = arith.constant 0 : index
    %c0_82 = arith.constant 0 : index
    %c0_83 = arith.constant 0 : index
    %90 = vector.load %arg4[%c2_80, %c0_81, %c0_82, %c0_83] : memref<4x4x4x4xbf16, #tpu.memory_space<vmem>>, vector<1x1x4x4xbf16>
    %91 = vector.shape_cast %90 : vector<1x1x4x4xbf16> to vector<4x4xbf16>
    %cst_84 = arith.constant dense<0.000000e+00> : vector<256x4xf32>
    %92 = tpu.matmul %21, %91, %cst_84 {dimension_numbers = #tpu.dot_dimension_numbers<[1], [0], [0], [1], [0, 0, 1, 1], [], []>} : vector<256x4xbf16>, vector<4x4xbf16>, vector<256x4xf32> -> vector<256x4xf32>
    %c2_85 = arith.constant 2 : index
    %c1_86 = arith.constant 1 : index
    %c0_87 = arith.constant 0 : index
    %c0_88 = arith.constant 0 : index
    %93 = vector.load %arg4[%c2_85, %c1_86, %c0_87, %c0_88] : memref<4x4x4x4xbf16, #tpu.memory_space<vmem>>, vector<1x1x4x4xbf16>
    %94 = vector.shape_cast %93 : vector<1x1x4x4xbf16> to vector<4x4xbf16>
    %cst_89 = arith.constant dense<0.000000e+00> : vector<256x4xf32>
    %95 = tpu.matmul %26, %94, %cst_89 {dimension_numbers = #tpu.dot_dimension_numbers<[1], [0], [0], [1], [0, 0, 1, 1], [], []>} : vector<256x4xbf16>, vector<4x4xbf16>, vector<256x4xf32> -> vector<256x4xf32>
    %96 = arith.addf %92, %95 : vector<256x4xf32>
    %c2_90 = arith.constant 2 : index
    %c2_91 = arith.constant 2 : index
    %c0_92 = arith.constant 0 : index
    %c0_93 = arith.constant 0 : index
    %97 = vector.load %arg4[%c2_90, %c2_91, %c0_92, %c0_93] : memref<4x4x4x4xbf16, #tpu.memory_space<vmem>>, vector<1x1x4x4xbf16>
    %98 = vector.shape_cast %97 : vector<1x1x4x4xbf16> to vector<4x4xbf16>
    %cst_94 = arith.constant dense<0.000000e+00> : vector<256x4xf32>
    %99 = tpu.matmul %36, %98, %cst_94 {dimension_numbers = #tpu.dot_dimension_numbers<[1], [0], [0], [1], [0, 0, 1, 1], [], []>} : vector<256x4xbf16>, vector<4x4xbf16>, vector<256x4xf32> -> vector<256x4xf32>
    %100 = arith.addf %96, %99 : vector<256x4xf32>
    %c2_95 = arith.constant 2 : index
    %c3_96 = arith.constant 3 : index
    %c0_97 = arith.constant 0 : index
    %c0_98 = arith.constant 0 : index
    %101 = vector.load %arg4[%c2_95, %c3_96, %c0_97, %c0_98] : memref<4x4x4x4xbf16, #tpu.memory_space<vmem>>, vector<1x1x4x4xbf16>
    %102 = vector.shape_cast %101 : vector<1x1x4x4xbf16> to vector<4x4xbf16>
    %cst_99 = arith.constant dense<0.000000e+00> : vector<256x4xf32>
    %103 = tpu.matmul %41, %102, %cst_99 {dimension_numbers = #tpu.dot_dimension_numbers<[1], [0], [0], [1], [0, 0, 1, 1], [], []>} : vector<256x4xbf16>, vector<4x4xbf16>, vector<256x4xf32> -> vector<256x4xf32>
    %104 = arith.addf %100, %103 : vector<256x4xf32>
    %105 = arith.addf %104, %49 : vector<256x4xf32>
    %106 = vector.shape_cast %105 : vector<256x4xf32> to vector<16x16x4xf32>
    %c0_100 = arith.constant 0 : index
    %c2_101 = arith.constant 2 : index
    %c0_102 = arith.constant 0 : index
    %c0_103 = arith.constant 0 : index
    %c0_104 = arith.constant 0 : index
    %107 = vector.load %arg6[%c0_100, %c2_101, %c0_102, %c0_103, %c0_104] : memref<1x4x16x16x4xf32, #tpu.memory_space<vmem>>, vector<1x1x16x16x4xf32>
    %108 = vector.shape_cast %107 : vector<1x1x16x16x4xf32> to vector<16x16x4xf32>
    %109 = vector.shape_cast %106 : vector<16x16x4xf32> to vector<1x1x16x16x4xf32>
    tpu.vector_store %arg6[%c0_100, %c2_101, %c0_102, %c0_103, %c0_104], %109 {strides = array<i32>} : memref<1x4x16x16x4xf32, #tpu.memory_space<vmem>>, vector<1x1x16x16x4xf32>,
    %c3_105 = arith.constant 3 : index
    %c0_106 = arith.constant 0 : index
    %c0_107 = arith.constant 0 : index
    %c0_108 = arith.constant 0 : index
    %110 = vector.load %arg4[%c3_105, %c0_106, %c0_107, %c0_108] : memref<4x4x4x4xbf16, #tpu.memory_space<vmem>>, vector<1x1x4x4xbf16>
    %111 = vector.shape_cast %110 : vector<1x1x4x4xbf16> to vector<4x4xbf16>
    %cst_109 = arith.constant dense<0.000000e+00> : vector<256x4xf32>
    %112 = tpu.matmul %26, %111, %cst_109 {dimension_numbers = #tpu.dot_dimension_numbers<[1], [0], [0], [1], [0, 0, 1, 1], [], []>} : vector<256x4xbf16>, vector<4x4xbf16>, vector<256x4xf32> -> vector<256x4xf32>
    %c3_110 = arith.constant 3 : index
    %c1_111 = arith.constant 1 : index
    %c0_112 = arith.constant 0 : index
    %c0_113 = arith.constant 0 : index
    %113 = vector.load %arg4[%c3_110, %c1_111, %c0_112, %c0_113] : memref<4x4x4x4xbf16, #tpu.memory_space<vmem>>, vector<1x1x4x4xbf16>
    %114 = vector.shape_cast %113 : vector<1x1x4x4xbf16> to vector<4x4xbf16>
    %cst_114 = arith.constant dense<0.000000e+00> : vector<256x4xf32>
    %115 = tpu.matmul %31, %114, %cst_114 {dimension_numbers = #tpu.dot_dimension_numbers<[1], [0], [0], [1], [0, 0, 1, 1], [], []>} : vector<256x4xbf16>, vector<4x4xbf16>, vector<256x4xf32> -> vector<256x4xf32>
    %116 = arith.addf %112, %115 : vector<256x4xf32>
    %c3_115 = arith.constant 3 : index
    %c2_116 = arith.constant 2 : index
    %c0_117 = arith.constant 0 : index
    %c0_118 = arith.constant 0 : index
    %117 = vector.load %arg4[%c3_115, %c2_116, %c0_117, %c0_118] : memref<4x4x4x4xbf16, #tpu.memory_space<vmem>>, vector<1x1x4x4xbf16>
    %118 = vector.shape_cast %117 : vector<1x1x4x4xbf16> to vector<4x4xbf16>
    %cst_119 = arith.constant dense<0.000000e+00> : vector<256x4xf32>
    %119 = tpu.matmul %41, %118, %cst_119 {dimension_numbers = #tpu.dot_dimension_numbers<[1], [0], [0], [1], [0, 0, 1, 1], [], []>} : vector<256x4xbf16>, vector<4x4xbf16>, vector<256x4xf32> -> vector<256x4xf32>
    %120 = arith.addf %116, %119 : vector<256x4xf32>
    %c3_120 = arith.constant 3 : index
    %c3_121 = arith.constant 3 : index
    %c0_122 = arith.constant 0 : index
    %c0_123 = arith.constant 0 : index
    %121 = vector.load %arg4[%c3_120, %c3_121, %c0_122, %c0_123] : memref<4x4x4x4xbf16, #tpu.memory_space<vmem>>, vector<1x1x4x4xbf16>
    %122 = vector.shape_cast %121 : vector<1x1x4x4xbf16> to vector<4x4xbf16>
    %cst_124 = arith.constant dense<0.000000e+00> : vector<256x4xf32>
    %123 = tpu.matmul %46, %122, %cst_124 {dimension_numbers = #tpu.dot_dimension_numbers<[1], [0], [0], [1], [0, 0, 1, 1], [], []>} : vector<256x4xbf16>, vector<4x4xbf16>, vector<256x4xf32> -> vector<256x4xf32>
    %124 = arith.addf %120, %123 : vector<256x4xf32>
    %125 = arith.addf %124, %49 : vector<256x4xf32>
    %126 = vector.shape_cast %125 : vector<256x4xf32> to vector<16x16x4xf32>
    %c0_125 = arith.constant 0 : index
    %c3_126 = arith.constant 3 : index
    %c0_127 = arith.constant 0 : index
    %c0_128 = arith.constant 0 : index
    %c0_129 = arith.constant 0 : index
    %127 = vector.load %arg6[%c0_125, %c3_126, %c0_127, %c0_128, %c0_129] : memref<1x4x16x16x4xf32, #tpu.memory_space<vmem>>, vector<1x1x16x16x4xf32>
    %128 = vector.shape_cast %127 : vector<1x1x16x16x4xf32> to vector<16x16x4xf32>
    %129 = vector.shape_cast %126 : vector<16x16x4xf32> to vector<1x1x16x16x4xf32>
    tpu.vector_store %arg6[%c0_125, %c3_126, %c0_127, %c0_128, %c0_129], %129 {strides = array<i32>} : memref<1x4x16x16x4xf32, #tpu.memory_space<vmem>>, vector<1x1x16x16x4xf32>,
    return
  }
  func.func @transform_0(%arg0: i32, %arg1: i32, %arg2: i32) -> (i32, i32, i32, i32) {
    %c0_i32 = arith.constant 0 : i32
    %c0_i32_0 = arith.constant 0 : i32
    %c0_i32_1 = arith.constant 0 : i32
    %c0_i32_2 = arith.constant 0 : i32
    return %arg0, %c0_i32, %c0_i32_0, %c0_i32_1 : i32, i32, i32, i32
  }
  func.func @transform_1(%arg0: i32, %arg1: i32, %arg2: i32) -> (i32, i32, i32, i32) {
    %c0_i32 = arith.constant 0 : i32
    %c0_i32_0 = arith.constant 0 : i32
    %c0_i32_1 = arith.constant 0 : i32
    %c0_i32_2 = arith.constant 0 : i32
    return %c0_i32, %c0_i32_0, %c0_i32_1, %arg1 : i32, i32, i32, i32
  }
  func.func @transform_2(%arg0: i32, %arg1: i32, %arg2: i32) -> (i32, i32) {
    %c0_i32 = arith.constant 0 : i32
    %c0_i32_0 = arith.constant 0 : i32
    return %c0_i32, %arg1 : i32, i32
  }
  func.func @transform_3(%arg0: i32, %arg1: i32, %arg2: i32) -> (i32, i32, i32, i32, i32) {
    %c0_i32 = arith.constant 0 : i32
    %c0_i32_0 = arith.constant 0 : i32
    %c0_i32_1 = arith.constant 0 : i32
    return %arg0, %c0_i32, %arg2, %c0_i32_0, %arg1 : i32, i32, i32, i32, i32
  }
}

</mosaic_0001>

<bundles_post_ra>
// kernel: tpu_custom_call.1
= control target key start
LH: loop header
LB: loop body
LE: loop exit
PB: predicated region body
PF: predicated region fallthrough
CT: control target
= control target key end

     0   :  { %s8041_s12 = smov 0   ;;  %s8043_s13 = smov 0   ;;  %s11014_s0 = inlined_call_operand.vmem [shape: bf16[2,18,18,4], index: 0, kind: input, shape index: {}]   ;;  %s11015_s1 = inlined_call_operand.vmem [shape: bf16[4,4,4,4], index: 1, kind: input, shape index: {}]   ;;  %s11016_s2 = inlined_call_operand.vmem [shape: f32[1,4], index: 2, kind: input, shape index: {}]   ;;  %s11017_s3 = inlined_call_operand.vmem [shape: f32[2,4,16,16,4], index: 3, kind: output, shape index: {}]  }
   0x1   :  { %s8045_s14 = smov 0  }
   0x2 LB: > { %s32_s15 = sadd.s32 1, %s8015_s13  ;;  %p6319_p0 = scmp.ge.s32.totalorder %s8019_s14, 1  ;;  %s8019_s14 = sphi %s8045_s14, %s13_s14   ;;  %s8015_s13 = sphi %s8043_s13, %s11383_s13   ;;  %s8011_s12 = sphi %s8041_s12, %s11382_s12  }
   0x3   : > { %p34_p1 = scmp.ge.s32.totalorder %s32_s15, 2  ;;  %p177_p2 = scmp.lt.s32.totalorder %s8019_s14, 3 }
   0x5   : > { %s11385_s15 = smov (%p34_p1, %s32_s15), 0  ;;  %p178_p3 = pnand %p6319_p0, %p177_p2 }
   0x7   : > { %181 = sbr.rel (%p178_p3) target bundleno = 757 (0x2f5), region = 32 }
   0xc   : > { %v2092_v0 = vld [vmem:[%s11015_s1] sm:$0x3]  ;;  %vm2192_vm0 = vcmask 1041408   ;;  %v6500_v1 = vld [vmem:[%s11015_s1 + $0x2] sm:$0x3]  ;;  %p216_p4 = scmp.lt.s32.totalorder %s8011_s12, 1 }
   0xd   : > { %7831 = vmatprep.subr.msk.bf16.mxu1 %vm2192_vm0, %v2092_v0  ;;  %v2470_v2 = vsel %vm2192_vm0, %v2092_v0, 0  ;;  %7830 = vmatprep.subr.msk.bf16.mxu0 %vm2192_vm0, %v6500_v1  ;;  %v2194_v3 = vsel %vm2192_vm0, %v6500_v1, 0  ;;  %v6565_v4 = vld [vmem:[%s11015_s1 + $0x4] sm:$0x3]  ;;  %v6598_v5 = vld [vmem:[%s11015_s1 + $0x6] sm:$0x3] }
   0xe   : > { %7321 = vmatpush3.bf16.msra.mxu1 %v2470_v2  ;;  %s11387_s12 = smov (!%p216_p4, %s8011_s12), 1  ;;  %7287 = vmatpush3.bf16.msra.mxu0 %v2194_v3  ;;  %vm2143_vm1 = vcmask 31744   ;;  %vm295_vm2 = vsmask.f32 3328  ;;  %vm296_vm3 = vsmask.f32 7440 }
   0xf   : > { %7832 = vmatprep.subr.msk.bf16.mxu0 %vm2192_vm0, %v6565_v4  ;;  %s7846_s24 = smul.u32 216, %s11387_s12  ;;  %7833 = vmatprep.subr.msk.bf16.mxu1 %vm2192_vm0, %v6598_v5  ;;  %v8093_v9 = vld [vmem:[%s11015_s1 + $0xa] sm:$0x3]  ;;  %v8098_v14 = vsel %vm2192_vm0, %v6565_v4, 0  ;;  %v3042_v19 = vsel %vm2192_vm0, %v6598_v5, 0  ;;  %vm8117_vm4 = vmor %vm295_vm2, %vm296_vm3  ;;  %v11100_v34 = vmov 0 }
  0x10   : > { %v6631_v24 = vld [vmem:[%s11015_s1 + $0x8] sm:$0x3]  ;;  %v8112_v33 = vsel %vm2192_vm0, %v8093_v9, 0  ;;  %v11101_v34 = vsel %vm8117_vm4, 4294967295, %v11100_v34  ;;  %vm746_vm5 = vcmask 1042432   ;;  %vm747_vm6 = vcmask 1046532  }
  0x11   : > { %s8083_s27 = scalar_lea.vmem %s11014_s0, %s7846_s24  ;;  %11102 = vst [vmem:[#allocation2_spill] sm:$0xff] %v11101_v34  ;;  %v8123_v39 = vsel %vm2192_vm0, %v6631_v24, 0  ;;  %vm8642_vm7 = vmor %vm746_vm5, %vm747_vm6  ;;  %s7013_s21 = sshll.u32 %s11387_s12, 10 }
  0x12   : > { %v247_v6 = vld [vmem:[%s8083_s27] sm:$0xf]  ;;  %v8087_v7 = vld [vmem:[%s8083_s27 + $0x4] sm:$0xf]  ;;  %v249_v8 = vld [vmem:[%s8083_s27 + $0xc] sm:$0xf]  ;;  %s9193_s28 = scalar_lea.vmem %s11017_s3, %s7013_s21 }
  0x13   : > { %v299_v10 = vshrl.u32 %v247_v6, 16  ;;  %v302_v11 = vshll.u32 %v247_v6, 16  ;;  %v312_v12 = vshrl.u32 %v8087_v7, 16  ;;  %v250_v13 = vld [vmem:[%s8083_s27 + $0x10] sm:$0xf]  ;;  %v6533_v15 = vcombine.low %v247_v6, %v8087_v7 }
  0x14   : > { %v323_v16 = vshrl.u32 %v249_v8, 16  ;;  %v326_v17 = vshll.u32 %v249_v8, 16  ;;  %v279_v18 = vld [vmem:[%s8083_s27 + $0x8] sm:$0x1]  ;;  %v11018_v22 = vrot.slane %v8087_v7, 5  ;;  %v336_v23 = vshrl.u32 %v250_v13, 16 }
  0x15   : > { %v301_v20 = vrot.slane %v299_v10, 4  ;;  %v304_v21 = vrot.slane %v302_v11, 5  ;;  %7322 = vmatprep.mubr.msk.bf16.mxu1 %vm2143_vm1, %v6533_v15  ;;  %v6534_v27 = vcombine.low %v249_v8, %v250_v13  ;;  %v308_v28 = vshll.u32 %v8087_v7, 16  ;;  %v280_v29 = vld [vmem:[%s8083_s27 + $0x14] sm:$0x1] }
  0x16   : > { %v325_v25 = vrot.slane %v323_v16, 4  ;;  %v328_v26 = vrot.slane %v326_v17, 5  ;;  %v314_v31 = vrot.slane %v312_v12, 4  ;;  %v318_v32 = vshll.u32 %v279_v18, 16  ;;  %v251_v38 = vld [vmem:[%s8083_s27 + $0x18] sm:$0xf] }
  0x17   : > { %v305_v30 = vor.u32 %v304_v21, %v301_v20  ;;  %7323 = vmatmul.mubr.msk.bf16.vlgmr.msra.gmra.mxu1 %vm2143_vm1, %v6534_v27  ;;  %v310_v35 = vrot.slane %v308_v28, 5  ;;  %v332_v37 = vshll.u32 %v250_v13, 16  ;;  %v8127_v40 = vrot.slane %v11018_v22, 4  ;;  %v252_v44 = vld [vmem:[%s8083_s27 + $0x1c] sm:$0xf] }
  0x18   : > { %v329_v36 = vor.u32 %v328_v26, %v325_v25  ;;  %v338_v42 = vrot.slane %v336_v23, 4  ;;  %v342_v43 = vshll.u32 %v280_v29, 16  ;;  %7389 = vmatpush3.bf16.msra.mxu1 %v3042_v19  ;;  %v320_v46 = vrot.slane %v318_v32, 5  ;;  %v253_v49 = vld [vmem:[%s8083_s27 + $0x24] sm:$0xf] }
  0x19   : > { %v306_v41 = vrot.slane %v305_v30, 4  ;;  %v315_v45 = vor.u32 %v314_v31, %v310_v35  ;;  %v334_v48 = vrot.slane %v332_v37, 5  ;;  %7835 = vmatprep.subr.msk.bf16.mxu1 %vm2192_vm0, %v6631_v24  ;;  %v347_v52 = vshrl.u32 %v251_v38, 16  ;;  %v254_v54 = vld [vmem:[%s8083_s27 + $0x28] sm:$0xf] }
  0x1a   : > { %v330_v47 = vrot.slane %v329_v36, 4  ;;  %v344_v51 = vrot.slane %v342_v43, 5  ;;  %v350_v53 = vshll.u32 %v251_v38, 16  ;;  %v360_v58 = vshrl.u32 %v252_v44, 16  ;;  %v281_v3 = vld [vmem:[%s8083_s27 + $0x20] sm:$0x1] }
  0x1b   : > { %v311_v50 = vsel %vm8117_vm4, %v306_v41, %v310_v35  ;;  %v316_v55 = vrot.slane %v315_v45, 4  ;;  %v339_v57 = vor.u32 %v338_v42, %v334_v48  ;;  %v349_v59 = vrot.slane %v347_v52, 4  ;;  %v282_v10 = vld [vmem:[%s8083_s27 + $0x2c] sm:$0x1]  ;;  %v255_v16 = vld [vmem:[%s8083_s27 + $0x30] sm:$0xf] }
  0x1c   : > { %v335_v56 = vsel %vm8117_vm4, %v330_v47, %v334_v48  ;;  %v352_v60 = vrot.slane %v350_v53, 5  ;;  %v6535_v61 = vcombine.low %v251_v38, %v252_v44  ;;  %v371_v62 = vshrl.u32 %v253_v49, 16  ;;  %v256_v26 = vld [vmem:[%s8083_s27 + $0x34] sm:$0xf]  ;;  %v257_v31 = vld [vmem:[%s8083_s27 + $0x3c] sm:$0xf] }
  0x1d   : > { %v321_v63 = vsel %vm8117_vm4, %v316_v55, %v320_v46  ;;  %v340_v0 = vrot.slane %v339_v57, 4  ;;  %v374_v1 = vshll.u32 %v253_v49, 16  ;;  %v384_v2 = vshrl.u32 %v254_v54, 16  ;;  %v258_v38 = vld [vmem:[%s8083_s27 + $0x40] sm:$0xf] }
  0x1e   : > { %v8140_v4 = vcombine.low %v311_v50, %v321_v63  ;;  %7326 = vmatprep.mubr.msk.bf16.mxu1 %vm2143_vm1, %v6535_v61  ;;  %v373_v5 = vrot.slane %v371_v62, 4  ;;  %v6536_v6 = vcombine.low %v253_v49, %v254_v54  ;;  %v353_v8 = vor.u32 %v352_v60, %v349_v59  ;;  %v283_v52 = vld [vmem:[%s8083_s27 + $0x38] sm:$0x1]  ;;  %v259_v61 = vld [vmem:[%s8083_s27 + $0x48] sm:$0xf] }
  0x1f   : > { %v345_v11 = vsel %vm8117_vm4, %v340_v0, %v344_v51  ;;  %v376_v12 = vrot.slane %v374_v1, 5  ;;  %v356_v13 = vshll.u32 %v252_v44, 16  ;;  %v362_v15 = vrot.slane %v360_v58, 4 }
  0x20   : > { %7288 = vmatprep.mubr.msk.bf16.mxu0 %vm2143_vm1, %v8140_v4  ;;  %v8149_v17 = vcombine.low %v335_v56, %v345_v11  ;;  %7327 = vmatmul.mubr.msk.bf16.gmra.mxu1 %vm2143_vm1, %v6536_v6  ;;  %v354_v18 = vrot.slane %v353_v8, 4  ;;  %v366_v19 = vshll.u32 %v281_v3, 16  ;;  %v380_v20 = vshll.u32 %v254_v54, 16  ;;  %v284_v56 = vld [vmem:[%s8083_s27 + $0x44] sm:$0x1] }
  0x21   : > { %v358_v21 = vrot.slane %v356_v13, 5  ;;  %v377_v23 = vor.u32 %v376_v12, %v373_v5  ;;  %v386_v24 = vrot.slane %v384_v2, 4  ;;  %v390_v25 = vshll.u32 %v282_v10, 16  ;;  %v260_v8 = vld [vmem:[%s8083_s27 + $0x4c] sm:$0xf] }
  0x22   : > { %7289 = vmatmul.mubr.msk.bf16.vlgmr.msra.gmra.mxu0 %vm2143_vm1, %v8149_v17  ;;  %v368_v27 = vrot.slane %v366_v19, 5  ;;  %v382_v28 = vrot.slane %v380_v20, 5  ;;  %v395_v29 = vshrl.u32 %v255_v16, 16  ;;  %v398_v30 = vshll.u32 %v255_v16, 16 }
  0x23   : > { %7355 = vmatpush3.bf16.msra.mxu0 %v8098_v14  ;;  %v359_v32 = vsel %vm8117_vm4, %v354_v18, %v358_v21  ;;  %v363_v35 = vor.u32 %v362_v15, %v358_v21  ;;  %v378_v36 = vrot.slane %v377_v23, 4  ;;  %v392_v37 = vrot.slane %v390_v25, 5  ;;  %v261_v15 = vld [vmem:[%s8083_s27 + $0x54] sm:$0xf]  ;;  %v262_v21 = vld [vmem:[%s8083_s27 + $0x58] sm:$0xf] }
  0x24   : > { %v387_v41 = vor.u32 %v386_v24, %v382_v28  ;;  %v397_v42 = vrot.slane %v395_v29, 4  ;;  %v400_v43 = vrot.slane %v398_v30, 5  ;;  %v408_v44 = vshrl.u32 %v256_v26, 16  ;;  %7834 = vmatprep.subr.msk.bf16.mxu0 %vm2192_vm0, %v8093_v9 }
  0x25   : > { %v364_v45 = vrot.slane %v363_v35, 4  ;;  %v383_v14 = vsel %vm8117_vm4, %v378_v36, %v382_v28  ;;  %v6537_v46 = vcombine.low %v255_v16, %v256_v26  ;;  %v419_v47 = vshrl.u32 %v257_v31, 16 }
  0x26   : > { %v388_v48 = vrot.slane %v387_v41, 4  ;;  %v422_v49 = vshll.u32 %v257_v31, 16  ;;  %v432_v50 = vshrl.u32 %v258_v38, 16  ;;  %v6538_v51 = vcombine.low %v257_v31, %v258_v38  ;;  %v285_v31 = vld [vmem:[%s8083_s27 + $0x50] sm:$0x1] }
  0x27   : > { %v369_v53 = vsel %vm8117_vm4, %v364_v45, %v368_v27  ;;  %7330 = vmatprep.mubr.msk.bf16.mxu1 %vm2143_vm1, %v6537_v46  ;;  %v421_v54 = vrot.slane %v419_v47, 4  ;;  %v401_v55 = vor.u32 %v400_v43, %v397_v42  ;;  %v404_v9 = vshll.u32 %v256_v26, 16 }
  0x28   : > { %v8169_v57 = vcombine.low %v359_v32, %v369_v53  ;;  %v393_v58 = vsel %vm8117_vm4, %v388_v48, %v392_v37  ;;  %v424_v59 = vrot.slane %v422_v49, 5  ;;  %7331 = vmatmul.mubr.msk.bf16.gmra.mxu1 %vm2143_vm1, %v6538_v51  ;;  %v410_v60 = vrot.slane %v408_v44, 4  ;;  %v286_v44 = vld [vmem:[%s8083_s27 + $0x5c] sm:$0x1]  ;;  %v263_v48 = vld [vmem:[%s8083_s27 + $0x60] sm:$0xf] }
  0x29   : > { %v8175_v62 = vcombine.low %v383_v14, %v393_v58  ;;  %v402_v63 = vrot.slane %v401_v55, 4  ;;  %v406_v0 = vrot.slane %v404_v9, 5  ;;  %v414_v1 = vshll.u32 %v283_v52, 16  ;;  %v264_v53 = vld [vmem:[%s8083_s27 + $0x64] sm:$0xf] }
  0x2a   : > { %7292 = vmatprep.mubr.msk.bf16.mxu0 %vm2143_vm1, %v8169_v57  ;;  %v425_v2 = vor.u32 %v424_v59, %v421_v54  ;;  %v428_v3 = vshll.u32 %v258_v38, 16  ;;  %v434_v5 = vrot.slane %v432_v50, 4  ;;  %v438_v6 = vshll.u32 %v284_v56, 16 }
  0x2b   : > { %7293 = vmatmul.mubr.msk.bf16.gmra.mxu0 %vm2143_vm1, %v8175_v62  ;;  %v407_v10 = vsel %vm8117_vm4, %v402_v63, %v406_v0  ;;  %v411_v11 = vor.u32 %v410_v60, %v406_v0  ;;  %v416_v12 = vrot.slane %v414_v1, 5  ;;  %v443_v13 = vshrl.u32 %v259_v61, 16  ;;  %v265_v63 = vld [vmem:[%s8083_s27 + $0x6c] sm:$0xf] }
  0x2c   : > { %v426_v16 = vrot.slane %v425_v2, 4  ;;  %v430_v18 = vrot.slane %v428_v3, 5  ;;  %v440_v19 = vrot.slane %v438_v6, 5  ;;  %v446_v20 = vshll.u32 %v259_v61, 16 }
  0x2d   : > { %v412_v23 = vrot.slane %v411_v11, 4  ;;  %v445_v24 = vrot.slane %v443_v13, 4  ;;  %v456_v25 = vshrl.u32 %v260_v8, 16  ;;  %v6539_v26 = vcombine.low %v259_v61, %v260_v8 }
  0x2e   : > { %v431_v27 = vsel %vm8117_vm4, %v426_v16, %v430_v18  ;;  %v435_v28 = vor.u32 %v434_v5, %v430_v18  ;;  %v448_v29 = vrot.slane %v446_v20, 5  ;;  %v467_v30 = vshrl.u32 %v261_v15, 16  ;;  %v266_v5 = vld [vmem:[%s8083_s27 + $0x70] sm:$0xf] }
  0x2f   : > { %v417_v32 = vsel %vm8117_vm4, %v412_v23, %v416_v12  ;;  %7334 = vmatprep.mubr.msk.bf16.mxu1 %vm2143_vm1, %v6539_v26  ;;  %v470_v35 = vshll.u32 %v261_v15, 16  ;;  %v480_v36 = vshrl.u32 %v262_v21, 16  ;;  %v6540_v37 = vcombine.low %v261_v15, %v262_v21  ;;  %v287_v23 = vld [vmem:[%s8083_s27 + $0x68] sm:$0x1] }
  0x30   : > { %v8192_v38 = vcombine.low %v407_v10, %v417_v32  ;;  %v436_v41 = vrot.slane %v435_v28, 4  ;;  %v469_v42 = vrot.slane %v467_v30, 4  ;;  %v449_v43 = vor.u32 %v448_v29, %v445_v24  ;;  %v288_v28 = vld [vmem:[%s8083_s27 + $0x74] sm:$0x1] }
  0x31   : > { %v472_v45 = vrot.slane %v470_v35, 5  ;;  %7335 = vmatmul.mubr.msk.bf16.gmra.mxu1 %vm2143_vm1, %v6540_v37  ;;  %v452_v14 = vshll.u32 %v260_v8, 16  ;;  %v458_v46 = vrot.slane %v456_v25, 4  ;;  %v462_v47 = vshll.u32 %v285_v31, 16  ;;  %v267_v35 = vld [vmem:[%s8083_s27 + $0x78] sm:$0xf] }
  0x32   : > { %7296 = vmatprep.mubr.msk.bf16.mxu0 %vm2143_vm1, %v8192_v38  ;;  %v441_v49 = vsel %vm8117_vm4, %v436_v41, %v440_v19  ;;  %v450_v50 = vrot.slane %v449_v43, 4  ;;  %v476_v51 = vshll.u32 %v262_v21, 16  ;;  %v482_v52 = vrot.slane %v480_v36, 4 }
  0x33   : > { %v8202_v54 = vcombine.low %v431_v27, %v441_v49  ;;  %v454_v55 = vrot.slane %v452_v14, 5  ;;  %v464_v9 = vrot.slane %v462_v47, 5  ;;  %v473_v56 = vor.u32 %v472_v45, %v469_v42 }
  0x34   : > { %v478_v58 = vrot.slane %v476_v51, 5  ;;  %v486_v59 = vshll.u32 %v286_v44, 16  ;;  %v491_v60 = vshrl.u32 %v263_v48, 16  ;;  %v494_v61 = vshll.u32 %v263_v48, 16  ;;  %v269_v51 = vld [vmem:[%s8083_s27 + $0x84] sm:$0xf] }
  0x35   : > { %7297 = vmatmul.mubr.msk.bf16.gmra.mxu0 %vm2143_vm1, %v8202_v54  ;;  %v455_v0 = vsel %vm8117_vm4, %v450_v50, %v454_v55  ;;  %v459_v1 = vor.u32 %v458_v46, %v454_v55  ;;  %v474_v2 = vrot.slane %v473_v56, 4  ;;  %v504_v3 = vshrl.u32 %v264_v53, 16  ;;  %v268_v46 = vld [vmem:[%s8083_s27 + $0x7c] sm:$0xf]  ;;  %v270_v56 = vld [vmem:[%s8083_s27 + $0x88] sm:$0xf] }
  0x36   : > { %v483_v6 = vor.u32 %v482_v52, %v478_v58  ;;  %v488_v8 = vrot.slane %v486_v59, 5  ;;  %v493_v10 = vrot.slane %v491_v60, 4  ;;  %v496_v11 = vrot.slane %v494_v61, 5 }
  0x37   : > { %v460_v12 = vrot.slane %v459_v1, 4  ;;  %v479_v13 = vsel %vm8117_vm4, %v474_v2, %v478_v58  ;;  %v6541_v15 = vcombine.low %v263_v48, %v264_v53  ;;  %v515_v16 = vshrl.u32 %v265_v63, 16 }
  0x38   : > { %v484_v18 = vrot.slane %v483_v6, 4  ;;  %v518_v19 = vshll.u32 %v265_v63, 16  ;;  %v528_v20 = vshrl.u32 %v266_v5, 16  ;;  %v6542_v21 = vcombine.low %v265_v63, %v266_v5 }
  0x39   : > { %v465_v24 = vsel %vm8117_vm4, %v460_v12, %v464_v9  ;;  %7338 = vmatprep.mubr.msk.bf16.mxu1 %vm2143_vm1, %v6541_v15  ;;  %v517_v25 = vrot.slane %v515_v16, 4  ;;  %v497_v26 = vor.u32 %v496_v11, %v493_v10  ;;  %v500_v27 = vshll.u32 %v264_v53, 16  ;;  %v290_v16 = vld [vmem:[%s8083_s27 + $0x8c] sm:$0x1] }
  0x3a   : > { %v8217_v29 = vcombine.low %v455_v0, %v465_v24  ;;  %v489_v30 = vsel %vm8117_vm4, %v484_v18, %v488_v8  ;;  %v520_v31 = vrot.slane %v518_v19, 5  ;;  %7339 = vmatmul.mubr.msk.bf16.gmra.mxu1 %vm2143_vm1, %v6542_v21  ;;  %v506_v32 = vrot.slane %v504_v3, 4  ;;  %v289_v3 = vld [vmem:[%s8083_s27 + $0x80] sm:$0x1] }
  0x3b   : > { %v8223_v36 = vcombine.low %v479_v13, %v489_v30  ;;  %v498_v37 = vrot.slane %v497_v26, 4  ;;  %v502_v41 = vrot.slane %v500_v27, 5  ;;  %v510_v42 = vshll.u32 %v287_v23, 16  ;;  %v271_v23 = vld [vmem:[%s8083_s27 + $0x90] sm:$0xf] }
  0x3c   : > { %7300 = vmatprep.mubr.msk.bf16.mxu0 %vm2143_vm1, %v8217_v29  ;;  %v521_v43 = vor.u32 %v520_v31, %v517_v25  ;;  %v524_v44 = vshll.u32 %v266_v5, 16  ;;  %v530_v45 = vrot.slane %v528_v20, 4  ;;  %v534_v14 = vshll.u32 %v288_v28, 16  ;;  %v272_v28 = vld [vmem:[%s8083_s27 + $0x94] sm:$0xf] }
  0x3d   : > { %7301 = vmatmul.mubr.msk.bf16.gmra.mxu0 %vm2143_vm1, %v8223_v36  ;;  %v503_v47 = vsel %vm8117_vm4, %v498_v37, %v502_v41  ;;  %v507_v48 = vor.u32 %v506_v32, %v502_v41  ;;  %v512_v49 = vrot.slane %v510_v42, 5  ;;  %v539_v50 = vshrl.u32 %v267_v35, 16 }
  0x3e   : > { %v522_v52 = vrot.slane %v521_v43, 4  ;;  %v526_v53 = vrot.slane %v524_v44, 5  ;;  %v536_v55 = vrot.slane %v534_v14, 5  ;;  %v542_v9 = vshll.u32 %v267_v35, 16  ;;  %v273_v44 = vld [vmem:[%s8083_s27 + $0x9c] sm:$0xf] }
  0x3f   : > { %v508_v58 = vrot.slane %v507_v48, 4  ;;  %v541_v59 = vrot.slane %v539_v50, 4  ;;  %v552_v60 = vshrl.u32 %v268_v46, 16  ;;  %v6543_v61 = vcombine.low %v267_v35, %v268_v46  ;;  %v274_v48 = vld [vmem:[%s8083_s27 + $0xa0] sm:$0xf] }
  0x40   : > { %v527_v63 = vsel %vm8117_vm4, %v522_v52, %v526_v53  ;;  %v531_v0 = vor.u32 %v530_v45, %v526_v53  ;;  %v544_v1 = vrot.slane %v542_v9, 5  ;;  %v563_v2 = vshrl.u32 %v269_v51, 16 }
  0x41   : > { %v513_v5 = vsel %vm8117_vm4, %v508_v58, %v512_v49  ;;  %7342 = vmatprep.mubr.msk.bf16.mxu1 %vm2143_vm1, %v6543_v61  ;;  %v566_v6 = vshll.u32 %v269_v51, 16  ;;  %v576_v8 = vshrl.u32 %v270_v56, 16  ;;  %v6544_v10 = vcombine.low %v269_v51, %v270_v56 }
  0x42   : > { %v8240_v11 = vcombine.low %v503_v47, %v513_v5  ;;  %v532_v12 = vrot.slane %v531_v0, 4  ;;  %v565_v13 = vrot.slane %v563_v2, 4  ;;  %v545_v15 = vor.u32 %v544_v1, %v541_v59  ;;  %v292_v5 = vld [vmem:[%s8083_s27 + $0xa4] sm:$0x1] }
  0x43   : > { %v568_v18 = vrot.slane %v566_v6, 5  ;;  %7343 = vmatmul.mubr.msk.bf16.gmra.mxu1 %vm2143_vm1, %v6544_v10  ;;  %v548_v19 = vshll.u32 %v268_v46, 16  ;;  %v554_v20 = vrot.slane %v552_v60, 4  ;;  %v558_v21 = vshll.u32 %v289_v3, 16 }
  0x44   : > { %7304 = vmatprep.mubr.msk.bf16.mxu0 %vm2143_vm1, %v8240_v11  ;;  %v537_v24 = vsel %vm8117_vm4, %v532_v12, %v536_v55  ;;  %v546_v25 = vrot.slane %v545_v15, 4  ;;  %v572_v26 = vshll.u32 %v270_v56, 16  ;;  %v578_v27 = vrot.slane %v576_v8, 4 }
  0x45   : > { %v8250_v30 = vcombine.low %v527_v63, %v537_v24  ;;  %v550_v31 = vrot.slane %v548_v19, 5  ;;  %v560_v32 = vrot.slane %v558_v21, 5  ;;  %v569_v35 = vor.u32 %v568_v18, %v565_v13  ;;  %v291_v63 = vld [vmem:[%s8083_s27 + $0x98] sm:$0x1]  ;;  %v275_v13 = vld [vmem:[%s8083_s27 + $0xa8] sm:$0xf] }
  0x46   : > { %v574_v37 = vrot.slane %v572_v26, 5  ;;  %v582_v41 = vshll.u32 %v290_v16, 16  ;;  %v587_v42 = vshrl.u32 %v271_v23, 16  ;;  %v590_v43 = vshll.u32 %v271_v23, 16 }
  0x47   : > { %7305 = vmatmul.mubr.msk.bf16.gmra.mxu0 %vm2143_vm1, %v8250_v30  ;;  %v551_v45 = vsel %vm8117_vm4, %v546_v25, %v550_v31  ;;  %v555_v14 = vor.u32 %v554_v20, %v550_v31  ;;  %v570_v46 = vrot.slane %v569_v35, 4  ;;  %v600_v47 = vshrl.u32 %v272_v28, 16  ;;  %v276_v25 = vld [vmem:[%s8083_s27 + $0xac] sm:$0xf] }
  0x48   : > { %v579_v49 = vor.u32 %v578_v27, %v574_v37  ;;  %v584_v50 = vrot.slane %v582_v41, 5  ;;  %v589_v51 = vrot.slane %v587_v42, 4  ;;  %v592_v52 = vrot.slane %v590_v43, 5  ;;  %v278_v43 = vld [vmem:[%s8083_s27 + $0xb8] sm:$0xf] }
  0x49   : > { %v556_v53 = vrot.slane %v555_v14, 4  ;;  %v575_v55 = vsel %vm8117_vm4, %v570_v46, %v574_v37  ;;  %v6545_v9 = vcombine.low %v271_v23, %v272_v28  ;;  %v611_v56 = vshrl.u32 %v273_v44, 16 }
  0x4a   : > { %v580_v58 = vrot.slane %v579_v49, 4  ;;  %v614_v59 = vshll.u32 %v273_v44, 16  ;;  %v624_v60 = vshrl.u32 %v274_v48, 16  ;;  %v6546_v61 = vcombine.low %v273_v44, %v274_v48 }
  0x4b   : > { %v561_v0 = vsel %vm8117_vm4, %v556_v53, %v560_v32  ;;  %7346 = vmatprep.mubr.msk.bf16.mxu1 %vm2143_vm1, %v6545_v9  ;;  %v613_v1 = vrot.slane %v611_v56, 4  ;;  %v593_v2 = vor.u32 %v592_v52, %v589_v51  ;;  %v596_v3 = vshll.u32 %v272_v28, 16  ;;  %v277_v32 = vld [vmem:[%s8083_s27 + $0xb4] sm:$0xf]  ;;  %v293_v51 = vld [vmem:[%s8083_s27 + $0xb0] sm:$0x1] }
  0x4c   : > { %v8265_v6 = vcombine.low %v551_v45, %v561_v0  ;;  %v585_v8 = vsel %vm8117_vm4, %v580_v58, %v584_v50  ;;  %v616_v10 = vrot.slane %v614_v59, 5  ;;  %7347 = vmatmul.mubr.msk.bf16.gmra.mxu1 %vm2143_vm1, %v6546_v61  ;;  %v602_v12 = vrot.slane %v600_v47, 4  ;;  %v294_v61 = vld [vmem:[%s8083_s27 + $0xbc] sm:$0x1] }
  0x4d   : > { %v8271_v15 = vcombine.low %v575_v55, %v585_v8  ;;  %v594_v16 = vrot.slane %v593_v2, 4  ;;  %v598_v18 = vrot.slane %v596_v3, 5  ;;  %v606_v19 = vshll.u32 %v291_v63, 16  ;;  %v6339_v3 = vld [vmem:[%s8083_s27 + $0xc] sm:$0xf] }
  0x4e   : > { %7308 = vmatprep.mubr.msk.bf16.mxu0 %vm2143_vm1, %v8265_v6  ;;  %v617_v20 = vor.u32 %v616_v10, %v613_v1  ;;  %v620_v21 = vshll.u32 %v274_v48, 16  ;;  %v626_v23 = vrot.slane %v624_v60, 4  ;;  %v630_v24 = vshll.u32 %v292_v5, 16 }
  0x4f   : > { %7309 = vmatmul.mubr.msk.bf16.gmra.mxu0 %vm2143_vm1, %v8271_v15  ;;  %v599_v26 = vsel %vm8117_vm4, %v594_v16, %v598_v18  ;;  %v603_v27 = vor.u32 %v602_v12, %v598_v18  ;;  %v608_v28 = vrot.slane %v606_v19, 5  ;;  %v635_v31 = vshrl.u32 %v275_v13, 16 }
  0x50   : > { %v618_v35 = vrot.slane %v617_v20, 4  ;;  %v622_v37 = vrot.slane %v620_v21, 5  ;;  %v632_v41 = vrot.slane %v630_v24, 5  ;;  %v638_v42 = vshll.u32 %v275_v13, 16 }
  0x51   : > { %v604_v44 = vrot.slane %v603_v27, 4  ;;  %v637_v45 = vrot.slane %v635_v31, 4  ;;  %v648_v14 = vshrl.u32 %v276_v25, 16  ;;  %v6547_v46 = vcombine.low %v275_v13, %v276_v25  ;;  %v6340_v13 = vld [vmem:[%s8083_s27 + $0x10] sm:$0xf] }
  0x52   : > { %v623_v47 = vsel %vm8117_vm4, %v618_v35, %v622_v37  ;;  %v627_v48 = vor.u32 %v626_v23, %v622_v37  ;;  %v640_v49 = vrot.slane %v638_v42, 5  ;;  %v659_v50 = vshrl.u32 %v277_v32, 16  ;;  %v6371_v31 = vld [vmem:[%s8083_s27 + $0x14] sm:$0x1]  ;;  %v6341_v35 = vld [vmem:[%s8083_s27 + $0x18] sm:$0xf] }
  0x53   : > { %v609_v52 = vsel %vm8117_vm4, %v604_v44, %v608_v28  ;;  %7350 = vmatprep.mubr.msk.bf16.mxu1 %vm2143_vm1, %v6547_v46  ;;  %v662_v53 = vshll.u32 %v277_v32, 16  ;;  %v672_v55 = vshrl.u32 %v278_v43, 16  ;;  %v6548_v9 = vcombine.low %v277_v32, %v278_v43  ;;  %v6342_v44 = vld [vmem:[%s8083_s27 + $0x1c] sm:$0xf] }
  0x54   : > { %v8288_v56 = vcombine.low %v599_v26, %v609_v52  ;;  %v628_v58 = vrot.slane %v627_v48, 4  ;;  %v661_v59 = vrot.slane %v659_v50, 4  ;;  %v641_v60 = vor.u32 %v640_v49, %v637_v45 }
  0x55   : > { %v664_v63 = vrot.slane %v662_v53, 5  ;;  %7351 = vmatmul.mubr.msk.bf16.gmra.mxu1 %vm2143_vm1, %v6548_v9  ;;  %v644_v0 = vshll.u32 %v276_v25, 16  ;;  %v650_v1 = vrot.slane %v648_v14, 4  ;;  %v654_v2 = vshll.u32 %v293_v51, 16 }
  0x56   : > { %7312 = vmatprep.mubr.msk.bf16.mxu0 %vm2143_vm1, %v8288_v56  ;;  %v633_v5 = vsel %vm8117_vm4, %v628_v58, %v632_v41  ;;  %v642_v8 = vrot.slane %v641_v60, 4  ;;  %v668_v10 = vshll.u32 %v278_v43, 16  ;;  %v674_v12 = vrot.slane %v672_v55, 4  ;;  %v6372_v55 = vld [vmem:[%s8083_s27 + $0x20] sm:$0x1] }
  0x57   : > { %v8298_v16 = vcombine.low %v623_v47, %v633_v5  ;;  %v646_v18 = vrot.slane %v644_v0, 5  ;;  %v656_v19 = vrot.slane %v654_v2, 5  ;;  %v665_v20 = vor.u32 %v664_v63, %v661_v59 }
  0x58   : > { %v670_v21 = vrot.slane %v668_v10, 5  ;;  %v678_v23 = vshll.u32 %v294_v61, 16  ;;  %v914_v24 = vshrl.u32 %v6339_v3, 16  ;;  %v917_v25 = vshll.u32 %v6339_v3, 16 }
  0x59   : > { %7313 = vmatmul.mubr.msk.bf16.gmra.mxu0 %vm2143_vm1, %v8298_v16  ;;  %v647_v26 = vsel %vm8117_vm4, %v642_v8, %v646_v18  ;;  %v651_v27 = vor.u32 %v650_v1, %v646_v18  ;;  %v666_v28 = vrot.slane %v665_v20, 4  ;;  %v923_v32 = vshll.u32 %v6340_v13, 16  ;;  %v6343_v8 = vld [vmem:[%s8083_s27 + $0x24] sm:$0xf]  ;;  %v6344_v20 = vld [vmem:[%s8083_s27 + $0x28] sm:$0xf] }
  0x5a   : > { %v675_v37 = vor.u32 %v674_v12, %v670_v21  ;;  %v680_v41 = vrot.slane %v678_v23, 5  ;;  %v916_v42 = vrot.slane %v914_v24, 4  ;;  %v919_v43 = vrot.slane %v917_v25, 5 }
  0x5b   : > { %v652_v45 = vrot.slane %v651_v27, 4  ;;  %v671_v14 = vsel %vm8117_vm4, %v666_v28, %v670_v21  ;;  %v925_v46 = vrot.slane %v923_v32, 5  ;;  %v927_v47 = vshrl.u32 %v6340_v13, 16  ;;  %v6373_v28 = vld [vmem:[%s8083_s27 + $0x2c] sm:$0x1] }
  0x5c   : > { %v676_v48 = vrot.slane %v675_v37, 4  ;;  %v920_v49 = vor.u32 %v919_v43, %v916_v42  ;;  %v933_v50 = vshll.u32 %v6371_v31, 16  ;;  %v938_v51 = vshrl.u32 %v6341_v35, 16 }
  0x5d   : > { %v657_v52 = vsel %vm8117_vm4, %v652_v45, %v656_v19  ;;  %v929_v53 = vrot.slane %v927_v47, 4  ;;  %v941_v9 = vshll.u32 %v6341_v35, 16  ;;  %v947_v58 = vshll.u32 %v6342_v44, 16 }
  0x5e   : > { %v8312_v59 = vcombine.low %v647_v26, %v657_v52  ;;  %v681_v60 = vsel %vm8117_vm4, %v676_v48, %v680_v41  ;;  %v921_v61 = vrot.slane %v920_v49, 4  ;;  %v935_v63 = vrot.slane %v933_v50, 5  ;;  %v6374_v52 = vld [vmem:[%s8083_s27 + $0x38] sm:$0x1] }
  0x5f   : > { %v8316_v0 = vcombine.low %v671_v14, %v681_v60  ;;  %v930_v1 = vor.u32 %v929_v53, %v925_v46  ;;  %v940_v2 = vrot.slane %v938_v51, 4  ;;  %v943_v5 = vrot.slane %v941_v9, 5  ;;  %v6346_v14 = vld [vmem:[%s8083_s27 + $0x34] sm:$0xf] }
  0x60   : > { %7316 = vmatprep.mubr.msk.bf16.mxu0 %vm2143_vm1, %v8312_v59  ;;  %v926_v10 = vsel %vm8117_vm4, %v921_v61, %v925_v46  ;;  %v949_v12 = vrot.slane %v947_v58, 5  ;;  %v951_v18 = vshrl.u32 %v6342_v44, 16  ;;  %v957_v19 = vshll.u32 %v6372_v55, 16 }
  0x61   : > { %7317 = vmatmul.mubr.msk.bf16.gmra.mxu0 %vm2143_vm1, %v8316_v0  ;;  %v931_v21 = vrot.slane %v930_v1, 4  ;;  %v944_v23 = vor.u32 %v943_v5, %v940_v2  ;;  %v8326_v24 = vcombine.low %v6339_v3, %v6340_v13  ;;  %v8328_v25 = vcombine.low %v6341_v35, %v6342_v44  ;;  %v6345_v3 = vld [vmem:[%s8083_s27 + $0x30] sm:$0xf] }
  0x62   : > { %v953_v26 = vrot.slane %v951_v18, 4  ;;  %v959_v27 = vrot.slane %v957_v19, 5  ;;  %v962_v31 = vshrl.u32 %v6343_v8, 16  ;;  %v965_v32 = vshll.u32 %v6343_v8, 16 }
  0x63   : > { %11103 = vst [vmem:[#allocation3_spill] sm:$0xff] %v8326_v24  ;;  %11104 = vst [vmem:[#allocation4_spill] sm:$0xff] %v8328_v25  ;;  %v936_v37 = vsel %vm8117_vm4, %v931_v21, %v935_v63  ;;  %v945_v41 = vrot.slane %v944_v23, 4  ;;  %7356 = vmatprep.mubr.msk.bf16.mxu0 %vm2143_vm1, %v8326_v24  ;;  %v971_v42 = vshll.u32 %v6344_v20, 16  ;;  %v975_v43 = vshrl.u32 %v6344_v20, 16 }
  0x64   : > { %v8336_v13 = vcombine.low %v926_v10, %v936_v37  ;;  %v954_v35 = vor.u32 %v953_v26, %v949_v12  ;;  %v964_v44 = vrot.slane %v962_v31, 4  ;;  %v967_v45 = vrot.slane %v965_v32, 5  ;;  %v6347_v63 = vld [vmem:[%s8083_s27 + $0x3c] sm:$0xf]  ;;  %v6348_v32 = vld [vmem:[%s8083_s27 + $0x40] sm:$0xf] }
  0x65   : > { %v950_v46 = vsel %vm8117_vm4, %v945_v41, %v949_v12  ;;  %v973_v47 = vrot.slane %v971_v42, 5  ;;  %v977_v48 = vrot.slane %v975_v43, 4  ;;  %v981_v49 = vshll.u32 %v6373_v28, 16  ;;  %v8350_v12 = vld [vmem:[%s11015_s1 + $0xc] sm:$0x3] }
  0x66   : > { %7390 = vmatprep.mubr.msk.bf16.mxu1 %vm2143_vm1, %v8336_v13  ;;  %v955_v50 = vrot.slane %v954_v35, 4  ;;  %v968_v51 = vor.u32 %v967_v45, %v964_v44  ;;  %v986_v53 = vshrl.u32 %v6345_v3, 16  ;;  %v989_v55 = vshll.u32 %v6345_v3, 16  ;;  %v8365_v37 = vld [vmem:[%s11015_s1 + $0xe] sm:$0x3] }
  0x67   : > { %v978_v9 = vor.u32 %v977_v48, %v973_v47  ;;  %v983_v58 = vrot.slane %v981_v49, 5  ;;  %v995_v60 = vshll.u32 %v6346_v14, 16  ;;  %v999_v61 = vshrl.u32 %v6346_v14, 16  ;;  %v6375_v43 = vld [vmem:[%s8083_s27 + $0x44] sm:$0x1] }
  0x68   : > { %v960_v1 = vsel %vm8117_vm4, %v955_v50, %v959_v27  ;;  %v969_v2 = vrot.slane %v968_v51, 4  ;;  %v988_v5 = vrot.slane %v986_v53, 4  ;;  %v991_v10 = vrot.slane %v989_v55, 5  ;;  %v6349_v44 = vld [vmem:[%s8083_s27 + $0x48] sm:$0xf] }
  0x69   : > { %v8352_v18 = vcombine.low %v950_v46, %v960_v1  ;;  %7357 = vmatmul.mubr.msk.bf16.vlgmr.msra.gmra.mxu0 %vm2143_vm1, %v8328_v25  ;;  %v979_v19 = vrot.slane %v978_v9, 4  ;;  %v997_v21 = vrot.slane %v995_v60, 5  ;;  %v1001_v23 = vrot.slane %v999_v61, 4  ;;  %v6350_v51 = vld [vmem:[%s8083_s27 + $0x4c] sm:$0xf] }
  0x6a   : > { %7423 = vmatpush3.bf16.msra.mxu0 %v8112_v33  ;;  %v974_v26 = vsel %vm8117_vm4, %v969_v2, %v973_v47  ;;  %v992_v27 = vor.u32 %v991_v10, %v988_v5  ;;  %v1005_v28 = vshll.u32 %v6374_v52, 16  ;;  %v8359_v31 = vcombine.low %v6343_v8, %v6344_v20 }
  0x6b   : > { %7391 = vmatmul.mubr.msk.bf16.vlgmr.msra.gmra.mxu1 %vm2143_vm1, %v8352_v18  ;;  %v984_v41 = vsel %vm8117_vm4, %v979_v19, %v983_v58  ;;  %v1002_v33 = vor.u32 %v1001_v23, %v997_v21  ;;  %v8371_v42 = vcombine.low %v6345_v3, %v6346_v14  ;;  %v1010_v35 = vshrl.u32 %v6347_v63, 16  ;;  %7836 = vmatprep.subr.msk.bf16.mxu0 %vm2192_vm0, %v8350_v12  ;;  %v6376_v58 = vld [vmem:[%s8083_s27 + $0x50] sm:$0x1] }
  0x6c   : > { %11105 = vst [vmem:[#allocation5_spill] sm:$0xff] %v8359_v31  ;;  %7457 = vmatpush3.bf16.msra.mxu1 %v8123_v39  ;;  %v8378_v8 = vcombine.low %v974_v26, %v984_v41  ;;  %v993_v20 = vrot.slane %v992_v27, 4  ;;  %v1007_v45 = vrot.slane %v1005_v28, 5  ;;  %7360 = vmatprep.mubr.msk.bf16.mxu0 %vm2143_vm1, %v8359_v31  ;;  %v1013_v46 = vshll.u32 %v6347_v63, 16  ;;  %v6351_v26 = vld [vmem:[%s8083_s27 + $0x54] sm:$0xf] }
  0x6d   : > { %11106 = vst [vmem:[#allocation6_spill] sm:$0xff] %v8371_v42  ;;  %v1003_v3 = vrot.slane %v1002_v33, 4  ;;  %v1012_v14 = vrot.slane %v1010_v35, 4  ;;  %v1019_v47 = vshll.u32 %v6348_v32, 16  ;;  %v1023_v48 = vshrl.u32 %v6348_v32, 16  ;;  %7837 = vmatprep.subr.msk.bf16.mxu1 %vm2192_vm0, %v8365_v37 }
  0x6e   : > { %7394 = vmatprep.mubr.msk.bf16.mxu1 %vm2143_vm1, %v8378_v8  ;;  %v998_v39 = vsel %vm8117_vm4, %v993_v20, %v997_v21  ;;  %v1015_v49 = vrot.slane %v1013_v46, 5  ;;  %v1029_v50 = vshll.u32 %v6375_v43, 16  ;;  %v1034_v52 = vshrl.u32 %v6349_v44, 16  ;;  %v6352_v43 = vld [vmem:[%s8083_s27 + $0x58] sm:$0xf] }
  0x6f   : > { %v1008_v53 = vsel %vm8117_vm4, %v1003_v3, %v1007_v45  ;;  %v1021_v55 = vrot.slane %v1019_v47, 5  ;;  %v1025_v9 = vrot.slane %v1023_v48, 4  ;;  %v1037_v60 = vshll.u32 %v6349_v44, 16 }
  0x70   : > { %v8392_v61 = vcombine.low %v998_v39, %v1008_v53  ;;  %v1016_v1 = vor.u32 %v1015_v49, %v1012_v14  ;;  %v1031_v2 = vrot.slane %v1029_v50, 5  ;;  %v1036_v5 = vrot.slane %v1034_v52, 4  ;;  %v6353_v50 = vld [vmem:[%s8083_s27 + $0x60] sm:$0xf] }
  0x71   : > { %7361 = vmatmul.mubr.msk.bf16.gmra.mxu0 %vm2143_vm1, %v8371_v42  ;;  %v1026_v10 = vor.u32 %v1025_v9, %v1021_v55  ;;  %v1039_v19 = vrot.slane %v1037_v60, 5  ;;  %v1043_v21 = vshll.u32 %v6350_v51, 16  ;;  %v1047_v23 = vshrl.u32 %v6350_v51, 16  ;;  %v6354_v9 = vld [vmem:[%s8083_s27 + $0x64] sm:$0xf] }
  0x72   : > { %11107 = vst [vmem:[#allocation7_spill] sm:$0xff] %v8392_v61  ;;  %v1017_v27 = vrot.slane %v1016_v1, 4  ;;  %v1053_v28 = vshll.u32 %v6376_v58, 16  ;;  %v8397_v41 = vcombine.low %v6347_v63, %v6348_v32  ;;  %v8399_v33 = vcombine.low %v6349_v44, %v6350_v51  ;;  %v6377_v63 = vld [vmem:[%s8083_s27 + $0x5c] sm:$0x1] }
  0x73   : > { %7395 = vmatmul.mubr.msk.bf16.gmra.mxu1 %vm2143_vm1, %v8392_v61  ;;  %v1027_v35 = vrot.slane %v1026_v10, 4  ;;  %v1040_v20 = vor.u32 %v1039_v19, %v1036_v5  ;;  %v1045_v45 = vrot.slane %v1043_v21, 5  ;;  %v1049_v46 = vrot.slane %v1047_v23, 4  ;;  %v6378_v19 = vld [vmem:[%s8083_s27 + $0x68] sm:$0x1] }
  0x74   : > { %11108 = vst [vmem:[#allocation8_spill] sm:$0xff] %v8397_v41  ;;  %11109 = vst [vmem:[#allocation9_spill] sm:$0xff] %v8399_v33  ;;  %v1022_v3 = vsel %vm8117_vm4, %v1017_v27, %v1021_v55  ;;  %v1055_v14 = vrot.slane %v1053_v28, 5  ;;  %7364 = vmatprep.mubr.msk.bf16.mxu0 %vm2143_vm1, %v8397_v41  ;;  %v1058_v32 = vshrl.u32 %v6351_v26, 16  ;;  %v1061_v44 = vshll.u32 %v6351_v26, 16 }
  0x75   : > { %v1032_v47 = vsel %vm8117_vm4, %v1027_v35, %v1031_v2  ;;  %v1041_v48 = vrot.slane %v1040_v20, 4  ;;  %v1050_v39 = vor.u32 %v1049_v46, %v1045_v45  ;;  %v1067_v49 = vshll.u32 %v6352_v43, 16 }
  0x76   : > { %v8412_v51 = vcombine.low %v1022_v3, %v1032_v47  ;;  %v1060_v52 = vrot.slane %v1058_v32, 4  ;;  %v1063_v53 = vrot.slane %v1061_v44, 5  ;;  %v1071_v55 = vshrl.u32 %v6352_v43, 16  ;;  %v6355_v32 = vld [vmem:[%s8083_s27 + $0x6c] sm:$0xf] }
  0x77   : > { %v1046_v58 = vsel %vm8117_vm4, %v1041_v48, %v1045_v45  ;;  %v1051_v60 = vrot.slane %v1050_v39, 4  ;;  %v1069_v1 = vrot.slane %v1067_v49, 5  ;;  %v1077_v5 = vshll.u32 %v6377_v63, 16  ;;  %v8428_v49 = vld [vmem:[%s8083_s27 + $0x70] sm:$0xf] }
  0x78   : > { %11110 = vst [vmem:[#allocation10_spill] sm:$0xff] %v8412_v51  ;;  %7398 = vmatprep.mubr.msk.bf16.mxu1 %vm2143_vm1, %v8412_v51  ;;  %v1064_v2 = vor.u32 %v1063_v53, %v1060_v52  ;;  %v1073_v10 = vrot.slane %v1071_v55, 4  ;;  %v1082_v21 = vshrl.u32 %v6353_v50, 16  ;;  %v1085_v23 = vshll.u32 %v6353_v50, 16 }
  0x79   : > { %v1056_v27 = vsel %vm8117_vm4, %v1051_v60, %v1055_v14  ;;  %7365 = vmatmul.mubr.msk.bf16.gmra.mxu0 %vm2143_vm1, %v8399_v33  ;;  %v1079_v28 = vrot.slane %v1077_v5, 5  ;;  %v1091_v35 = vshll.u32 %v6354_v9, 16  ;;  %v1095_v20 = vshrl.u32 %v6354_v9, 16  ;;  %v8511_v33 = vld [vmem:[%s8083_s27 + $0x98] sm:$0x1] }
  0x7a   : > { %v8424_v45 = vcombine.low %v1046_v58, %v1056_v27  ;;  %v1065_v46 = vrot.slane %v1064_v2, 4  ;;  %v1074_v3 = vor.u32 %v1073_v10, %v1069_v1  ;;  %v1084_v63 = vrot.slane %v1082_v21, 4  ;;  %v8439_v2 = vld [vmem:[%s8083_s27 + $0x74] sm:$0x1]  ;;  %11125 = vst [vmem:[#allocation25_spill] sm:$0xff] %v8511_v33 }
  0x7b   : > { %v1087_v44 = vrot.slane %v1085_v23, 5  ;;  %v1093_v47 = vrot.slane %v1091_v35, 5  ;;  %v1097_v48 = vrot.slane %v1095_v20, 4  ;;  %v1101_v39 = vshll.u32 %v6378_v19, 16  ;;  %11114 = vst [vmem:[#allocation14_spill] sm:$0xff] %v8439_v2 }
  0x7c   : > { %11111 = vst [vmem:[#allocation11_spill] sm:$0xff] %v8424_v45  ;;  %7399 = vmatmul.mubr.msk.bf16.gmra.mxu1 %vm2143_vm1, %v8424_v45  ;;  %v1070_v14 = vsel %vm8117_vm4, %v1065_v46, %v1069_v1  ;;  %v1075_v52 = vrot.slane %v1074_v3, 4  ;;  %v8434_v53 = vcombine.low %v6351_v26, %v6352_v43  ;;  %v8436_v55 = vcombine.low %v6353_v50, %v6354_v9  ;;  %v6357_v43 = vld [vmem:[%s8083_s27 + $0x78] sm:$0xf]  ;;  %v8452_v3 = vld [vmem:[%s8083_s27 + $0x7c] sm:$0xf] }
  0x7d   : > { %v1088_v58 = vor.u32 %v1087_v44, %v1084_v63  ;;  %v1098_v60 = vor.u32 %v1097_v48, %v1093_v47  ;;  %v1103_v5 = vrot.slane %v1101_v39, 5  ;;  %v1106_v10 = vshrl.u32 %v6355_v32, 16  ;;  %11116 = vst [vmem:[#allocation16_spill] sm:$0xff] %v8452_v3  ;;  %v8463_v48 = vld [vmem:[%s8083_s27 + $0x80] sm:$0x1] }
  0x7e   : > { %11112 = vst [vmem:[#allocation12_spill] sm:$0xff] %v8434_v53  ;;  %11113 = vst [vmem:[#allocation13_spill] sm:$0xff] %v8436_v55  ;;  %v1080_v19 = vsel %vm8117_vm4, %v1075_v52, %v1079_v28  ;;  %7368 = vmatprep.mubr.msk.bf16.mxu0 %vm2143_vm1, %v8434_v53  ;;  %v1109_v21 = vshll.u32 %v6355_v32, 16  ;;  %v1115_v1 = vshll.u32 %v8428_v49, 16  ;;  %v1119_v26 = vshrl.u32 %v8428_v49, 16 }
  0x7f   : > { %v8448_v50 = vcombine.low %v1070_v14, %v1080_v19  ;;  %v1089_v9 = vrot.slane %v1088_v58, 4  ;;  %v1099_v23 = vrot.slane %v1098_v60, 4  ;;  %v1108_v27 = vrot.slane %v1106_v10, 4  ;;  %11117 = vst [vmem:[#allocation17_spill] sm:$0xff] %v8463_v48 }
  0x80   : > { %v1111_v35 = vrot.slane %v1109_v21, 5  ;;  %v1117_v20 = vrot.slane %v1115_v1, 5  ;;  %v1121_v46 = vrot.slane %v1119_v26, 4  ;;  %v1125_v28 = vshll.u32 %v8439_v2, 16  ;;  %v8470_v1 = vld [vmem:[%s8083_s27 + $0x10] sm:$0xf] }
  0x81   : > { %11115 = vst [vmem:[#allocation15_spill] sm:$0xff] %v8448_v50  ;;  %7402 = vmatprep.mubr.msk.bf16.mxu1 %vm2143_vm1, %v8448_v50  ;;  %v1094_v63 = vsel %vm8117_vm4, %v1089_v9, %v1093_v47  ;;  %v1104_v44 = vsel %vm8117_vm4, %v1099_v23, %v1103_v5  ;;  %7369 = vmatmul.mubr.msk.bf16.gmra.mxu0 %vm2143_vm1, %v8436_v55  ;;  %v1130_v39 = vshrl.u32 %v6357_v43, 16  ;;  %v1133_v14 = vshll.u32 %v6357_v43, 16 }
  0x82   : > { %v8465_v52 = vcombine.low %v1094_v63, %v1104_v44  ;;  %v1112_v58 = vor.u32 %v1111_v35, %v1108_v27  ;;  %v1122_v60 = vor.u32 %v1121_v46, %v1117_v20  ;;  %v1127_v10 = vrot.slane %v1125_v28, 5  ;;  %v6359_v35 = vld [vmem:[%s8083_s27 + $0x84] sm:$0xf] }
  0x83   : > { %v1132_v19 = vrot.slane %v1130_v39, 4  ;;  %v1135_v47 = vrot.slane %v1133_v14, 5  ;;  %v1139_v21 = vshll.u32 %v8452_v3, 16  ;;  %v1143_v5 = vshrl.u32 %v8452_v3, 16  ;;  %v8481_v39 = vld [vmem:[%s8083_s27 + $0x88] sm:$0xf] }
  0x84   : > { %11118 = vst [vmem:[#allocation18_spill] sm:$0xff] %v8465_v52  ;;  %7403 = vmatmul.mubr.msk.bf16.gmra.mxu1 %vm2143_vm1, %v8465_v52  ;;  %v1113_v9 = vrot.slane %v1112_v58, 4  ;;  %v1123_v23 = vrot.slane %v1122_v60, 4  ;;  %v1149_v27 = vshll.u32 %v8463_v48, 16  ;;  %v8478_v44 = vcombine.low %v6355_v32, %v8428_v49  ;;  %11120 = vst [vmem:[#allocation20_spill] sm:$0xff] %v8481_v39 }
  0x85   : > { %v1136_v46 = vor.u32 %v1135_v47, %v1132_v19  ;;  %v1141_v28 = vrot.slane %v1139_v21, 5  ;;  %v1145_v63 = vrot.slane %v1143_v5, 4  ;;  %v8484_v14 = vld [vmem:[%s8083_s27 + $0x8c] sm:$0x1]  ;;  %v8491_v26 = vcombine.low %v6357_v43, %v8452_v3  ;;  %v6361_v19 = vld [vmem:[%s8083_s27 + $0x90] sm:$0xf] }
  0x86   : > { %11119 = vst [vmem:[#allocation19_spill] sm:$0xff] %v8478_v44  ;;  %11121 = vst [vmem:[#allocation21_spill] sm:$0xff] %v8484_v14  ;;  %v1118_v22 = vsel %vm8117_vm4, %v1113_v9, %v1117_v20  ;;  %v1128_v58 = vsel %vm8117_vm4, %v1123_v23, %v1127_v10  ;;  %v1151_v60 = vrot.slane %v1149_v27, 5  ;;  %7372 = vmatprep.mubr.msk.bf16.mxu0 %vm2143_vm1, %v8478_v44  ;;  %v1154_v5 = vshrl.u32 %v6359_v35, 16  ;;  %v8502_v23 = vld [vmem:[%s8083_s27 + $0x94] sm:$0xf] }
  0x87   : > { %11122 = vst [vmem:[#allocation22_spill] sm:$0xff] %v8491_v26  ;;  %v8494_v47 = vcombine.low %v1118_v22, %v1128_v58  ;;  %v1137_v32 = vrot.slane %v1136_v46, 4  ;;  %v1146_v21 = vor.u32 %v1145_v63, %v1141_v28  ;;  %v1157_v55 = vshll.u32 %v6359_v35, 16  ;;  %11124 = vst [vmem:[#allocation24_spill] sm:$0xff] %v8502_v23  ;;  %v6367_v48 = vld [vmem:[%s8083_s27 + $0xb4] sm:$0xf] }
  0x88   : > { %v1163_v20 = vshll.u32 %v8481_v39, 16  ;;  %v1167_v9 = vshrl.u32 %v8481_v39, 16  ;;  %v1173_v10 = vshll.u32 %v8484_v14, 16  ;;  %v1156_v27 = vrot.slane %v1154_v5, 4  ;;  %v6363_v5 = vld [vmem:[%s8083_s27 + $0x9c] sm:$0xf] }
  0x89   : > { %11123 = vst [vmem:[#allocation23_spill] sm:$0xff] %v8494_v47  ;;  %7406 = vmatprep.mubr.msk.bf16.mxu1 %vm2143_vm1, %v8494_v47  ;;  %v1142_v22 = vsel %vm8117_vm4, %v1137_v32, %v1141_v28  ;;  %v1147_v43 = vrot.slane %v1146_v21, 4  ;;  %7373 = vmatmul.mubr.msk.bf16.gmra.mxu0 %vm2143_vm1, %v8491_v26  ;;  %v1178_v46 = vshrl.u32 %v6361_v19, 16  ;;  %v1159_v63 = vrot.slane %v1157_v55, 5  ;;  %v8572_v47 = vld [vmem:[%s8083_s27 + $0x8] sm:$0x1] }
  0x8a   : > { %v1165_v58 = vrot.slane %v1163_v20, 5  ;;  %v1169_v44 = vrot.slane %v1167_v9, 4  ;;  %v1175_v53 = vrot.slane %v1173_v10, 5  ;;  %v1181_v31 = vshll.u32 %v6361_v19, 16  ;;  %v7919_v3 = vld [vmem:[%s8083_s27 + $0x14] sm:$0x1] }
  0x8b   : > { %v1152_v41 = vsel %vm8117_vm4, %v1147_v43, %v1151_v60  ;;  %v1180_v42 = vrot.slane %v1178_v46, 4  ;;  %v1187_v28 = vshll.u32 %v8502_v23, 16  ;;  %v1160_v21 = vor.u32 %v1159_v63, %v1156_v27  ;;  %v8531_v27 = vld [vmem:[%s8083_s27 + $0xa0] sm:$0xf] }
  0x8c   : > { %v8516_v32 = vcombine.low %v1142_v22, %v1152_v41  ;;  %v1170_v26 = vor.u32 %v1169_v44, %v1165_v58  ;;  %v1191_v55 = vshrl.u32 %v8502_v23, 16  ;;  %v11127_v20 = vrot.slane %v8470_v1, 5  ;;  %11129 = vst [vmem:[#allocation28_spill] sm:$0xff] %v8531_v27 }
  0x8d   : > { %v1183_v10 = vrot.slane %v1181_v31, 5  ;;  %v1189_v25 = vrot.slane %v1187_v28, 5  ;;  %v1197_v60 = vshll.u32 %v8511_v33, 16  ;;  %v1161_v41 = vrot.slane %v1160_v21, 4  ;;  %v8537_v31 = vld [vmem:[%s8083_s27 + $0xa4] sm:$0x1] }
  0x8e   : > { %11126 = vst [vmem:[#allocation26_spill] sm:$0xff] %v8516_v32  ;;  %v8522_v9 = vrot.slane %v11127_v20, 4  ;;  %7407 = vmatmul.mubr.msk.bf16.gmra.mxu1 %vm2143_vm1, %v8516_v32  ;;  %v1171_v22 = vrot.slane %v1170_v26, 4  ;;  %v1193_v43 = vrot.slane %v1191_v55, 4  ;;  %v8528_v44 = vcombine.low %v6359_v35, %v8481_v39  ;;  %11131 = vst [vmem:[#allocation30_spill] sm:$0xff] %v8537_v31 }
  0x8f   : > { %v1184_v46 = vor.u32 %v1183_v10, %v1180_v42  ;;  %v1199_v63 = vrot.slane %v1197_v60, 5  ;;  %v8534_v20 = vcombine.low %v6361_v19, %v8502_v23  ;;  %v1202_v28 = vshrl.u32 %v6363_v5, 16  ;;  %v6365_v35 = vld [vmem:[%s8083_s27 + $0xa8] sm:$0xf] }
  0x90   : > { %11128 = vst [vmem:[#allocation27_spill] sm:$0xff] %v8528_v44  ;;  %v1166_v24 = vsel %vm8117_vm4, %v1161_v41, %v1165_v58  ;;  %v1176_v26 = vsel %vm8117_vm4, %v1171_v22, %v1175_v53  ;;  %v1194_v21 = vor.u32 %v1193_v43, %v1189_v25  ;;  %7376 = vmatprep.mubr.msk.bf16.mxu0 %vm2143_vm1, %v8528_v44  ;;  %v1205_v42 = vshll.u32 %v6363_v5, 16  ;;  %v8554_v43 = vld [vmem:[%s8083_s27 + $0xac] sm:$0xf] }
  0x91   : > { %11130 = vst [vmem:[#allocation29_spill] sm:$0xff] %v8534_v20  ;;  %v8546_v55 = vcombine.low %v1166_v24, %v1176_v26  ;;  %v1185_v19 = vrot.slane %v1184_v46, 4  ;;  %7377 = vmatmul.mubr.msk.bf16.gmra.mxu0 %vm2143_vm1, %v8534_v20  ;;  %v1204_v10 = vrot.slane %v1202_v28, 4  ;;  %v1211_v60 = vshll.u32 %v8531_v27, 16  ;;  %v8561_v26 = vld [vmem:[%s8083_s27 + $0xb0] sm:$0x1] }
  0x92   : > { %v1195_v58 = vrot.slane %v1194_v21, 4  ;;  %v1207_v41 = vrot.slane %v1205_v42, 5  ;;  %v1215_v53 = vshrl.u32 %v8531_v27, 16  ;;  %v1221_v22 = vshll.u32 %v8537_v31, 16 }
  0x93   : > { %11132 = vst [vmem:[#allocation31_spill] sm:$0xff] %v8546_v55  ;;  %7410 = vmatprep.mubr.msk.bf16.mxu1 %vm2143_vm1, %v8546_v55  ;;  %v1190_v24 = vsel %vm8117_vm4, %v1185_v19, %v1189_v25  ;;  %v1213_v46 = vrot.slane %v1211_v60, 5  ;;  %v1226_v28 = vshrl.u32 %v6365_v35, 16  ;;  %v1229_v21 = vshll.u32 %v6365_v35, 16 }
  0x94   : > { %v1200_v42 = vsel %vm8117_vm4, %v1195_v58, %v1199_v63  ;;  %v1208_v20 = vor.u32 %v1207_v41, %v1204_v10  ;;  %v1217_v44 = vrot.slane %v1215_v53, 4  ;;  %v1223_v31 = vrot.slane %v1221_v22, 5 }
  0x95   : > { %v8565_v33 = vcombine.low %v1190_v24, %v1200_v42  ;;  %v1228_v55 = vrot.slane %v1226_v28, 4  ;;  %v1231_v32 = vrot.slane %v1229_v21, 5  ;;  %v1235_v25 = vshll.u32 %v8554_v43, 16 }
  0x96   : > { %v1209_v19 = vrot.slane %v1208_v20, 4  ;;  %v1218_v60 = vor.u32 %v1217_v44, %v1213_v46  ;;  %v1239_v23 = vshrl.u32 %v8554_v43, 16  ;;  %v1245_v14 = vshll.u32 %v8561_v26, 16  ;;  %v8581_v44 = vld [vmem:[%s8083_s27 + $0xb8] sm:$0xf] }
  0x97   : > { %11133 = vst [vmem:[#allocation32_spill] sm:$0xff] %v8565_v33  ;;  %7411 = vmatmul.mubr.msk.bf16.gmra.mxu1 %vm2143_vm1, %v8565_v33  ;;  %v1232_v10 = vor.u32 %v1231_v32, %v1228_v55  ;;  %v1237_v58 = vrot.slane %v1235_v25, 5  ;;  %v8578_v41 = vcombine.low %v6363_v5, %v8531_v27  ;;  %v8588_v32 = vcombine.low %v6365_v35, %v8554_v43  ;;  %v8591_v55 = vld [vmem:[%s8083_s27 + $0xbc] sm:$0x1]  ;;  %v8611_v27 = vld [vmem:[%s8083_s27 + $0xc8] sm:$0x1] }
  0x98   : > { %v1214_v20 = vsel %vm8117_vm4, %v1209_v19, %v1213_v46  ;;  %v1219_v53 = vrot.slane %v1218_v60, 4  ;;  %v1241_v22 = vrot.slane %v1239_v23, 4  ;;  %v1247_v24 = vrot.slane %v1245_v14, 5  ;;  %v6369_v23 = vld [vmem:[%s8083_s27 + $0xc0] sm:$0xf] }
  0x99   : > { %11134 = vst [vmem:[#allocation33_spill] sm:$0xff] %v8578_v41  ;;  %v1233_v28 = vrot.slane %v1232_v10, 4  ;;  %7380 = vmatprep.mubr.msk.bf16.mxu0 %vm2143_vm1, %v8578_v41  ;;  %11135 = vst [vmem:[#allocation34_spill] sm:$0xff] %v8588_v32  ;;  %v1250_v5 = vshrl.u32 %v6367_v48, 16  ;;  %v1253_v21 = vshll.u32 %v6367_v48, 16  ;;  %v1259_v46 = vshll.u32 %v8581_v44, 16 }
  0x9a   : > { %v1224_v42 = vsel %vm8117_vm4, %v1219_v53, %v1223_v31  ;;  %v1242_v25 = vor.u32 %v1241_v22, %v1237_v58  ;;  %v1263_v14 = vshrl.u32 %v8581_v44, 16  ;;  %v8599_v19 = vld [vmem:[%s8083_s27 + $0xc4] sm:$0xf]  ;;  %7381 = vmatmul.mubr.msk.bf16.gmra.mxu0 %vm2143_vm1, %v8588_v32  ;;  %v1269_v41 = vshll.u32 %v8591_v55, 16 }
  0x9b   : > { %v8601_v60 = vcombine.low %v1214_v20, %v1224_v42  ;;  %v1238_v35 = vsel %vm8117_vm4, %v1233_v28, %v1237_v58  ;;  %v1252_v10 = vrot.slane %v1250_v5, 4  ;;  %v1255_v63 = vrot.slane %v1253_v21, 5 }
  0x9c   : > { %v1243_v31 = vrot.slane %v1242_v25, 4  ;;  %v1261_v53 = vrot.slane %v1259_v46, 5  ;;  %v1265_v22 = vrot.slane %v1263_v14, 4  ;;  %v1274_v20 = vshrl.u32 %v6369_v23, 16 }
  0x9d   : > { %11136 = vst [vmem:[#allocation35_spill] sm:$0xff] %v8601_v60  ;;  %7414 = vmatprep.mubr.msk.bf16.mxu1 %vm2143_vm1, %v8601_v60  ;;  %v1256_v33 = vor.u32 %v1255_v63, %v1252_v10  ;;  %v1277_v42 = vshll.u32 %v6369_v23, 16  ;;  %v1283_v58 = vshll.u32 %v8599_v19, 16  ;;  %v1271_v21 = vrot.slane %v1269_v41, 5 }
  0x9e   : > { %v1248_v28 = vsel %vm8117_vm4, %v1243_v31, %v1247_v24  ;;  %v1266_v5 = vor.u32 %v1265_v22, %v1261_v53  ;;  %v1287_v25 = vshrl.u32 %v8599_v19, 16  ;;  %v1276_v63 = vrot.slane %v1274_v20, 4  ;;  %v683_v31 = vld [vmem:[%s8083_s27 + $0xc] sm:$0xe] }
  0x9f   : > { %v8617_v46 = vcombine.low %v1238_v35, %v1248_v28  ;;  %v1257_v14 = vrot.slane %v1256_v33, 4  ;;  %v1279_v10 = vrot.slane %v1277_v42, 5  ;;  %v1285_v60 = vrot.slane %v1283_v58, 5  ;;  %v682_v33 = vld [vmem:[%s8083_s27] sm:$0xe] }
  0xa0   : > { %v1267_v32 = vrot.slane %v1266_v5, 4  ;;  %v1289_v52 = vrot.slane %v1287_v25, 4  ;;  %v1293_v39 = vshll.u32 %v8611_v27, 16  ;;  %v761_v2 = vrot.slane %v7919_v3, 5 }
  0xa1   : > { %11137 = vst [vmem:[#allocation36_spill] sm:$0xff] %v8617_v46  ;;  %7415 = vmatmul.mubr.msk.bf16.gmra.mxu1 %vm2143_vm1, %v8617_v46  ;;  %v1262_v41 = vsel %vm8117_vm4, %v1257_v14, %v1261_v53  ;;  %v1280_v24 = vor.u32 %v1279_v10, %v1276_v63  ;;  %v8626_v35 = vcombine.low %v6367_v48, %v8581_v44  ;;  %v684_v48 = vld [vmem:[%s8083_s27 + $0x18] sm:$0xe]  ;;  %v11144_v5 = vrot.slane %v8572_v47, 5  ;;  %v685_v14 = vld [vmem:[%s8083_s27 + $0x24] sm:$0xe] }
  0xa2   : > { %v1272_v22 = vsel %vm8117_vm4, %v1267_v32, %v1271_v21  ;;  %v1290_v20 = vor.u32 %v1289_v52, %v1285_v60  ;;  %v1295_v42 = vrot.slane %v1293_v39, 5  ;;  %v8633_v3 = vcombine.low %v6369_v23, %v8599_v19 }
  0xa3   : > { %11138 = vst [vmem:[#allocation37_spill] sm:$0xff] %v8626_v35  ;;  %v8635_v58 = vcombine.low %v1262_v41, %v1272_v22  ;;  %v1281_v28 = vrot.slane %v1280_v24, 4  ;;  %7384 = vmatprep.mubr.msk.bf16.mxu0 %vm2143_vm1, %v8626_v35  ;;  %v11141_v52 = vmov 0  ;;  %v6323_v39 = vrot.slane %v682_v33, 9  ;;  %v686_v22 = vld [vmem:[%s8083_s27 + $0x30] sm:$0xe] }
  0xa4   : > { %11139 = vst [vmem:[#allocation38_spill] sm:$0xff] %v8633_v3  ;;  %v1291_v53 = vrot.slane %v1290_v20, 4  ;;  %7385 = vmatmul.mubr.msk.bf16.gmra.mxu0 %vm2143_vm1, %v8633_v3  ;;  %v11142_v52 = vsel %vm8642_vm7, 4294967295, %v11141_v52  ;;  %v6324_v32 = vrot.slane %v683_v31, 9  ;;  %v755_v21 = vsel %vm8642_vm7, %v8127_v40, %v11144_v5  ;;  %v7921_v20 = vld [vmem:[%s8083_s27 + $0x20] sm:$0x1] }
  0xa5   : > { %11140 = vst [vmem:[#allocation39_spill] sm:$0xff] %v8635_v58  ;;  %11143 = vst [vmem:[#allocation40_spill] sm:$0xff] %v11142_v52  ;;  %7418 = vmatprep.mubr.msk.bf16.mxu1 %vm2143_vm1, %v8635_v58  ;;  %v1286_v23 = vsel %vm8117_vm4, %v1281_v28, %v1285_v60  ;;  %v762_v25 = vsel %vm8642_vm7, %v8522_v9, %v761_v2  ;;  %v11145_v10 = vrot.slane %v8087_v7, 5  ;;  %v11146_v47 = vrot.slane %v8470_v1, 5  ;;  %v7920_v9 = vld [vmem:[%s8083_s27 + $0x1c] sm:$0xf] }
  0xa6   : > { %v1296_v63 = vsel %vm8117_vm4, %v1291_v53, %v1295_v42  ;;  %v6325_v40 = vrot.slane %v684_v48, 9  ;;  %v765_v31 = vrot.slane %v7920_v9, 5  ;;  %v768_v7 = vrot.slane %v7921_v20, 5  ;;  %v7922_v28 = vld [vmem:[%s8083_s27 + $0x28] sm:$0xf] }
  0xa7   : > { %v752_v60 = vsel %vm8642_vm7, %v6323_v39, %v11145_v10  ;;  %v759_v41 = vsel %vm8642_vm7, %v6324_v32, %v11146_v47  ;;  %v8669_v24 = vcombine.low %v1286_v23, %v1296_v63  ;;  %v6326_v42 = vrot.slane %v685_v14, 9  ;;  %v7923_v39 = vld [vmem:[%s8083_s27 + $0x2c] sm:$0x1]  ;;  %v7924_v23 = vld [vmem:[%s8083_s27 + $0x34] sm:$0xf] }
  0xa8   : > { %v6633_v33 = vcombine.low %v752_v60, %v755_v21  ;;  %v6634_v2 = vcombine.low %v759_v41, %v762_v25  ;;  %v772_v53 = vrot.slane %v7922_v28, 5  ;;  %v766_v1 = vsel %vm8642_vm7, %v6325_v40, %v765_v31  ;;  %v7925_v63 = vld [vmem:[%s8083_s27 + $0x38] sm:$0x1]  ;;  %v8692_v41 = vld [vmem:[%s11015_s1 + $0x12] sm:$0x3] }
  0xa9   : > { %11147 = vst [vmem:[#allocation41_spill] sm:$0xff] %v8669_v24  ;;  %7419 = vmatmul.mubr.msk.bf16.gmra.mxu1 %vm2143_vm1, %v8669_v24  ;;  %v767_v48 = vrot.slane %v765_v31, 4  ;;  %v775_v32 = vrot.slane %v7923_v39, 5  ;;  %v779_v5 = vrot.slane %v7924_v23, 5  ;;  %v3732_v21 = vsel %vm2192_vm0, %v8350_v12, 0 }
  0xaa   : > { %7424 = vmatprep.mubr.msk.bf16.mxu0 %vm2143_vm1, %v6633_v33  ;;  %7458 = vmatprep.mubr.msk.bf16.mxu1 %vm2143_vm1, %v8140_v4  ;;  %v774_v25 = vrot.slane %v772_v53, 4  ;;  %v6327_v14 = vrot.slane %v686_v22, 9  ;;  %v782_v10 = vrot.slane %v7925_v63, 5  ;;  %v773_v12 = vsel %vm8642_vm7, %v6326_v42, %v772_v53  ;;  %v7926_v33 = vld [vmem:[%s8083_s27 + $0x40] sm:$0xf] }
  0xab   : > { %v769_v60 = vsel %vm8642_vm7, %v767_v48, %v768_v7  ;;  %v781_v47 = vrot.slane %v779_v5, 4  ;;  %v786_v9 = vrot.slane %v7926_v33, 5  ;;  %v7927_v20 = vld [vmem:[%s8083_s27 + $0x4c] sm:$0xf]  ;;  %v4026_v42 = vsel %vm2192_vm0, %v8365_v37, 0 }
  0xac   : > { %7425 = vmatmul.mubr.msk.bf16.vlgmr.msra.gmra.mxu0 %vm2143_vm1, %v6634_v2  ;;  %v6635_v4 = vcombine.low %v766_v1, %v769_v60  ;;  %v776_v40 = vsel %vm8642_vm7, %v774_v25, %v775_v32  ;;  %v780_v31 = vsel %vm8642_vm7, %v6327_v14, %v779_v5  ;;  %v687_v2 = vld [vmem:[%s8083_s27 + $0x3c] sm:$0xe]  ;;  %v793_v7 = vrot.slane %v7927_v20, 5  ;;  %v688_v28 = vld [vmem:[%s8083_s27 + $0x48] sm:$0xe] }
  0xad   : > { %7491 = vmatpush3.bf16.msra.mxu0 %v3732_v21  ;;  %v783_v22 = vsel %vm8642_vm7, %v781_v47, %v782_v10  ;;  %v6636_v53 = vcombine.low %v773_v12, %v776_v40  ;;  %v8715_v1 = vld [vmem:[%s11015_s1 + $0x10] sm:$0x3]  ;;  %v6328_v39 = vrot.slane %v687_v2, 9  ;;  %v788_v32 = vrot.slane %v786_v9, 4  ;;  %v7928_v23 = vld [vmem:[%s8083_s27 + $0x44] sm:$0x1] }
  0xae   : > { %7428 = vmatprep.mubr.msk.bf16.mxu0 %vm2143_vm1, %v6635_v4  ;;  %7838 = vmatprep.subr.msk.bf16.mxu0 %vm2192_vm0, %v8692_v41  ;;  %v6637_v48 = vcombine.low %v780_v31, %v783_v22  ;;  %v789_v5 = vrot.slane %v7928_v23, 5  ;;  %v6329_v37 = vrot.slane %v688_v28, 9  ;;  %v795_v21 = vrot.slane %v793_v7, 4  ;;  %v7929_v25 = vld [vmem:[%s8083_s27 + $0x50] sm:$0x1] }
  0xaf   : > { %v796_v14 = vrot.slane %v7929_v25, 5  ;;  %v689_v4 = vld [vmem:[%s8083_s27 + $0x54] sm:$0xe]  ;;  %v7931_v12 = vld [vmem:[%s8083_s27 + $0x64] sm:$0xf] }
  0xb0   : > { %v790_v63 = vsel %vm8642_vm7, %v788_v32, %v789_v5  ;;  %v794_v60 = vsel %vm8642_vm7, %v6329_v37, %v793_v7  ;;  %v807_v40 = vrot.slane %v7931_v12, 5  ;;  %v690_v33 = vld [vmem:[%s8083_s27 + $0x60] sm:$0xe]  ;;  %v6330_v22 = vrot.slane %v689_v4, 9  ;;  %v7932_v20 = vld [vmem:[%s8083_s27 + $0x5c] sm:$0x1] }
  0xb1   : > { %7459 = vmatmul.mubr.msk.bf16.vlgmr.msra.gmra.mxu1 %vm2143_vm1, %v8149_v17  ;;  %v787_v17 = vsel %vm8642_vm7, %v6328_v39, %v786_v9  ;;  %v797_v47 = vsel %vm8642_vm7, %v795_v21, %v796_v14  ;;  %v803_v7 = vrot.slane %v7932_v20, 5  ;;  %v7934_v32 = vld [vmem:[%s8083_s27 + $0x70] sm:$0xf]  ;;  %v691_v37 = vld [vmem:[%s8083_s27 + $0x6c] sm:$0xe] }
  0xb2   : > { %7525 = vmatpush3.bf16.msra.mxu1 %v4026_v42  ;;  %7462 = vmatprep.mubr.msk.bf16.mxu1 %vm2143_vm1, %v8169_v57  ;;  %v7930_v57 = vld [vmem:[%s8083_s27 + $0x58] sm:$0xf]  ;;  %v6638_v31 = vcombine.low %v787_v17, %v790_v63  ;;  %v6639_v9 = vcombine.low %v794_v60, %v797_v47  ;;  %v6331_v42 = vrot.slane %v690_v33, 9  ;;  %v809_v28 = vrot.slane %v807_v40, 4  ;;  %v7935_v21 = vld [vmem:[%s8083_s27 + $0x7c] sm:$0xf] }
  0xb3   : > { %7839 = vmatprep.subr.msk.bf16.mxu1 %vm2192_vm0, %v8715_v1  ;;  %v800_v10 = vrot.slane %v7930_v57, 5  ;;  %v814_v23 = vrot.slane %v7934_v32, 5  ;;  %v821_v25 = vrot.slane %v7935_v21, 5  ;;  %v692_v14 = vld [vmem:[%s8083_s27 + $0x78] sm:$0xe]  ;;  %v6332_v57 = vrot.slane %v691_v37, 9 }
  0xb4   : > { %7429 = vmatmul.mubr.msk.bf16.gmra.mxu0 %vm2143_vm1, %v6636_v53  ;;  %v7933_v53 = vld [vmem:[%s8083_s27 + $0x68] sm:$0x1]  ;;  %v7936_v60 = vld [vmem:[%s8083_s27 + $0x74] sm:$0x1]  ;;  %v6333_v4 = vrot.slane %v692_v14, 9 }
  0xb5   : > { %7432 = vmatprep.mubr.msk.bf16.mxu0 %vm2143_vm1, %v6637_v48  ;;  %v802_v2 = vrot.slane %v800_v10, 4  ;;  %v810_v48 = vrot.slane %v7933_v53, 5  ;;  %v817_v47 = vrot.slane %v7936_v60, 5  ;;  %v823_v12 = vrot.slane %v821_v25, 4  ;;  %v693_v20 = vld [vmem:[%s8083_s27 + $0x84] sm:$0xe] }
  0xb6   : > { %v7940_v32 = vld [vmem:[%s8083_s27 + $0x8c] sm:$0x1]  ;;  %v7941_v37 = vld [vmem:[%s8083_s27 + $0x98] sm:$0x1] }
  0xb7   : > { %v804_v39 = vsel %vm8642_vm7, %v802_v2, %v803_v7  ;;  %v811_v5 = vsel %vm8642_vm7, %v809_v28, %v810_v48  ;;  %v7939_v7 = vld [vmem:[%s8083_s27 + $0x94] sm:$0xf]  ;;  %v694_v28 = vld [vmem:[%s8083_s27 + $0x90] sm:$0xe]  ;;  %v838_v21 = vrot.slane %v7941_v37, 5 }
  0xb9   : > { %7463 = vmatmul.mubr.msk.bf16.gmra.mxu1 %vm2143_vm1, %v8175_v62  ;;  %v801_v62 = vsel %vm8642_vm7, %v6330_v22, %v800_v10  ;;  %v816_v10 = vrot.slane %v814_v23, 4 }
  0xba   : > { %7466 = vmatprep.mubr.msk.bf16.mxu1 %vm2143_vm1, %v8192_v38  ;;  %v808_v38 = vsel %vm8642_vm7, %v6331_v42, %v807_v40  ;;  %v6640_v17 = vcombine.low %v801_v62, %v804_v39  ;;  %v7937_v40 = vld [vmem:[%s8083_s27 + $0x80] sm:$0x1]  ;;  %v835_v42 = vrot.slane %v7939_v7, 5  ;;  %v6334_v62 = vrot.slane %v693_v20, 9  ;;  %v697_v7 = vld [vmem:[%s8083_s27 + $0xb4] sm:$0xe] }
  0xbb   : > { %v6641_v63 = vcombine.low %v808_v38, %v811_v5  ;;  %v824_v33 = vrot.slane %v7937_v40, 5  ;;  %v6335_v38 = vrot.slane %v694_v28, 9 }
  0xbc   : > { %7433 = vmatmul.mubr.msk.bf16.gmra.mxu0 %vm2143_vm1, %v6638_v31  ;;  %v818_v31 = vsel %vm8642_vm7, %v816_v10, %v817_v47  ;;  %v837_v5 = vrot.slane %v835_v42, 4  ;;  %v7943_v10 = vld [vmem:[%s8083_s27 + $0xac] sm:$0xf]  ;;  %v696_v47 = vld [vmem:[%s8083_s27 + $0xa8] sm:$0xe] }
  0xbd   : > { %7436 = vmatprep.mubr.msk.bf16.mxu0 %vm2143_vm1, %v6639_v9  ;;  %v7938_v9 = vld [vmem:[%s8083_s27 + $0x88] sm:$0xf]  ;;  %v825_v2 = vsel %vm8642_vm7, %v823_v12, %v824_v33  ;;  %v849_v60 = vrot.slane %v7943_v10, 5  ;;  %v7944_v33 = vld [vmem:[%s8083_s27 + $0xa4] sm:$0x1]  ;;  %v1464_v10 = vrot.slane %v8591_v55, 5 }
  0xbe   : > { %v828_v22 = vrot.slane %v7938_v9, 5  ;;  %v6400_v9 = vld [vmem:[%s8083_s27 + $0xa8] sm:$0xe] }
  0xc0   : > { %v830_v39 = vrot.slane %v828_v22, 4  ;;  %v829_v14 = vsel %vm8642_vm7, %v6334_v62, %v828_v22  ;;  %v6337_v22 = vrot.slane %v696_v47, 9  ;;  %v6416_v62 = vrot.slane %v6400_v9, 9 }
  0xc1   : > { %7467 = vmatmul.mubr.msk.bf16.gmra.mxu1 %vm2143_vm1, %v8202_v54  ;;  %v815_v54 = vsel %vm8642_vm7, %v6332_v57, %v814_v23  ;;  %v831_v23 = vrot.slane %v7940_v32, 5  ;;  %v839_v57 = vsel %vm8642_vm7, %v837_v5, %v838_v21  ;;  %v6338_v32 = vrot.slane %v697_v7, 9 }
  0xc2   : > { %7470 = vmatprep.mubr.msk.bf16.mxu1 %vm2143_vm1, %v8217_v29  ;;  %v822_v29 = vsel %vm8642_vm7, %v6333_v4, %v821_v25  ;;  %v6642_v53 = vcombine.low %v815_v54, %v818_v31  ;;  %v7942_v25 = vld [vmem:[%s8083_s27 + $0xa0] sm:$0xf]  ;;  %v845_v54 = vrot.slane %v7944_v33, 5  ;;  %v1461_v21 = vrot.slane %v8581_v44, 5  ;;  %v7948_v33 = vld [vmem:[%s8083_s27 + $0x10] sm:$0xf] }
  0xc3   : > { %v6643_v48 = vcombine.low %v822_v29, %v825_v2  ;;  %v851_v29 = vrot.slane %v849_v60, 4  ;;  %v7945_v2 = vld [vmem:[%s8083_s27 + $0xb0] sm:$0x1] }
  0xc4   : > { %7437 = vmatmul.mubr.msk.bf16.gmra.mxu0 %vm2143_vm1, %v6640_v17  ;;  %v832_v17 = vsel %vm8642_vm7, %v830_v39, %v831_v23  ;;  %v852_v20 = vrot.slane %v7945_v2, 5  ;;  %v1471_v39 = vrot.slane %v8611_v27, 5  ;;  %v1454_v23 = vrot.slane %v8554_v43, 5 }
  0xc5   : > { %7440 = vmatprep.mubr.msk.bf16.mxu0 %vm2143_vm1, %v6641_v63  ;;  %v836_v63 = vsel %vm8642_vm7, %v6335_v38, %v835_v42  ;;  %v6644_v4 = vcombine.low %v829_v14, %v832_v17  ;;  %v6401_v42 = vld [vmem:[%s8083_s27 + $0xb4] sm:$0xe]  ;;  %v850_v38 = vsel %vm8642_vm7, %v6337_v22, %v849_v60  ;;  %v7947_v14 = vld [vmem:[%s8083_s27 + $0xbc] sm:$0x1] }
  0xc6   : > { %v6645_v31 = vcombine.low %v836_v63, %v839_v57  ;;  %v853_v5 = vsel %vm8642_vm7, %v851_v29, %v852_v20  ;;  %v6417_v37 = vrot.slane %v6401_v42, 9  ;;  %v1455_v27 = vsel %vm8642_vm7, %v6416_v62, %v1454_v23 }
  0xc7   : > { %v1456_v43 = vrot.slane %v1454_v23, 4  ;;  %v1463_v57 = vrot.slane %v1461_v21, 4  ;;  %v6647_v44 = vcombine.low %v850_v38, %v853_v5 }
  0xc8   : > { %v1462_v63 = vsel %vm8642_vm7, %v6417_v37, %v1461_v21  ;;  %v6388_v37 = vld [vmem:[%s8083_s27 + $0x18] sm:$0xe]  ;;  %v7951_v21 = vld [vmem:[%s8083_s27 + $0x28] sm:$0xf] }
  0xc9   : > { %7471 = vmatmul.mubr.msk.bf16.gmra.mxu1 %vm2143_vm1, %v8223_v36  ;;  %v842_v36 = vrot.slane %v7942_v25, 5  ;;  %v6402_v25 = vld [vmem:[%s8083_s27 + $0xc0] sm:$0xe]  ;;  %v1465_v55 = vsel %vm8642_vm7, %v1463_v57, %v1464_v10 }
  0xca   : > { %7474 = vmatprep.mubr.msk.bf16.mxu1 %vm2143_vm1, %v8240_v11  ;;  %v695_v11 = vld [vmem:[%s8083_s27 + $0x9c] sm:$0xe] }
  0xcb   : > { %v6336_v12 = vrot.slane %v695_v11, 9  ;;  %v844_v40 = vrot.slane %v842_v36, 4 }
  0xcc   : > { %7441 = vmatmul.mubr.msk.bf16.gmra.mxu0 %vm2143_vm1, %v6642_v53  ;;  %v7946_v53 = vld [vmem:[%s8083_s27 + $0xb8] sm:$0xf] }
  0xcd   : > { %7444 = vmatprep.mubr.msk.bf16.mxu0 %vm2143_vm1, %v6643_v48  ;;  %v843_v28 = vsel %vm8642_vm7, %v6336_v12, %v842_v36  ;;  %v856_v48 = vrot.slane %v7946_v53, 5  ;;  %v1468_v12 = vrot.slane %v8599_v19, 5 }
  0xcf   : > { %v858_v11 = vrot.slane %v856_v48, 4  ;;  %v1470_v22 = vrot.slane %v1468_v12, 4  ;;  %v857_v19 = vsel %vm8642_vm7, %v6338_v32, %v856_v48  ;;  %v7950_v48 = vld [vmem:[%s8083_s27 + $0x1c] sm:$0xf] }
  0xd1   : > { %7475 = vmatmul.mubr.msk.bf16.gmra.mxu1 %vm2143_vm1, %v8250_v30  ;;  %v846_v30 = vsel %vm8642_vm7, %v844_v40, %v845_v54  ;;  %v1472_v20 = vsel %vm8642_vm7, %v1470_v22, %v1471_v39  ;;  %v1370_v39 = vrot.slane %v7950_v48, 5  ;;  %v7954_v22 = vld [vmem:[%s8083_s27 + $0x34] sm:$0xf] }
  0xd2   : > { %7478 = vmatprep.mubr.msk.bf16.mxu1 %vm2143_vm1, %v8265_v6  ;;  %v1457_v6 = vrot.slane %v8561_v26, 5  ;;  %v6646_v36 = vcombine.low %v843_v28, %v846_v30  ;;  %v859_v26 = vrot.slane %v7947_v14, 5  ;;  %v7949_v30 = vld [vmem:[%s8083_s27 + $0x14] sm:$0x1] }
  0xd3   : > { %v1366_v53 = vrot.slane %v7949_v30, 5 }
  0xd4   : > { %7445 = vmatmul.mubr.msk.bf16.gmra.mxu0 %vm2143_vm1, %v6644_v4  ;;  %v1458_v47 = vsel %vm8642_vm7, %v1456_v43, %v1457_v6  ;;  %v6418_v4 = vrot.slane %v6402_v25, 9  ;;  %v860_v29 = vsel %vm8642_vm7, %v858_v11, %v859_v26  ;;  %v6389_v25 = vld [vmem:[%s8083_s27 + $0x24] sm:$0xe]  ;;  %v6404_v26 = vrot.slane %v6388_v37, 9  ;;  %v7952_v43 = vld [vmem:[%s8083_s27 + $0x20] sm:$0x1] }
  0xd5   : > { %7448 = vmatprep.mubr.msk.bf16.mxu0 %vm2143_vm1, %v6645_v31  ;;  %v8841_v40 = vcombine.low %v1455_v27, %v1458_v47  ;;  %v8848_v31 = vcombine.low %v1462_v63, %v1465_v55  ;;  %v6648_v62 = vcombine.low %v857_v19, %v860_v29  ;;  %v1372_v27 = vrot.slane %v1370_v39, 4  ;;  %v7953_v47 = vld [vmem:[%s8083_s27 + $0x2c] sm:$0x1] }
  0xd6   : > { %v1469_v9 = vsel %vm8642_vm7, %v6418_v4, %v1468_v12  ;;  %v1373_v11 = vrot.slane %v7952_v43, 5  ;;  %v6405_v10 = vrot.slane %v6389_v25, 9  ;;  %v1380_v4 = vrot.slane %v7953_v47, 5  ;;  %v8955_v47 = vld [vmem:[%s11015_s1 + $0x16] sm:$0x3] }
  0xd7   : > { %v8825_v17 = vpop.f32.mrf.mxu1  ;;  %11148 = vst [vmem:[#allocation42_spill] sm:$0xff] %v8841_v40  ;;  %11149 = vst [vmem:[#allocation43_spill] sm:$0xff] %v8848_v31  ;;  %v8863_v7 = vcombine.low %v1469_v9, %v1472_v20  ;;  %v4291_v9 = vsel %vm2192_vm0, %v8692_v41, 0  ;;  %v6390_v20 = vld [vmem:[%s8083_s27 + $0x30] sm:$0xe] }
  0xd8   : > { %v8927_v41 = vld [vmem:[%s11015_s1 + $0x14] sm:$0x3] }
  0xd9   : > { %7479 = vmatmul.mubr.msk.bf16.gmra.mxu1 %vm2143_vm1, %v8271_v15  ;;  %v8834_v60 = vpop.f32.mrf.mxu1  ;;  %v1363_v15 = vrot.slane %v7948_v33, 5  ;;  %11150 = vst [vmem:[#allocation44_spill] sm:$0xff] %v8863_v7  ;;  %v1371_v33 = vsel %vm8642_vm7, %v6404_v26, %v1370_v39  ;;  %v4455_v26 = vsel %vm2192_vm0, %v8715_v1, 0 }
  0xda   : > { %7482 = vmatprep.mubr.msk.bf16.mxu1 %vm2143_vm1, %v8288_v56  ;;  %v6387_v56 = vld [vmem:[%s8083_s27 + $0xc] sm:$0xe] }
  0xdb   : > { %v8846_v54 = vpop.f32.mrf.mxu1  ;;  %v6403_v42 = vrot.slane %v6387_v56, 9  ;;  %v1365_v28 = vrot.slane %v1363_v15, 4  ;;  %v1384_v56 = vrot.slane %v7954_v22, 5 }
  0xdc   : > { %7449 = vmatmul.mubr.msk.bf16.gmra.mxu0 %vm2143_vm1, %v6646_v36 }
  0xdd   : > { %7452 = vmatprep.mubr.msk.bf16.mxu0 %vm2143_vm1, %v6647_v44  ;;  %v8859_v2 = vpop.f32.mrf.mxu1  ;;  %v1364_v38 = vsel %vm8642_vm7, %v6403_v42, %v1363_v15  ;;  %v1367_v5 = vsel %vm8642_vm7, %v1365_v28, %v1366_v53  ;;  %v1374_v15 = vsel %vm8642_vm7, %v1372_v27, %v1373_v11  ;;  %v7955_v28 = vld [vmem:[%s8083_s27 + $0x40] sm:$0xf]  ;;  %v6391_v53 = vld [vmem:[%s8083_s27 + $0x3c] sm:$0xe]  ;;  %v1386_v37 = vrot.slane %v1384_v56, 4 }
  0xde   : > { %v8891_v14 = vcombine.low %v1364_v38, %v1367_v5  ;;  %v1391_v30 = vrot.slane %v7955_v28, 5  ;;  %v8934_v48 = vcombine.low %v1371_v33, %v1374_v15  ;;  %v6406_v5 = vrot.slane %v6390_v20, 9  ;;  %v7957_v11 = vld [vmem:[%s8083_s27 + $0x44] sm:$0x1]  ;;  %v6392_v20 = vld [vmem:[%s8083_s27 + $0x48] sm:$0xe] }
  0xdf   : > { %v6407_v27 = vrot.slane %v6391_v53, 9  ;;  %v7959_v28 = vld [vmem:[%s8083_s27 + $0x58] sm:$0xf] }
  0xe0   : > { %v8866_v6 = vpop.f32.mrf.mxu1  ;;  %11151 = vst [vmem:[#allocation45_spill] sm:$0xff] %v8891_v14  ;;  %11152 = vst [vmem:[#allocation46_spill] sm:$0xff] %v8934_v48  ;;  %v1393_v43 = vrot.slane %v1391_v30, 4  ;;  %v1385_v33 = vsel %vm8642_vm7, %v6406_v5, %v1384_v56  ;;  %v1405_v53 = vrot.slane %v7959_v28, 5  ;;  %v6393_v56 = vld [vmem:[%s8083_s27 + $0x54] sm:$0xe] }
  0xe1   : > { %7483 = vmatmul.mubr.msk.bf16.gmra.mxu1 %vm2143_vm1, %v8298_v16  ;;  %v1377_v16 = vrot.slane %v7951_v21, 5  ;;  %v7956_v21 = vld [vmem:[%s8083_s27 + $0x38] sm:$0x1] }
  0xe2   : > { %7486 = vmatprep.mubr.msk.bf16.mxu1 %vm2143_vm1, %v8312_v59  ;;  %v8873_v32 = vpop.f32.mrf.mxu0  ;;  %v8875_v23 = vpop.f32.mrf.mxu1 }
  0xe3   : > { %v1379_v44 = vrot.slane %v1377_v16, 4 }
  0xe4   : > { %7453 = vmatmul.mubr.msk.bf16.gmra.mxu0 %vm2143_vm1, %v6648_v62  ;;  %v8884_v59 = vpop.f32.mrf.mxu0  ;;  %v8887_v36 = vpop.f32.mrf.mxu1 }
  0xe5   : > { %7492 = vmatprep.mubr.msk.bf16.mxu0 %vm2143_vm1, %v8336_v13  ;;  %v1381_v29 = vsel %vm8642_vm7, %v1379_v44, %v1380_v4 }
  0xe6   : > { %v8894_v63 = vpop.f32.mrf.mxu0  ;;  %v8896_v57 = vpop.f32.mrf.mxu1 }
  0xe8   : > { %v8899_v12 = vpop.f32.mrf.mxu0  ;;  %v8901_v55 = vpop.f32.mrf.mxu1 }
  0xe9   : > { %7487 = vmatmul.mubr.msk.bf16.gmra.mxu1 %vm2143_vm1, %v8316_v0  ;;  %v1378_v0 = vsel %vm8642_vm7, %v6405_v10, %v1377_v16  ;;  %v1387_v16 = vrot.slane %v7956_v21, 5  ;;  %v1394_v10 = vrot.slane %v7957_v11, 5 }
  0xea   : > { %7526 = vmatprep.mubr.msk.bf16.mxu1 %vm2143_vm1, %v8891_v14  ;;  %v8914_v19 = vpop.f32.mrf.mxu1  ;;  %v8940_v38 = vcombine.low %v1378_v0, %v1381_v29  ;;  %v1392_v0 = vsel %vm8642_vm7, %v6407_v27, %v1391_v30  ;;  %v6394_v14 = vld [vmem:[%s8083_s27 + $0x60] sm:$0xe] }
  0xeb   : > { %v8921_v42 = vpop.f32.mrf.mxu0  ;;  %v1388_v15 = vsel %vm8642_vm7, %v1386_v37, %v1387_v16  ;;  %v1395_v29 = vsel %vm8642_vm7, %v1393_v43, %v1394_v10  ;;  %v7960_v43 = vld [vmem:[%s8083_s27 + $0x50] sm:$0x1] }
  0xec   : > { %7493 = vmatmul.mubr.msk.bf16.vlgmr.msra.gmra.mxu0 %vm2143_vm1, %v8352_v18  ;;  %v8932_v62 = vpop.f32.mrf.mxu1  ;;  %11153 = vst [vmem:[#allocation47_spill] sm:$0xff] %v8940_v38  ;;  %v8983_v5 = vcombine.low %v1385_v33, %v1388_v15  ;;  %v8991_v16 = vcombine.low %v1392_v0, %v1395_v29  ;;  %v1401_v11 = vrot.slane %v7960_v43, 5  ;;  %v1407_v33 = vrot.slane %v1405_v53, 4  ;;  %v7961_v15 = vld [vmem:[%s8083_s27 + $0x5c] sm:$0x1] }
  0xed   : > { %7559 = vmatpush3.bf16.msra.mxu0 %v4291_v9  ;;  %7496 = vmatprep.mubr.msk.bf16.mxu0 %vm2143_vm1, %v8378_v8  ;;  %v8938_v39 = vpop.f32.mrf.mxu0  ;;  %v7958_v9 = vld [vmem:[%s8083_s27 + $0x4c] sm:$0xf]  ;;  %v1408_v28 = vrot.slane %v7961_v15, 5 }
  0xee   : > { %v8943_v25 = vpop.f32.mrf.mxu1  ;;  %7840 = vmatprep.subr.msk.bf16.mxu0 %vm2192_vm0, %v8927_v41  ;;  %v1398_v22 = vrot.slane %v7958_v9, 5  ;;  %11157 = vst [vmem:[#allocation51_spill] sm:$0xff] %v8983_v5  ;;  %11159 = vst [vmem:[#allocation53_spill] sm:$0xff] %v8991_v16  ;;  %v6409_v9 = vrot.slane %v6393_v56, 9  ;;  %v7962_v56 = vld [vmem:[%s8083_s27 + $0x64] sm:$0xf] }
  0xef   : > { %11154 = vst [vmem:[#allocation48_spill] sm:$0xff] %v8943_v25  ;;  %v8950_v44 = vpop.f32.mrf.mxu0  ;;  %v1412_v43 = vrot.slane %v7962_v56, 5 }
  0xf0   : > { %v1400_v27 = vrot.slane %v1398_v22, 4 }
  0xf1   : > { %7527 = vmatmul.mubr.msk.bf16.vlgmr.msra.gmra.mxu1 %vm2143_vm1, %v8934_v48  ;;  %v8959_v4 = vpop.f32.mrf.mxu0  ;;  %v8961_v1 = vpop.f32.mrf.mxu1  ;;  %v1406_v48 = vsel %vm8642_vm7, %v6409_v9, %v1405_v53  ;;  %v6410_v9 = vrot.slane %v6394_v14, 9 }
  0xf2   : > { %11155 = vst [vmem:[#allocation49_spill] sm:$0xff] %v8961_v1  ;;  %7593 = vmatpush3.bf16.msra.mxu1 %v4455_v26  ;;  %7530 = vmatprep.mubr.msk.bf16.mxu1 %vm2143_vm1, %v8940_v38  ;;  %v6408_v26 = vrot.slane %v6392_v20, 9  ;;  %v1402_v20 = vsel %vm8642_vm7, %v1400_v27, %v1401_v11 }
  0xf3   : > { %v8976_v21 = vpop.f32.mrf.mxu1  ;;  %7841 = vmatprep.subr.msk.bf16.mxu1 %vm2192_vm0, %v8955_v47  ;;  %v1413_v14 = vsel %vm8642_vm7, %v6410_v9, %v1412_v43 }
  0xf4   : > { %11156 = vst [vmem:[#allocation50_spill] sm:$0xff] %v8976_v21  ;;  %7497 = vmatmul.mubr.msk.bf16.gmra.mxu0 %vm2143_vm1, %v8392_v61  ;;  %v1399_v29 = vsel %vm8642_vm7, %v6408_v26, %v1398_v22  ;;  %v6395_v22 = vld [vmem:[%s8083_s27 + $0x6c] sm:$0xe] }
  0xf5   : > { %7500 = vmatprep.mubr.msk.bf16.mxu0 %vm2143_vm1, %v8412_v51  ;;  %v8987_v30 = vpop.f32.mrf.mxu0  ;;  %v8989_v37 = vpop.f32.mrf.mxu1  ;;  %v9025_v27 = vcombine.low %v1399_v29, %v1402_v20  ;;  %v6411_v34 = vrot.slane %v6395_v22, 9  ;;  %v11169_v29 = vld [vmem:[#allocation14_spill] sm:$0xff]  ;;  %v11172_v22 = vld [vmem:[#allocation16_spill] sm:$0xff] }
  0xf6   : > { %11158 = vst [vmem:[#allocation52_spill] sm:$0xff] %v8989_v37  ;;  %v1422_v20 = vrot.slane %v11169_v29, 5 }
  0xf7   : > { %v8994_v10 = vpop.f32.mrf.mxu0  ;;  %v8997_v38 = vpop.f32.mrf.mxu1  ;;  %11164 = vst [vmem:[#allocation58_spill] sm:$0xff] %v9025_v27 }
  0xf8   : > { %11160 = vst [vmem:[#allocation54_spill] sm:$0xff] %v8997_v38  ;;  %v11174_v38 = vld [vmem:[#allocation20_spill] sm:$0xff] }
  0xf9   : > { %7531 = vmatmul.mubr.msk.bf16.gmra.mxu1 %vm2143_vm1, %v8983_v5  ;;  %v9001_v0 = vpop.f32.mrf.mxu0  ;;  %v1409_v5 = vsel %vm8642_vm7, %v1407_v33, %v1408_v28  ;;  %v1414_v33 = vrot.slane %v1412_v43, 4  ;;  %v7963_v28 = vld [vmem:[%s8083_s27 + $0x68] sm:$0x1]  ;;  %v1433_v37 = vrot.slane %v11174_v38, 5  ;;  %v6397_v43 = vld [vmem:[%s8083_s27 + $0x84] sm:$0xe] }
  0xfa   : > { %7534 = vmatprep.mubr.msk.bf16.mxu1 %vm2143_vm1, %v8991_v16  ;;  %v9010_v15 = vpop.f32.mrf.mxu1  ;;  %v1419_v16 = vrot.slane %v8428_v49, 5  ;;  %v9031_v11 = vcombine.low %v1406_v48, %v1409_v5  ;;  %v1415_v49 = vrot.slane %v7963_v28, 5  ;;  %v1426_v28 = vrot.slane %v11172_v22, 5 }
  0xfb   : > { %11161 = vst [vmem:[#allocation55_spill] sm:$0xff] %v9010_v15  ;;  %v9017_v3 = vpop.f32.mrf.mxu0  ;;  %v6413_v38 = vrot.slane %v6397_v43, 9  ;;  %v1435_v21 = vrot.slane %v1433_v37, 4 }
  0xfc   : > { %11162 = vst [vmem:[#allocation56_spill] sm:$0xff] %v9017_v3  ;;  %7501 = vmatmul.mubr.msk.bf16.gmra.mxu0 %vm2143_vm1, %v8424_v45  ;;  %v9023_v26 = vpop.f32.mrf.mxu1  ;;  %11166 = vst [vmem:[#allocation60_spill] sm:$0xff] %v9031_v11  ;;  %v1416_v5 = vsel %vm8642_vm7, %v1414_v33, %v1415_v49  ;;  %v1420_v29 = vsel %vm8642_vm7, %v6411_v34, %v1419_v16  ;;  %v11177_v33 = vld [vmem:[#allocation23_spill] sm:$0xff]  ;;  %v11178_v34 = vld [vmem:[#allocation17_spill] sm:$0xff] }
  0xfd   : > { %11163 = vst [vmem:[#allocation57_spill] sm:$0xff] %v9023_v26  ;;  %7504 = vmatprep.mubr.msk.bf16.mxu0 %vm2143_vm1, %v8448_v50  ;;  %v9029_v53 = vpop.f32.mrf.mxu0  ;;  %v1421_v26 = vrot.slane %v1419_v16, 4  ;;  %v9063_v9 = vcombine.low %v1413_v14, %v1416_v5  ;;  %v1429_v16 = vrot.slane %v11178_v34, 5  ;;  %v11191_v3 = vld [vmem:[#allocation30_spill] sm:$0xff] }
  0xfe   : > { %11165 = vst [vmem:[#allocation59_spill] sm:$0xff] %v9029_v53  ;;  %v9034_v56 = vpop.f32.mrf.mxu1 }
  0xff   : > { %11167 = vst [vmem:[#allocation61_spill] sm:$0xff] %v9034_v56  ;;  %v9036_v35 = vpop.f32.mrf.mxu0  ;;  %11176 = vst [vmem:[#allocation20_spill] sm:$0xff] %v9063_v9 }
 0x100   : > { %11168 = vst [vmem:[#allocation62_spill] sm:$0xff] %v9036_v35  ;;  %v9039_v15 = vpop.f32.mrf.mxu1  ;;  %v11181_v35 = vld [vmem:[#allocation21_spill] sm:$0xff] }
 0x101   : > { %11170 = vst [vmem:[#allocation14_spill] sm:$0xff] %v9039_v15  ;;  %7535 = vmatmul.mubr.msk.bf16.gmra.mxu1 %vm2143_vm1, %v9025_v27  ;;  %v9043_v48 = vpop.f32.mrf.mxu0  ;;  %v1423_v15 = vsel %vm8642_vm7, %v1421_v26, %v1422_v20  ;;  %v6396_v27 = vld [vmem:[%s8083_s27 + $0x78] sm:$0xe]  ;;  %v1428_v20 = vrot.slane %v1426_v28, 4 }
 0x102   : > { %11171 = vst [vmem:[#allocation63_spill] sm:$0xff] %v9043_v48  ;;  %7538 = vmatprep.mubr.msk.bf16.mxu1 %vm2143_vm1, %v9031_v11  ;;  %v11175_v48 = vld [vmem:[#allocation18_spill] sm:$0xff]  ;;  %v9068_v22 = vcombine.low %v1420_v29, %v1423_v15  ;;  %v6412_v26 = vrot.slane %v6396_v27, 9  ;;  %v11183_v29 = vld [vmem:[#allocation24_spill] sm:$0xff] }
 0x103   : > { %v9057_v56 = vpop.f32.mrf.mxu0  ;;  %v7344_v11 = vpop.f32.mrf.mxu1  ;;  %v1430_v27 = vsel %vm8642_vm7, %v1428_v20, %v1429_v16  ;;  %v1440_v43 = vrot.slane %v11183_v29, 5  ;;  %v11188_v20 = vld [vmem:[#allocation31_spill] sm:$0xff] }
 0x104   : > { %11173 = vst [vmem:[#allocation16_spill] sm:$0xff] %v9057_v56  ;;  %7505 = vmatmul.mubr.msk.bf16.gmra.mxu0 %vm2143_vm1, %v11175_v48  ;;  %11179 = vst [vmem:[#allocation17_spill] sm:$0xff] %v9068_v22  ;;  %v1436_v48 = vrot.slane %v11181_v35, 5  ;;  %v1427_v15 = vsel %vm8642_vm7, %v6412_v26, %v1426_v28  ;;  %v1434_v35 = vsel %vm8642_vm7, %v6413_v38, %v1433_v37  ;;  %v6399_v28 = vld [vmem:[%s8083_s27 + $0x9c] sm:$0xe] }
 0x105   : > { %7508 = vmatprep.mubr.msk.bf16.mxu0 %vm2143_vm1, %v11177_v33  ;;  %v2586_v49 = vpop.f32.mrf.mxu1  ;;  %v9095_v53 = vcombine.low %v1427_v15, %v1430_v27  ;;  %v11189_v37 = vld [vmem:[#allocation25_spill] sm:$0xff]  ;;  %v1442_v29 = vrot.slane %v1440_v43, 4 }
 0x106   : > { %v1437_v34 = vsel %vm8642_vm7, %v1435_v21, %v1436_v48  ;;  %v1443_v38 = vrot.slane %v11189_v37, 5 }
 0x107   : > { %v9070_v56 = vpop.f32.mrf.mxu0  ;;  %v7345_v14 = vpop.f32.mrf.mxu1  ;;  %v9102_v21 = vcombine.low %v1434_v35, %v1437_v34 }
 0x108   : > { %11180 = vst [vmem:[#allocation64_spill] sm:$0xff] %v9070_v56  ;;  %v11185_v56 = vld [vmem:[#allocation28_spill] sm:$0xff] }
 0x109   : > { %7539 = vmatmul.mubr.msk.bf16.gmra.mxu1 %vm2143_vm1, %v9063_v9  ;;  %v9075_v5 = vpop.f32.mrf.mxu0  ;;  %v2589_v33 = vpop.f32.mrf.mxu1  ;;  %v1447_v1 = vrot.slane %v11185_v56, 5  ;;  %11187 = vst [vmem:[#allocation28_spill] sm:$0xff] %v9095_v53  ;;  %11190 = vst [vmem:[#allocation25_spill] sm:$0xff] %v9102_v21  ;;  %v6415_v56 = vrot.slane %v6399_v28, 9  ;;  %v11192_v28 = vld [vmem:[#allocation32_spill] sm:$0xff] }
 0x10a   : > { %11182 = vst [vmem:[#allocation21_spill] sm:$0xff] %v9075_v5  ;;  %7542 = vmatprep.mubr.msk.bf16.mxu1 %vm2143_vm1, %v9068_v22  ;;  %v6398_v5 = vld [vmem:[%s8083_s27 + $0x90] sm:$0xe]  ;;  %v11186_v22 = vld [vmem:[#allocation26_spill] sm:$0xff] }
 0x10b   : > { %v9088_v9 = vpop.f32.mrf.mxu0  ;;  %v6414_v48 = vrot.slane %v6398_v5, 9  ;;  %v1449_v25 = vrot.slane %v1447_v1, 4  ;;  %v1444_v5 = vsel %vm8642_vm7, %v1442_v29, %v1443_v38 }
 0x10c   : > { %11184 = vst [vmem:[#allocation24_spill] sm:$0xff] %v9088_v9  ;;  %7509 = vmatmul.mubr.msk.bf16.gmra.mxu0 %vm2143_vm1, %v11186_v22  ;;  %v7348_v26 = vpop.f32.mrf.mxu1  ;;  %v1450_v22 = vrot.slane %v11191_v3, 5  ;;  %v1448_v3 = vsel %vm8642_vm7, %v6415_v56, %v1447_v1 }
 0x10d   : > { %v9097_v16 = vpop.f32.mrf.mxu0  ;;  %7512 = vmatprep.mubr.msk.bf16.mxu0 %vm2143_vm1, %v11188_v20  ;;  %v1441_v27 = vsel %vm8642_vm7, %v6414_v48, %v1440_v43  ;;  %v11194_v48 = vld [vmem:[#allocation35_spill] sm:$0xff] }
 0x10e   : > { %v2602_v50 = vpop.f32.mrf.mxu1 }
 0x10f   : > { %v7310_v9 = vpop.f32.mrf.mxu0 }
 0x110   : > { %v9105_v45 = vadd.f32 %v7344_v11, %v7310_v9  ;;  %v1451_v11 = vsel %vm8642_vm7, %v1449_v25, %v1450_v22  ;;  %v7349_v34 = vpop.f32.mrf.mxu1 }
 0x111   : > { %7543 = vmatmul.mubr.msk.bf16.gmra.mxu1 %vm2143_vm1, %v9095_v53  ;;  %v2310_v15 = vpop.f32.mrf.mxu0 }
 0x112   : > { %7546 = vmatprep.mubr.msk.bf16.mxu1 %vm2143_vm1, %v9102_v21  ;;  %v9115_v35 = vadd.f32 %v2586_v49, %v2310_v15  ;;  %v9125_v21 = vcombine.low %v1441_v27, %v1444_v5  ;;  %v9129_v49 = vcombine.low %v1448_v3, %v1451_v11  ;;  %v2605_v1 = vpop.f32.mrf.mxu1 }
 0x113   : > { %v7311_v9 = vpop.f32.mrf.mxu0 }
 0x114   : > { %7513 = vmatmul.mubr.msk.bf16.gmra.mxu0 %vm2143_vm1, %v11192_v28  ;;  %v9123_v37 = vadd.f32 %v7345_v14, %v7311_v9  ;;  %11193 = vst [vmem:[#allocation30_spill] sm:$0xff] %v9125_v21  ;;  %11195 = vst [vmem:[#allocation65_spill] sm:$0xff] %v9129_v49 }
 0x115   : > { %v2313_v43 = vpop.f32.mrf.mxu0  ;;  %7516 = vmatprep.mubr.msk.bf16.mxu0 %vm2143_vm1, %v11194_v48  ;;  %v7352_v29 = vpop.f32.mrf.mxu1 }
 0x116   : > { %v9131_v38 = vadd.f32 %v2589_v33, %v2313_v43 }
 0x117   : > { %v2618_v5 = vpop.f32.mrf.mxu1 }
 0x119   : > { %7547 = vmatmul.mubr.msk.bf16.gmra.mxu1 %vm2143_vm1, %v9125_v21  ;;  %v7314_v25 = vpop.f32.mrf.mxu0 }
 0x11a   : > { %7550 = vmatprep.mubr.msk.bf16.mxu1 %vm2143_vm1, %v9129_v49  ;;  %v9137_v22 = vadd.f32 %v7348_v26, %v7314_v25 }
 0x11b   : > { %v2326_v14 = vpop.f32.mrf.mxu0 }
 0x11c   : > { %7517 = vmatmul.mubr.msk.bf16.gmra.mxu0 %vm2143_vm1, %v8617_v46  ;;  %v9141_v56 = vadd.f32 %v2602_v50, %v2326_v14  ;;  %v7353_v50 = vpop.f32.mrf.mxu1 }
 0x11d   : > { %v7315_v15 = vpop.f32.mrf.mxu0  ;;  %7520 = vmatprep.mubr.msk.bf16.mxu0 %vm2143_vm1, %v8635_v58 }
 0x11e   : > { %v9145_v33 = vadd.f32 %v7349_v34, %v7315_v15  ;;  %v2621_v25 = vpop.f32.mrf.mxu1 }
 0x11f   : > { %v2329_v27 = vpop.f32.mrf.mxu0 }
 0x120   : > { %v9147_v3 = vadd.f32 %v2605_v1, %v2329_v27 }
 0x121   : > { %7551 = vmatmul.mubr.msk.bf16.gmra.mxu1 %vm2143_vm1, %v8841_v40  ;;  %v7318_v26 = vpop.f32.mrf.mxu0  ;;  %v11211_v40 = vld [vmem:[#allocation63_spill] sm:$0xff] }
 0x122   : > { %7554 = vmatprep.mubr.msk.bf16.mxu1 %vm2143_vm1, %v8848_v31  ;;  %v9153_v11 = vadd.f32 %v7352_v29, %v7318_v26  ;;  %v2515_v29 = vadd.f32 %v8825_v17, %v8873_v32  ;;  %v11196_v26 = vld [vmem:[#allocation3_spill] sm:$0xff]  ;;  %v9179_v17 = vld [vmem:[%s11016_s2] ss:$0 sm:$0xff] }
 0x123   : > { %v2342_v9 = vpop.f32.mrf.mxu0 }
 0x124   : > { %7521 = vmatmul.mubr.msk.bf16.gmra.mxu0 %vm2143_vm1, %v8669_v24  ;;  %v9157_v34 = vadd.f32 %v2618_v5, %v2342_v9  ;;  %v2507_v5 = vadd.f32 %v8834_v60, %v8884_v59  ;;  %v4733_v9 = vsel %vm2192_vm0, %v8927_v41, 0  ;;  %v2518_v60 = vadd.f32 %v8846_v54, %v8894_v63 }
 0x125   : > { %v7319_v43 = vpop.f32.mrf.mxu0  ;;  %7560 = vmatprep.mubr.msk.bf16.mxu0 %vm2143_vm1, %v8336_v13  ;;  %v2510_v54 = vadd.f32 %v8859_v2, %v8899_v12 }
 0x126   : > { %v9161_v1 = vadd.f32 %v7353_v50, %v7319_v43 }
 0x127   : > { %v2345_v14 = vpop.f32.mrf.mxu0 }
 0x128   : > { %v9165_v15 = vadd.f32 %v2621_v25, %v2345_v14  ;;  %v9184_v25 = vld [vmem:[%s11015_s1 + $0x1a] sm:$0x3] }
 0x129   : > { %7555 = vmatmul.mubr.msk.bf16.gmra.mxu1 %vm2143_vm1, %v8863_v7  ;;  %v7358_v27 = vpop.f32.mrf.mxu0 }
 0x12a   : > { %7594 = vmatprep.mubr.msk.bf16.mxu1 %vm2143_vm1, %v11196_v26  ;;  %v2913_v50 = vadd.f32 %v7358_v27, %v2515_v29 }
 0x12b   : > { %v7392_v43 = vpop.f32.mrf.mxu1  ;;  %v2784_v32 = vpop.f32.mrf.mxu0 }
 0x12c   : > { %v3207_v59 = vadd.f32 %v7392_v43, %v2913_v50  ;;  %7561 = vmatmul.mubr.msk.bf16.vlgmr.msra.gmra.mxu0 %vm2143_vm1, %v8352_v18  ;;  %v2911_v41 = vadd.f32 %v2784_v32, %v2507_v5  ;;  %v5027_v50 = vsel %vm2192_vm0, %v8955_v47, 0  ;;  %v2531_v43 = vadd.f32 %v8866_v6, %v8921_v42  ;;  %v11197_v47 = vld [vmem:[#allocation4_spill] sm:$0xff]  ;;  %v11198_v42 = vld [vmem:[#allocation5_spill] sm:$0xff] }
 0x12d   : > { %v3078_v14 = vpop.f32.mrf.mxu1  ;;  %7627 = vmatpush3.bf16.msra.mxu0 %v4733_v9  ;;  %v7359_v29 = vpop.f32.mrf.mxu0  ;;  %7564 = vmatprep.mubr.msk.bf16.mxu0 %vm2143_vm1, %v8378_v8 }
 0x12e   : > { %v3239_v63 = vadd.f32 %v9179_v17, %v3207_v59  ;;  %v3205_v27 = vadd.f32 %v3078_v14, %v2911_v41  ;;  %v2914_v5 = vadd.f32 %v7359_v29, %v2518_v60  ;;  %7842 = vmatprep.subr.msk.bf16.mxu0 %vm2192_vm0, %v9184_v25  ;;  %v9212_v60 = vld [vmem:[%s11015_s1 + $0x18] sm:$0x3]  ;;  %v2523_v59 = vadd.f32 %v8875_v23, %v8938_v39 }
 0x12f   : > { %v7393_v26 = vpop.f32.mrf.mxu1  ;;  %v2787_v9 = vpop.f32.mrf.mxu0  ;;  %v2534_v23 = vadd.f32 %v8887_v36, %v8950_v44 }
 0x130   : > { %3271 = vst.msk [vmem:[%s9193_s28 + $0x10] sm:$0xff] %vm2143_vm1, %v3239_v63  ;;  %v3237_v2 = vadd.f32 %v9179_v17, %v3205_v27  ;;  %v3208_v12 = vadd.f32 %v7393_v26, %v2914_v5  ;;  %v2912_v32 = vadd.f32 %v2787_v9, %v2510_v54 }
 0x131   : > { %7595 = vmatmul.mubr.msk.bf16.vlgmr.msra.gmra.mxu1 %vm2143_vm1, %v11197_v47  ;;  %v3081_v41 = vpop.f32.mrf.mxu1  ;;  %v7362_v6 = vpop.f32.mrf.mxu0 }
 0x132   : > { %3269 = vst.msk [vmem:[%s9193_s28] sm:$0xff] %vm2143_vm1, %v3237_v2  ;;  %7661 = vmatpush3.bf16.msra.mxu1 %v5027_v50  ;;  %7598 = vmatprep.mubr.msk.bf16.mxu1 %vm2143_vm1, %v11198_v42  ;;  %v3240_v14 = vadd.f32 %v9179_v17, %v3208_v12  ;;  %v3206_v29 = vadd.f32 %v3081_v41, %v2912_v32 }
 0x133   : > { %v2917_v54 = vadd.f32 %v7362_v6, %v2531_v43  ;;  %v7396_v63 = vpop.f32.mrf.mxu1  ;;  %v2800_v27 = vpop.f32.mrf.mxu0  ;;  %7843 = vmatprep.subr.msk.bf16.mxu1 %vm2192_vm0, %v9212_v60  ;;  %v2526_v43 = vadd.f32 %v8896_v57, %v8959_v4  ;;  %v9245_v4 = vld [vmem:[%s8083_s27 + $0x18] sm:$0xf]  ;;  %v11199_v6 = vld [vmem:[#allocation6_spill] sm:$0xff] }
 0x134   : > { %3272 = vst.msk [vmem:[%s9193_s28 + $0x18] sm:$0xff] %vm2143_vm1, %v3240_v14  ;;  %v3238_v39 = vadd.f32 %v9179_v17, %v3206_v29  ;;  %7565 = vmatmul.mubr.msk.bf16.gmra.mxu0 %vm2143_vm1, %v8392_v61  ;;  %v2915_v26 = vadd.f32 %v2800_v27, %v2523_v59  ;;  %v2547_v59 = vadd.f32 %v8901_v55, %v8987_v30  ;;  %v11200_v55 = vld [vmem:[#allocation8_spill] sm:$0xff]  ;;  %v9257_v27 = vld [vmem:[%s8083_s27 + $0x1c] sm:$0xf] }
 0x135   : > { %v3211_v5 = vadd.f32 %v7396_v63, %v2917_v54  ;;  %v3094_v50 = vpop.f32.mrf.mxu1  ;;  %v7363_v9 = vpop.f32.mrf.mxu0  ;;  %7568 = vmatprep.mubr.msk.bf16.mxu0 %vm2143_vm1, %v8412_v51  ;;  %v2539_v29 = vadd.f32 %v8914_v19, %v8994_v10  ;;  %v2550_v19 = vadd.f32 %v8932_v62, %v9001_v0  ;;  %v11203_v62 = vld [vmem:[#allocation56_spill] sm:$0xff] }
 0x136   : > { %3270 = vst.msk [vmem:[%s9193_s28 + $0x8] sm:$0xff] %vm2143_vm1, %v3238_v39  ;;  %v3209_v44 = vadd.f32 %v3094_v50, %v2915_v26  ;;  %v2918_v2 = vadd.f32 %v7363_v9, %v2534_v23  ;;  %v1526_v39 = vshrl.u32 %v9245_v4, 16  ;;  %v9262_v26 = vld [vmem:[%s8083_s27 + $0x24] sm:$0xf]  ;;  %v11201_v9 = vld [vmem:[#allocation11_spill] sm:$0xff]  ;;  %v11204_v0 = vld [vmem:[#allocation48_spill] sm:$0xff] }
 0x137   : > { %v3243_v36 = vadd.f32 %v9179_v17, %v3211_v5  ;;  %v7397_v12 = vpop.f32.mrf.mxu1  ;;  %v2803_v32 = vpop.f32.mrf.mxu0  ;;  %v1529_v5 = vshll.u32 %v9245_v4, 16 }
 0x138   : > { %v3241_v47 = vadd.f32 %v9179_v17, %v3209_v44  ;;  %v3212_v41 = vadd.f32 %v7397_v12, %v2918_v2  ;;  %v2916_v57 = vadd.f32 %v2803_v32, %v2526_v43  ;;  %v11202_v2 = vld [vmem:[#allocation15_spill] sm:$0xff]  ;;  %v1535_v12 = vshll.u32 %v9257_v27, 16 }
 0x139   : > { %3275 = vst.msk [vmem:[%s9193_s28 + $0x30] sm:$0xff] %vm2143_vm1, %v3243_v36  ;;  %7599 = vmatmul.mubr.msk.bf16.gmra.mxu1 %vm2143_vm1, %v11199_v6  ;;  %v3097_v42 = vpop.f32.mrf.mxu1  ;;  %v7366_v14 = vpop.f32.mrf.mxu0  ;;  %v1539_v32 = vshrl.u32 %v9257_v27, 16  ;;  %v1550_v6 = vshrl.u32 %v9262_v26, 16 }
 0x13a   : > { %3273 = vst.msk [vmem:[%s9193_s28 + $0x20] sm:$0xff] %vm2143_vm1, %v3241_v47  ;;  %7602 = vmatprep.mubr.msk.bf16.mxu1 %vm2143_vm1, %v11200_v55  ;;  %v3244_v30 = vadd.f32 %v9179_v17, %v3212_v41  ;;  %v3210_v54 = vadd.f32 %v3097_v42, %v2916_v57  ;;  %v2921_v63 = vadd.f32 %v7366_v14, %v2547_v59  ;;  %v9276_v59 = vld [vmem:[%s8083_s27 + $0x28] sm:$0xf]  ;;  %v1553_v42 = vshll.u32 %v9262_v26, 16 }
 0x13b   : > { %v2816_v23 = vpop.f32.mrf.mxu0  ;;  %v2542_v47 = vadd.f32 %v11204_v0, %v11203_v62  ;;  %v11208_v0 = vld [vmem:[#allocation62_spill] sm:$0xff]  ;;  %v1541_v52 = vrot.slane %v1539_v32, 4 }
 0x13c   : > { %3276 = vst.msk [vmem:[%s9193_s28 + $0x38] sm:$0xff] %vm2143_vm1, %v3244_v30  ;;  %v7400_v10 = vpop.f32.mrf.mxu1  ;;  %v3242_v50 = vadd.f32 %v9179_v17, %v3210_v54  ;;  %7569 = vmatmul.mubr.msk.bf16.gmra.mxu0 %vm2143_vm1, %v11201_v9  ;;  %v2919_v43 = vadd.f32 %v2816_v23, %v2539_v29  ;;  %v1528_v30 = vrot.slane %v1526_v39, 4  ;;  %v1531_v54 = vrot.slane %v1529_v5, 5  ;;  %v11206_v23 = vld [vmem:[#allocation49_spill] sm:$0xff] }
 0x13d   : > { %v3215_v36 = vadd.f32 %v7400_v10, %v2921_v63  ;;  %v7367_v44 = vpop.f32.mrf.mxu0  ;;  %7572 = vmatprep.mubr.msk.bf16.mxu0 %vm2143_vm1, %v11202_v2  ;;  %v11205_v63 = vld [vmem:[#allocation59_spill] sm:$0xff]  ;;  %v1555_v31 = vrot.slane %v1553_v42, 5 }
 0x13e   : > { %3274 = vst.msk [vmem:[%s9193_s28 + $0x28] sm:$0xff] %vm2143_vm1, %v3242_v50  ;;  %v3110_v41 = vpop.f32.mrf.mxu1  ;;  %v2922_v57 = vadd.f32 %v7367_v44, %v2550_v19  ;;  %v2563_v10 = vadd.f32 %v11206_v23, %v11205_v63  ;;  %v1559_v50 = vshll.u32 %v9276_v59, 16  ;;  %v1563_v19 = vshrl.u32 %v9276_v59, 16  ;;  %v11207_v44 = vld [vmem:[#allocation9_spill] sm:$0xff] }
 0x13f   : > { %v3247_v14 = vadd.f32 %v9179_v17, %v3215_v36  ;;  %v3213_v29 = vadd.f32 %v3110_v41, %v2919_v43  ;;  %v2819_v55 = vpop.f32.mrf.mxu0  ;;  %v9294_v36 = vrot.slane %v1535_v12, 5  ;;  %v11209_v41 = vld [vmem:[#allocation50_spill] sm:$0xff] }
 0x140   : > { %v7401_v7 = vpop.f32.mrf.mxu1  ;;  %v2920_v62 = vadd.f32 %v2819_v55, %v2542_v47  ;;  %v2555_v63 = vadd.f32 %v11209_v41, %v11208_v0  ;;  %v11210_v55 = vld [vmem:[#allocation12_spill] sm:$0xff]  ;;  %v6451_v12 = vld [vmem:[%s8083_s27 + $0x20] sm:$0x1] }
 0x141   : > { %7603 = vmatmul.mubr.msk.bf16.gmra.mxu1 %vm2143_vm1, %v11207_v44  ;;  %3279 = vst.msk [vmem:[%s9193_s28 + $0x50] sm:$0xff] %vm2143_vm1, %v3247_v14  ;;  %v3245_v43 = vadd.f32 %v9179_v17, %v3213_v29  ;;  %v3216_v39 = vadd.f32 %v7401_v7, %v2922_v57  ;;  %v7370_v5 = vpop.f32.mrf.mxu0  ;;  %v1552_v44 = vrot.slane %v1550_v6, 4  ;;  %v1532_v57 = vor.u32 %v1531_v54, %v1528_v30  ;;  %v11212_v0 = vld [vmem:[#allocation52_spill] sm:$0xff]  ;;  %v11214_v54 = vld [vmem:[#allocation23_spill] sm:$0xff] }
 0x142   : > { %v3113_v47 = vpop.f32.mrf.mxu1  ;;  %7606 = vmatprep.mubr.msk.bf16.mxu1 %vm2143_vm1, %v11210_v55  ;;  %v2925_v23 = vadd.f32 %v7370_v5, %v2563_v10  ;;  %v2566_v41 = vadd.f32 %v11212_v0, %v11211_v40  ;;  %v11213_v55 = vld [vmem:[#allocation18_spill] sm:$0xff]  ;;  %v9308_v6 = vrot.slane %v1559_v50, 5  ;;  %v1565_v10 = vrot.slane %v1563_v19, 4  ;;  %v6452_v40 = vld [vmem:[%s8083_s27 + $0x2c] sm:$0x1] }
 0x143   : > { %3277 = vst.msk [vmem:[%s9193_s28 + $0x40] sm:$0xff] %vm2143_vm1, %v3245_v43  ;;  %v3248_v14 = vadd.f32 %v9179_v17, %v3216_v39  ;;  %v3214_v29 = vadd.f32 %v3113_v47, %v2920_v62  ;;  %v2832_v7 = vpop.f32.mrf.mxu0  ;;  %v11215_v43 = vld [vmem:[#allocation16_spill] sm:$0xff]  ;;  %v11216_v39 = vld [vmem:[#allocation54_spill] sm:$0xff] }
 0x144   : > { %v7404_v49 = vpop.f32.mrf.mxu1  ;;  %7573 = vmatmul.mubr.msk.bf16.gmra.mxu0 %vm2143_vm1, %v11213_v55  ;;  %v2923_v32 = vadd.f32 %v2832_v7, %v2555_v63  ;;  %v2558_v5 = vadd.f32 %v11216_v39, %v11215_v43  ;;  %v1545_v63 = vshll.u32 %v6451_v12, 16  ;;  %v9319_v50 = vld [vmem:[%s8083_s27 + $0x30] sm:$0xf]  ;;  %v9326_v7 = vld [vmem:[%s8083_s27 + $0x34] sm:$0xf]  ;;  %v9328_v43 = vrot.slane %v1532_v57, 4 }
 0x145   : > { %3280 = vst.msk [vmem:[%s9193_s28 + $0x58] sm:$0xff] %vm2143_vm1, %v3248_v14  ;;  %v3246_v62 = vadd.f32 %v9179_v17, %v3214_v29  ;;  %v3219_v30 = vadd.f32 %v7404_v49, %v2925_v23  ;;  %v7371_v42 = vpop.f32.mrf.mxu0  ;;  %7576 = vmatprep.mubr.msk.bf16.mxu0 %vm2143_vm1, %v11214_v54  ;;  %v1542_v23 = vor.u32 %v1541_v52, %v9294_v36  ;;  %v11218_v39 = vld [vmem:[#allocation55_spill] sm:$0xff]  ;;  %v11219_v54 = vld [vmem:[#allocation13_spill] sm:$0xff]  ;;  %v1574_v57 = vshrl.u32 %v9319_v50, 16 }
 0x146   : > { %v3126_v47 = vpop.f32.mrf.mxu1  ;;  %v2926_v0 = vadd.f32 %v7371_v42, %v2566_v41  ;;  %v1556_v29 = vor.u32 %v1555_v31, %v1552_v44  ;;  %v1566_v12 = vor.u32 %v1565_v10, %v9308_v6  ;;  %v1569_v41 = vshll.u32 %v6452_v40, 16  ;;  %v11217_v42 = vld [vmem:[#allocation64_spill] sm:$0xff] }
 0x147   : > { %3278 = vst.msk [vmem:[%s9193_s28 + $0x48] sm:$0xff] %vm2143_vm1, %v3246_v62  ;;  %v3251_v19 = vadd.f32 %v9179_v17, %v3219_v30  ;;  %v3217_v14 = vadd.f32 %v3126_v47, %v2923_v32  ;;  %v2835_v49 = vpop.f32.mrf.mxu0  ;;  %v2579_v62 = vadd.f32 %v11218_v39, %v11217_v42  ;;  %v11220_v30 = vld [vmem:[#allocation19_spill] sm:$0xff]  ;;  %v9341_v10 = vrot.slane %v1545_v63, 5  ;;  %v11221_v47 = vld [vmem:[#allocation21_spill] sm:$0xff]  ;;  %v11223_v39 = vld [vmem:[#allocation26_spill] sm:$0xff] }
 0x148   : > { %v7405_v21 = vpop.f32.mrf.mxu1  ;;  %v2924_v53 = vadd.f32 %v2835_v49, %v2558_v5  ;;  %v1577_v40 = vshll.u32 %v9319_v50, 16  ;;  %v1587_v5 = vshrl.u32 %v9326_v7, 16  ;;  %v9352_v63 = vld [vmem:[%s8083_s27 + $0x3c] sm:$0xf]  ;;  %v9356_v55 = vrot.slane %v1556_v29, 4 }
 0x149   : > { %7607 = vmatmul.mubr.msk.bf16.gmra.mxu1 %vm2143_vm1, %v11219_v54  ;;  %3283 = vst.msk [vmem:[%s9193_s28 + $0x70] sm:$0xff] %vm2143_vm1, %v3251_v19  ;;  %v3249_v52 = vadd.f32 %v9179_v17, %v3217_v14  ;;  %v3220_v31 = vadd.f32 %v7405_v21, %v2926_v0  ;;  %v7374_v44 = vpop.f32.mrf.mxu0  ;;  %v1583_v54 = vshll.u32 %v9326_v7, 16  ;;  %v11222_v19 = vld [vmem:[#allocation57_spill] sm:$0xff]  ;;  %v9358_v2 = vrot.slane %v1566_v12, 4  ;;  %v9368_v29 = vld [vmem:[%s8083_s27 + $0x40] sm:$0xf] }
 0x14a   : > { %v3129_v32 = vpop.f32.mrf.mxu1  ;;  %7610 = vmatprep.mubr.msk.bf16.mxu1 %vm2143_vm1, %v11220_v30  ;;  %v2571_v14 = vadd.f32 %v11222_v19, %v11221_v47  ;;  %v2929_v49 = vadd.f32 %v7374_v44, %v2579_v62  ;;  %v1543_v30 = vrot.slane %v1542_v23, 4  ;;  %v1571_v47 = vrot.slane %v1569_v41, 5  ;;  %v11224_v19 = vld [vmem:[#allocation24_spill] sm:$0xff] }
 0x14b   : > { %3281 = vst.msk [vmem:[%s9193_s28 + $0x60] sm:$0xff] %vm2143_vm1, %v3249_v52  ;;  %v3252_v21 = vadd.f32 %v9179_v17, %v3220_v31  ;;  %v3218_v0 = vadd.f32 %v3129_v32, %v2924_v53  ;;  %v2848_v42 = vpop.f32.mrf.mxu0  ;;  %v11225_v52 = vld [vmem:[#allocation61_spill] sm:$0xff]  ;;  %v1576_v23 = vrot.slane %v1574_v57, 4  ;;  %v1579_v44 = vrot.slane %v1577_v40, 5 }
 0x14c   : > { %7577 = vmatmul.mubr.msk.bf16.gmra.mxu0 %vm2143_vm1, %v11223_v39  ;;  %v2582_v9 = vadd.f32 %v11225_v52, %v11224_v19  ;;  %v2927_v62 = vadd.f32 %v2848_v42, %v2571_v14  ;;  %v9370_v32 = vrot.slane %v1583_v54, 5  ;;  %v1598_v41 = vshrl.u32 %v9352_v63, 16 }
 0x14d   : > { %3284 = vst.msk [vmem:[%s9193_s28 + $0x78] sm:$0xff] %vm2143_vm1, %v3252_v21  ;;  %v3250_v53 = vadd.f32 %v9179_v17, %v3218_v0  ;;  %v7375_v31 = vpop.f32.mrf.mxu0  ;;  %7580 = vmatprep.mubr.msk.bf16.mxu0 %vm2143_vm1, %v11188_v20  ;;  %v1601_v19 = vshll.u32 %v9352_v63, 16  ;;  %v11226_v21 = vld [vmem:[#allocation14_spill] sm:$0xff]  ;;  %v6453_v20 = vld [vmem:[%s8083_s27 + $0x38] sm:$0x1]  ;;  %v1589_v57 = vrot.slane %v1587_v5, 4  ;;  %v1538_v54 = vsel %vm8117_vm4, %v9328_v43, %v9294_v36 }
 0x14e   : > { %v7408_v12 = vpop.f32.mrf.mxu1  ;;  %v2574_v0 = vadd.f32 %v11226_v21, %v9097_v16  ;;  %v2930_v42 = vadd.f32 %v7375_v31, %v2582_v9  ;;  %v1548_v51 = vsel %vm8117_vm4, %v1543_v30, %v9341_v10  ;;  %v1607_v16 = vshll.u32 %v9368_v29, 16  ;;  %v11228_v9 = vld [vmem:[#allocation22_spill] sm:$0xff]  ;;  %v11229_v10 = vld [vmem:[#allocation27_spill] sm:$0xff] }
 0x14f   : > { %3282 = vst.msk [vmem:[%s9193_s28 + $0x68] sm:$0xff] %vm2143_vm1, %v3250_v53  ;;  %v3223_v14 = vadd.f32 %v7408_v12, %v2929_v49  ;;  %v2851_v52 = vpop.f32.mrf.mxu0  ;;  %v1611_v49 = vshrl.u32 %v9368_v29, 16  ;;  %v1562_v36 = vsel %vm8117_vm4, %v9356_v55, %v9308_v6  ;;  %v1572_v30 = vsel %vm8117_vm4, %v9358_v2, %v1571_v47  ;;  %v6454_v2 = vld [vmem:[%s8083_s27 + $0x44] sm:$0x1] }
 0x150   : > { %v3142_v39 = vpop.f32.mrf.mxu1  ;;  %v2928_v31 = vadd.f32 %v2851_v52, %v2574_v0  ;;  %v1580_v21 = vor.u32 %v1579_v44, %v1576_v23  ;;  %v1603_v52 = vrot.slane %v1601_v19, 5  ;;  %v9413_v47 = vrot.slane %v1607_v16, 5 }
 0x151   : > { %7611 = vmatmul.mubr.msk.bf16.gmra.mxu1 %vm2143_vm1, %v11228_v9  ;;  %v3255_v5 = vadd.f32 %v9179_v17, %v3223_v14  ;;  %v3221_v53 = vadd.f32 %v3142_v39, %v2927_v62  ;;  %v7378_v12 = vpop.f32.mrf.mxu0  ;;  %v1593_v9 = vshll.u32 %v6453_v20, 16  ;;  %v1600_v39 = vrot.slane %v1598_v41, 4  ;;  %v9401_v62 = vld [vmem:[%s8083_s27 + $0x48] sm:$0xf] }
 0x152   : > { %v7409_v43 = vpop.f32.mrf.mxu1  ;;  %7614 = vmatprep.mubr.msk.bf16.mxu1 %vm2143_vm1, %v11229_v10  ;;  %v1590_v14 = vor.u32 %v1589_v57, %v9370_v32  ;;  %v2933_v61 = vadd.f32 %v7378_v12, %v9105_v45  ;;  %v9410_v20 = vcombine.low %v1538_v54, %v1548_v51  ;;  %v1613_v23 = vrot.slane %v1611_v49, 4  ;;  %v9421_v45 = vld [vmem:[%s8083_s27 + $0x4c] sm:$0xf] }
 0x153   : > { %3287 = vst.msk [vmem:[%s9193_s28 + $0x90] sm:$0xff] %vm2143_vm1, %v3255_v5  ;;  %v3253_v0 = vadd.f32 %v9179_v17, %v3221_v53  ;;  %v3224_v55 = vadd.f32 %v7409_v43, %v2930_v42  ;;  %v2864_v6 = vpop.f32.mrf.mxu0  ;;  %v1622_v19 = vshrl.u32 %v9401_v62, 16  ;;  %v1625_v51 = vshll.u32 %v9401_v62, 16 }
 0x154   : > { %v3145_v10 = vpop.f32.mrf.mxu1  ;;  %7581 = vmatmul.mubr.msk.bf16.gmra.mxu0 %vm2143_vm1, %v11192_v28  ;;  %11230 = vst [vmem:[#allocation3_spill] sm:$0xff] %v9410_v20  ;;  %v2931_v57 = vadd.f32 %v2864_v6, %v9115_v35  ;;  %v9426_v54 = vcombine.low %v1562_v36, %v1572_v30  ;;  %v1581_v16 = vrot.slane %v1580_v21, 4  ;;  %v1595_v49 = vrot.slane %v1593_v9, 5  ;;  %v11232_v30 = vld [vmem:[#allocation29_spill] sm:$0xff] }
 0x155   : > { %3285 = vst.msk [vmem:[%s9193_s28 + $0x80] sm:$0xff] %vm2143_vm1, %v3253_v0  ;;  %v3256_v44 = vadd.f32 %v9179_v17, %v3224_v55  ;;  %v3222_v41 = vadd.f32 %v3145_v10, %v2928_v31  ;;  %v7379_v42 = vpop.f32.mrf.mxu0  ;;  %7584 = vmatprep.mubr.msk.bf16.mxu0 %vm2143_vm1, %v11194_v48  ;;  %v1591_v12 = vrot.slane %v1590_v14, 4  ;;  %v1604_v43 = vor.u32 %v1603_v52, %v1600_v39  ;;  %v11233_v52 = vld [vmem:[#allocation33_spill] sm:$0xff] }
 0x156   : > { %11231 = vst [vmem:[#allocation4_spill] sm:$0xff] %v9426_v54  ;;  %v1617_v0 = vshll.u32 %v6454_v2, 16  ;;  %v2934_v10 = vadd.f32 %v7379_v42, %v9123_v37  ;;  %v1614_v35 = vor.u32 %v1613_v23, %v9413_v47  ;;  %v1631_v36 = vshll.u32 %v9421_v45, 16 }
 0x157   : > { %3288 = vst.msk [vmem:[%s9193_s28 + $0x98] sm:$0xff] %vm2143_vm1, %v3256_v44  ;;  %v7412_v5 = vpop.f32.mrf.mxu1  ;;  %v3254_v53 = vadd.f32 %v9179_v17, %v3222_v41  ;;  %v2867_v31 = vpop.f32.mrf.mxu0  ;;  %v6798_v9 = vcombine.low %v9245_v4, %v9257_v27  ;;  %v1624_v39 = vrot.slane %v1622_v19, 4  ;;  %v1627_v6 = vrot.slane %v1625_v51, 5  ;;  %v9448_v44 = vld [vmem:[%s8083_s27 + $0x54] sm:$0xf] }
 0x158   : > { %v3227_v55 = vadd.f32 %v7412_v5, %v2933_v61  ;;  %v1635_v61 = vshrl.u32 %v9421_v45, 16  ;;  %v2932_v2 = vadd.f32 %v2867_v31, %v9131_v38  ;;  %v6799_v23 = vcombine.low %v9262_v26, %v9276_v59 }
 0x159   : > { %7615 = vmatmul.mubr.msk.bf16.gmra.mxu1 %vm2143_vm1, %v11232_v30  ;;  %3286 = vst.msk [vmem:[%s9193_s28 + $0x88] sm:$0xff] %vm2143_vm1, %v3254_v53  ;;  %v3158_v21 = vpop.f32.mrf.mxu1  ;;  %v1586_v19 = vsel %vm8117_vm4, %v1581_v16, %v9370_v32  ;;  %v1596_v51 = vsel %vm8117_vm4, %v1591_v12, %v1595_v49  ;;  %v1619_v5 = vrot.slane %v1617_v0, 5  ;;  %v1615_v31 = vrot.slane %v1614_v35, 4 }
 0x15a   : > { %v3259_v37 = vadd.f32 %v9179_v17, %v3227_v55  ;;  %v3225_v14 = vadd.f32 %v3158_v21, %v2931_v57  ;;  %7618 = vmatprep.mubr.msk.bf16.mxu1 %vm2143_vm1, %v11233_v52  ;;  %v7382_v42 = vpop.f32.mrf.mxu0  ;;  %v1605_v57 = vrot.slane %v1604_v43, 4  ;;  %v6455_v55 = vld [vmem:[%s8083_s27 + $0x50] sm:$0x1]  ;;  %v9461_v30 = vrot.slane %v1631_v36, 5  ;;  %v9466_v43 = vld [vmem:[%s8083_s27 + $0x58] sm:$0xf] }
 0x15b   : > { %v7413_v41 = vpop.f32.mrf.mxu1  ;;  %v1628_v49 = vor.u32 %v1627_v6, %v1624_v39  ;;  %v1637_v12 = vrot.slane %v1635_v61, 4  ;;  %v1646_v0 = vshrl.u32 %v9448_v44, 16  ;;  %v2937_v21 = vadd.f32 %v7382_v42, %v9137_v22 }
 0x15c   : > { %3291 = vst.msk [vmem:[%s9193_s28 + $0xb0] sm:$0xff] %vm2143_vm1, %v3259_v37  ;;  %v3257_v38 = vadd.f32 %v9179_v17, %v3225_v14  ;;  %v3228_v53 = vadd.f32 %v7413_v41, %v2934_v10  ;;  %7585 = vmatmul.mubr.msk.bf16.gmra.mxu0 %vm2143_vm1, %v8617_v46  ;;  %v2880_v16 = vpop.f32.mrf.mxu0  ;;  %v1649_v10 = vshll.u32 %v9448_v44, 16  ;;  %v9476_v37 = vsel %vm2192_vm0, %v9184_v25, 0 }
 0x15d   : > { %v3161_v32 = vpop.f32.mrf.mxu1  ;;  %7588 = vmatprep.mubr.msk.bf16.mxu0 %vm2143_vm1, %v8635_v58  ;;  %v9480_v6 = vsel %vm2192_vm0, %v9212_v60, 0  ;;  %v9482_v61 = vcombine.low %v1586_v19, %v1596_v51  ;;  %v1610_v14 = vsel %vm8117_vm4, %v1605_v57, %v9413_v47  ;;  %v1641_v52 = vshll.u32 %v6455_v55, 16  ;;  %v6456_v60 = vld [vmem:[%s8083_s27 + $0x5c] sm:$0x1]  ;;  %v11235_v19 = vld [vmem:[#allocation34_spill] sm:$0xff] }
 0x15e   : > { %3289 = vst.msk [vmem:[%s9193_s28 + $0xa0] sm:$0xff] %vm2143_vm1, %v3257_v38  ;;  %v3260_v35 = vadd.f32 %v9179_v17, %v3228_v53  ;;  %v3226_v36 = vadd.f32 %v3161_v32, %v2932_v2  ;;  %v7383_v39 = vpop.f32.mrf.mxu0  ;;  %v2935_v25 = vadd.f32 %v2880_v16, %v9141_v56  ;;  %v1620_v2 = vsel %vm8117_vm4, %v1615_v31, %v1619_v5  ;;  %v11236_v55 = vld [vmem:[#allocation37_spill] sm:$0xff]  ;;  %v9510_v16 = vld [vmem:[%s8083_s27 + $0x60] sm:$0xf] }
 0x15f   : > { %11234 = vst [vmem:[#allocation5_spill] sm:$0xff] %v9482_v61  ;;  %v1655_v41 = vshll.u32 %v9466_v43, 16  ;;  %v9497_v47 = vrot.slane %v1628_v49, 4  ;;  %v1638_v57 = vor.u32 %v1637_v12, %v9461_v30  ;;  %v1648_v38 = vrot.slane %v1646_v0, 4 }
 0x160   : > { %3292 = vst.msk [vmem:[%s9193_s28 + $0xb8] sm:$0xff] %vm2143_vm1, %v3260_v35  ;;  %v3258_v22 = vadd.f32 %v9179_v17, %v3226_v36  ;;  %v2883_v51 = vpop.f32.mrf.mxu0  ;;  %v1651_v53 = vrot.slane %v1649_v10, 5  ;;  %v2938_v5 = vadd.f32 %v7383_v39, %v9145_v33  ;;  %v6800_v31 = vcombine.low %v9319_v50, %v9326_v7 }
 0x161   : > { %v7416_v42 = vpop.f32.mrf.mxu1  ;;  %7619 = vmatmul.mubr.msk.bf16.gmra.mxu1 %vm2143_vm1, %v11235_v19  ;;  %v9512_v12 = vcombine.low %v1610_v14, %v1620_v2  ;;  %v9514_v0 = vrot.slane %v1641_v52, 5  ;;  %v1659_v10 = vshrl.u32 %v9466_v43, 16  ;;  %v1665_v35 = vshll.u32 %v6456_v60, 16 }
 0x162   : > { %3290 = vst.msk [vmem:[%s9193_s28 + $0xa8] sm:$0xff] %vm2143_vm1, %v3258_v22  ;;  %v3231_v56 = vadd.f32 %v7416_v42, %v2937_v21  ;;  %7622 = vmatprep.mubr.msk.bf16.mxu1 %vm2143_vm1, %v11236_v55  ;;  %v2936_v21 = vadd.f32 %v2883_v51, %v9147_v3  ;;  %v9521_v22 = vrot.slane %v1655_v41, 5  ;;  %v9524_v42 = vld [vmem:[%s8083_s27 + $0x64] sm:$0xf]  ;;  %v9534_v52 = vrot.slane %v1638_v57, 4 }
 0x163   : > { %v3174_v49 = vpop.f32.mrf.mxu1  ;;  %11237 = vst [vmem:[#allocation6_spill] sm:$0xff] %v9512_v12  ;;  %v1670_v2 = vshrl.u32 %v9510_v16, 16  ;;  %v1661_v51 = vrot.slane %v1659_v10, 4  ;;  %v9553_v10 = vld [vmem:[%s8083_s27 + $0x6c] sm:$0xf] }
 0x164   : > { %v3263_v36 = vadd.f32 %v9179_v17, %v3231_v56  ;;  %v3229_v33 = vadd.f32 %v3174_v49, %v2935_v25  ;;  %v7386_v39 = vpop.f32.mrf.mxu0  ;;  %7589 = vmatmul.mubr.msk.bf16.gmra.mxu0 %vm2143_vm1, %v8669_v24  ;;  %v1652_v25 = vor.u32 %v1651_v53, %v1648_v38  ;;  %v9542_v56 = vrot.slane %v1665_v35, 5 }
 0x165   : > { %v7417_v14 = vpop.f32.mrf.mxu1  ;;  %7628 = vmatprep.mubr.msk.bf16.mxu0 %vm2143_vm1, %v6798_v9  ;;  %v2941_v4 = vadd.f32 %v7386_v39, %v9153_v11  ;;  %v1673_v9 = vshll.u32 %v9510_v16, 16  ;;  %v1679_v38 = vshll.u32 %v9524_v42, 16  ;;  %v1683_v49 = vshrl.u32 %v9524_v42, 16 }
 0x166   : > { %3295 = vst.msk [vmem:[%s9193_s28 + $0xd0] sm:$0xff] %vm2143_vm1, %v3263_v36  ;;  %v3261_v60 = vadd.f32 %v9179_v17, %v3229_v33  ;;  %v3232_v41 = vadd.f32 %v7417_v14, %v2938_v5  ;;  %v2896_v27 = vpop.f32.mrf.mxu0  ;;  %v11238_v36 = vld [vmem:[#allocation38_spill] sm:$0xff]  ;;  %v9561_v39 = vrot.slane %v1652_v25, 4  ;;  %v9568_v14 = vld [vmem:[%s8083_s27 + $0x70] sm:$0xf]  ;;  %v1662_v57 = vor.u32 %v1661_v51, %v9521_v22 }
 0x167   : > { %v3177_v19 = vpop.f32.mrf.mxu1  ;;  %v2939_v11 = vadd.f32 %v2896_v27, %v9157_v34  ;;  %v9578_v34 = vld [vmem:[%s8083_s27 + $0x78] sm:$0xf]  ;;  %v9581_v3 = vrot.slane %v1679_v38, 5  ;;  %v1685_v38 = vrot.slane %v1683_v49, 4 }
 0x168   : > { %3293 = vst.msk [vmem:[%s9193_s28 + $0xc0] sm:$0xff] %vm2143_vm1, %v3261_v60  ;;  %v3264_v53 = vadd.f32 %v9179_v17, %v3232_v41  ;;  %v3230_v55 = vadd.f32 %v3177_v19, %v2936_v21  ;;  %v7387_v5 = vpop.f32.mrf.mxu0  ;;  %v9565_v21 = vrot.slane %v1670_v2, 4  ;;  %v6457_v19 = vld [vmem:[%s8083_s27 + $0x68] sm:$0x1]  ;;  %v1718_v26 = vshrl.u32 %v9578_v34, 16 }
 0x169   : > { %v7420_v35 = vpop.f32.mrf.mxu1  ;;  %7623 = vmatmul.mubr.msk.bf16.gmra.mxu1 %vm2143_vm1, %v11238_v36  ;;  %v2942_v27 = vadd.f32 %v7387_v5, %v9161_v1  ;;  %v1675_v36 = vrot.slane %v1673_v9, 5  ;;  %v1721_v59 = vshll.u32 %v9578_v34, 16  ;;  %v1689_v7 = vshll.u32 %v6457_v19, 16 }
 0x16a   : > { %3296 = vst.msk [vmem:[%s9193_s28 + $0xd8] sm:$0xff] %vm2143_vm1, %v3264_v53  ;;  %v3262_v60 = vadd.f32 %v9179_v17, %v3230_v55  ;;  %v3235_v41 = vadd.f32 %v7420_v35, %v2941_v4  ;;  %7662 = vmatprep.mubr.msk.bf16.mxu1 %vm2143_vm1, %v9410_v20  ;;  %v2899_v25 = vpop.f32.mrf.mxu0  ;;  %v1694_v53 = vshrl.u32 %v9553_v10, 16  ;;  %v1697_v4 = vshll.u32 %v9553_v10, 16  ;;  %v9588_v55 = vld [vmem:[%s11015_s1 + $0x1c] sm:$0x3] }
 0x16b   : > { %v3190_v2 = vpop.f32.mrf.mxu1  ;;  %v2940_v5 = vadd.f32 %v2899_v25, %v9165_v15  ;;  %v9601_v35 = vld [vmem:[%s8083_s27 + $0x7c] sm:$0xf]  ;;  %v1703_v15 = vshll.u32 %v9568_v14, 16  ;;  %v1676_v50 = vor.u32 %v1675_v36, %v9565_v21  ;;  %v1686_v19 = vor.u32 %v1685_v38, %v9581_v3  ;;  %v9646_v38 = vld [vmem:[%s8083_s27 + $0x88] sm:$0xf] }
 0x16c   : > { %3294 = vst.msk [vmem:[%s9193_s28 + $0xc8] sm:$0xff] %vm2143_vm1, %v3262_v60  ;;  %v3267_v1 = vadd.f32 %v9179_v17, %v3235_v41  ;;  %v3233_v9 = vadd.f32 %v3190_v2, %v2939_v11  ;;  %v9594_v51 = vpop.f32.mrf.mxu0  ;;  %7629 = vmatmul.mubr.msk.bf16.vlgmr.msra.gmra.mxu0 %vm2143_vm1, %v6799_v23  ;;  %v1707_v11 = vshrl.u32 %v9568_v14, 16  ;;  %v9620_v60 = vrot.slane %v1662_v57, 4  ;;  %v6458_v41 = vld [vmem:[%s8083_s27 + $0x74] sm:$0x1] }
 0x16d   : > { %v7421_v33 = vpop.f32.mrf.mxu1  ;;  %7695 = vmatpush3.bf16.msra.mxu0 %v9476_v37  ;;  %7632 = vmatprep.mubr.msk.bf16.mxu0 %vm2143_vm1, %v6800_v31  ;;  %v1696_v25 = vrot.slane %v1694_v53, 4  ;;  %v1727_v2 = vshll.u32 %v9601_v35, 16  ;;  %v1699_v36 = vrot.slane %v1697_v4, 5  ;;  %v9632_v57 = vld [vmem:[%s8083_s27 + $0x84] sm:$0xf] }
 0x16e   : > { %3299 = vst.msk [vmem:[%s9193_s28 + $0xf0] sm:$0xff] %vm2143_vm1, %v3267_v1  ;;  %v3265_v23 = vadd.f32 %v9179_v17, %v3233_v9  ;;  %v3236_v49 = vadd.f32 %v7421_v33, %v2942_v27  ;;  %v9615_v37 = vpop.f32.mrf.mxu0  ;;  %7844 = vmatprep.subr.msk.bf16.mxu0 %vm2192_vm0, %v9588_v55  ;;  %v1731_v1 = vshrl.u32 %v9601_v35, 16  ;;  %v9637_v53 = vld [vmem:[%s11015_s1 + $0x1e] sm:$0x3] }
 0x16f   : > { %v3193_v31 = vpop.f32.mrf.mxu1 }
 0x170   : > { %3297 = vst.msk [vmem:[%s9193_s28 + $0xe0] sm:$0xff] %vm2143_vm1, %v3265_v23  ;;  %v3268_v33 = vadd.f32 %v9179_v17, %v3236_v49  ;;  %v3234_v21 = vadd.f32 %v3193_v31, %v2940_v5  ;;  %v9628_v27 = vpop.f32.mrf.mxu0  ;;  %v9643_v23 = vrot.slane %v1703_v15, 5  ;;  %v1709_v5 = vrot.slane %v1707_v11, 4 }
 0x171   : > { %v9639_v9 = vpop.f32.mrf.mxu1  ;;  %7663 = vmatmul.mubr.msk.bf16.vlgmr.msra.gmra.mxu1 %vm2143_vm1, %v9426_v54  ;;  %v1720_v49 = vrot.slane %v1718_v26, 4  ;;  %v1723_v31 = vrot.slane %v1721_v59, 5  ;;  %v1677_v15 = vrot.slane %v1676_v50, 4  ;;  %v1691_v54 = vrot.slane %v1689_v7, 5 }
 0x172   : > { %3300 = vst.msk [vmem:[%s9193_s28 + $0xf8] sm:$0xff] %vm2143_vm1, %v3268_v33  ;;  %v3266_v4 = vadd.f32 %v9179_v17, %v3234_v21  ;;  %7729 = vmatpush3.bf16.msra.mxu1 %v9480_v6  ;;  %7666 = vmatprep.mubr.msk.bf16.mxu1 %vm2143_vm1, %v9482_v61  ;;  %v9654_v32 = vpop.f32.mrf.mxu0  ;;  %v1713_v11 = vshll.u32 %v6458_v41, 16  ;;  %v9658_v59 = vrot.slane %v1727_v2, 5  ;;  %v1733_v24 = vrot.slane %v1731_v1, 4  ;;  %v6459_v2 = vld [vmem:[%s8083_s27 + $0x80] sm:$0x1] }
 0x173   : > { %v9656_v26 = vpop.f32.mrf.mxu1  ;;  %v1742_v33 = vshrl.u32 %v9632_v57, 16  ;;  %v1745_v17 = vshll.u32 %v9632_v57, 16  ;;  %7845 = vmatprep.subr.msk.bf16.mxu1 %vm2192_vm0, %v9637_v53  ;;  %v11239_v50 = vcombine.low %v9352_v63, %v9368_v29  ;;  %v1687_v7 = vrot.slane %v1686_v19, 4 }
 0x174   : > { %3298 = vst.msk [vmem:[%s9193_s28 + $0xe8] sm:$0xff] %vm2143_vm1, %v3266_v4  ;;  %v9666_v6 = vpop.f32.mrf.mxu0  ;;  %v1700_v41 = vor.u32 %v1699_v36, %v1696_v25  ;;  %v1751_v1 = vshll.u32 %v9646_v38, 16  ;;  %v1755_v21 = vshrl.u32 %v9646_v38, 16  ;;  %v11240_v4 = vsel %vm8117_vm4, %v9534_v52, %v9514_v0 }
 0x175   : > { %7633 = vmatmul.mubr.msk.bf16.gmra.mxu0 %vm2143_vm1, %v11239_v50  ;;  %v9675_v61 = vpop.f32.mrf.mxu1  ;;  %v11241_v63 = vsel %vm8117_vm4, %v9497_v47, %v9461_v30  ;;  %v1658_v25 = vsel %vm8117_vm4, %v9561_v39, %v9521_v22  ;;  %v11243_v19 = vcombine.low %v9401_v62, %v9421_v45  ;;  %v1710_v0 = vor.u32 %v1709_v5, %v9643_v23  ;;  %v9712_v45 = vld [vmem:[%s8083_s27 + $0x90] sm:$0xf] }
 0x176   : > { %v9687_v29 = vcombine.low %v11241_v63, %v11240_v4  ;;  %v1724_v52 = vor.u32 %v1723_v31, %v1720_v49  ;;  %v9698_v36 = vpop.f32.mrf.mxu0  ;;  %v1668_v30 = vsel %vm8117_vm4, %v9620_v60, %v9542_v56  ;;  %v1682_v47 = vsel %vm8117_vm4, %v1677_v15, %v9581_v3  ;;  %v9718_v4 = vld [vmem:[%s8083_s27 + $0x94] sm:$0xf]  ;;  %v6460_v15 = vld [vmem:[%s8083_s27 + $0x8c] sm:$0x1] }
 0x177   : > { %7636 = vmatprep.mubr.msk.bf16.mxu0 %vm2143_vm1, %v11243_v19  ;;  %v9707_v22 = vrot.slane %v1713_v11, 5  ;;  %v6804_v62 = vcombine.low %v9510_v16, %v9524_v42  ;;  %v9714_v39 = vpop.f32.mrf.mxu1  ;;  %v1734_v5 = vor.u32 %v1733_v24, %v9658_v59  ;;  %v1737_v49 = vshll.u32 %v6459_v2, 16 }
 0x178   : > { %11242 = vst [vmem:[#allocation8_spill] sm:$0xff] %v9687_v29  ;;  %v1744_v31 = vrot.slane %v1742_v33, 4  ;;  %v1747_v50 = vrot.slane %v1745_v17, 5  ;;  %v9720_v56 = vpop.f32.mrf.mxu0  ;;  %v1692_v3 = vsel %vm8117_vm4, %v1687_v7, %v1691_v54  ;;  %v9724_v60 = vrot.slane %v1700_v41, 4 }
 0x179   : > { %v9727_v16 = vrot.slane %v1751_v1, 5  ;;  %v1757_v42 = vrot.slane %v1755_v21, 4  ;;  %v9729_v11 = vpop.f32.mrf.mxu1  ;;  %7667 = vmatmul.mubr.msk.bf16.gmra.mxu1 %vm2143_vm1, %v9512_v12  ;;  %v1711_v24 = vrot.slane %v1710_v0, 4  ;;  %v1725_v33 = vrot.slane %v1724_v52, 4  ;;  %v9746_v12 = vld [vmem:[%s8083_s27 + $0x9c] sm:$0xf] }
 0x17a   : > { %v1766_v17 = vshrl.u32 %v9712_v45, 16  ;;  %v1769_v2 = vshll.u32 %v9712_v45, 16  ;;  %7670 = vmatprep.mubr.msk.bf16.mxu1 %vm2143_vm1, %v9687_v29  ;;  %v9737_v54 = vcombine.low %v1658_v25, %v1668_v30  ;;  %v9739_v7 = vpop.f32.mrf.mxu0  ;;  %v1775_v41 = vshll.u32 %v9718_v4, 16 }
 0x17b   : > { %v1779_v1 = vshrl.u32 %v9718_v4, 16  ;;  %v9743_v21 = vpop.f32.mrf.mxu1  ;;  %v1735_v63 = vrot.slane %v1734_v5, 4  ;;  %v1739_v19 = vrot.slane %v1737_v49, 5  ;;  %v1748_v0 = vor.u32 %v1747_v50, %v1744_v31  ;;  %v9764_v50 = vld [vmem:[%s8083_s27 + $0xa0] sm:$0xf] }
 0x17c   : > { %11244 = vst [vmem:[#allocation56_spill] sm:$0xff] %v9737_v54  ;;  %v1761_v52 = vshll.u32 %v6460_v15, 16  ;;  %v9748_v29 = vpop.f32.mrf.mxu0  ;;  %v11246_v25 = vcombine.low %v9448_v44, %v9466_v43  ;;  %v9754_v30 = vcombine.low %v1682_v47, %v1692_v3  ;;  %v1706_v5 = vsel %vm8117_vm4, %v9724_v60, %v9643_v23  ;;  %v6461_v23 = vld [vmem:[%s8083_s27 + $0x98] sm:$0x1] }
 0x17d   : > { %11245 = vst [vmem:[#allocation48_spill] sm:$0xff] %v9748_v29  ;;  %v6805_v49 = vcombine.low %v9553_v10, %v9568_v14  ;;  %v1758_v31 = vor.u32 %v1757_v42, %v9727_v16  ;;  %v9766_v15 = vpop.f32.mrf.mxu1  ;;  %v1716_v44 = vsel %vm8117_vm4, %v1711_v24, %v9707_v22  ;;  %v1730_v43 = vsel %vm8117_vm4, %v1725_v33, %v9658_v59  ;;  %v9777_v14 = vld [vmem:[%s8083_s27 + $0xa8] sm:$0xf]  ;;  %v9786_v24 = vld [vmem:[%s8083_s27 + $0xac] sm:$0xf] }
 0x17e   : > { %7637 = vmatmul.mubr.msk.bf16.gmra.mxu0 %vm2143_vm1, %v11246_v25  ;;  %11247 = vst [vmem:[#allocation59_spill] sm:$0xff] %v9754_v30  ;;  %v1768_v47 = vrot.slane %v1766_v17, 4  ;;  %v1771_v10 = vrot.slane %v1769_v2, 5  ;;  %v9779_v3 = vpop.f32.mrf.mxu0  ;;  %v9781_v60 = vrot.slane %v1775_v41, 5  ;;  %v1781_v42 = vrot.slane %v1779_v1, 4 }
 0x17f   : > { %7640 = vmatprep.mubr.msk.bf16.mxu0 %vm2143_vm1, %v6804_v62  ;;  %11248 = vst [vmem:[#allocation49_spill] sm:$0xff] %v9779_v3  ;;  %v1790_v25 = vshrl.u32 %v9746_v12, 16  ;;  %v1793_v22 = vshll.u32 %v9746_v12, 16  ;;  %v9788_v62 = vpop.f32.mrf.mxu1  ;;  %v1740_v59 = vsel %vm8117_vm4, %v1735_v63, %v1739_v19  ;;  %v1749_v33 = vrot.slane %v1748_v0, 4 }
 0x180   : > { %v1763_v17 = vrot.slane %v1761_v52, 5  ;;  %v6806_v2 = vcombine.low %v9578_v34, %v9601_v35  ;;  %v9794_v20 = vpop.f32.mrf.mxu0  ;;  %v1759_v41 = vrot.slane %v1758_v31, 4  ;;  %v1785_v1 = vshll.u32 %v6461_v23, 16 }
 0x181   : > { %11249 = vst [vmem:[#allocation9_spill] sm:$0xff] %v9794_v20  ;;  %v1799_v58 = vshll.u32 %v9764_v50, 16  ;;  %v1803_v46 = vshrl.u32 %v9764_v50, 16  ;;  %v9798_v48 = vpop.f32.mrf.mxu1  ;;  %7671 = vmatmul.mubr.msk.bf16.gmra.mxu1 %vm2143_vm1, %v9737_v54  ;;  %v1814_v63 = vshrl.u32 %v9777_v14, 16  ;;  %v1817_v19 = vshll.u32 %v9777_v14, 16 }
 0x182   : > { %11250 = vst [vmem:[#allocation62_spill] sm:$0xff] %v9798_v48  ;;  %v1823_v34 = vshll.u32 %v9786_v24, 16  ;;  %v1827_v35 = vshrl.u32 %v9786_v24, 16  ;;  %7674 = vmatprep.mubr.msk.bf16.mxu1 %vm2143_vm1, %v9754_v30  ;;  %v9808_v0 = vpop.f32.mrf.mxu0  ;;  %v1772_v52 = vor.u32 %v1771_v10, %v1768_v47  ;;  %v1782_v31 = vor.u32 %v1781_v42, %v9781_v60  ;;  %v6462_v30 = vld [vmem:[%s8083_s27 + $0xa4] sm:$0x1] }
 0x183   : > { %11251 = vst [vmem:[#allocation50_spill] sm:$0xff] %v9808_v0  ;;  %v1792_v23 = vrot.slane %v1790_v25, 4  ;;  %v1795_v54 = vrot.slane %v1793_v22, 5  ;;  %v9811_v28 = vpop.f32.mrf.mxu1  ;;  %v9813_v20 = vcombine.low %v1706_v5, %v1716_v44  ;;  %v9815_v3 = vcombine.low %v1730_v43, %v1740_v59  ;;  %v9829_v44 = vld [vmem:[%s8083_s27 + $0xb4] sm:$0xf] }
 0x184   : > { %v1754_v48 = vsel %vm8117_vm4, %v1749_v33, %v9727_v16  ;;  %v9821_v29 = vpop.f32.mrf.mxu0  ;;  %v1764_v47 = vsel %vm8117_vm4, %v1759_v41, %v1763_v17  ;;  %v1787_v10 = vrot.slane %v1785_v1, 5  ;;  %v9826_v42 = vrot.slane %v1799_v58, 5  ;;  %v6463_v16 = vld [vmem:[%s8083_s27 + $0xb0] sm:$0x1]  ;;  %v9840_v1 = vld [vmem:[%s8083_s27 + $0xb8] sm:$0xf] }
 0x185   : > { %11252 = vst [vmem:[#allocation12_spill] sm:$0xff] %v9813_v20  ;;  %11253 = vst [vmem:[#allocation63_spill] sm:$0xff] %v9815_v3  ;;  %v1805_v5 = vrot.slane %v1803_v46, 4  ;;  %v9831_v43 = vpop.f32.mrf.mxu1  ;;  %v1816_v25 = vrot.slane %v1814_v63, 4  ;;  %v1819_v22 = vrot.slane %v1817_v19, 5  ;;  %v9835_v59 = vrot.slane %v1823_v34, 5 }
 0x186   : > { %11254 = vst [vmem:[#allocation52_spill] sm:$0xff] %v9821_v29  ;;  %7641 = vmatmul.mubr.msk.bf16.gmra.mxu0 %vm2143_vm1, %v6805_v49  ;;  %11255 = vst [vmem:[#allocation16_spill] sm:$0xff] %v9831_v43  ;;  %v1829_v49 = vrot.slane %v1827_v35, 4  ;;  %v9837_v33 = vpop.f32.mrf.mxu0  ;;  %v1773_v17 = vrot.slane %v1772_v52, 4  ;;  %v1783_v58 = vrot.slane %v1782_v31, 4  ;;  %v1796_v41 = vor.u32 %v1795_v54, %v1792_v23 }
 0x187   : > { %7644 = vmatprep.mubr.msk.bf16.mxu0 %vm2143_vm1, %v6806_v2  ;;  %11256 = vst [vmem:[#allocation54_spill] sm:$0xff] %v9837_v33  ;;  %v1809_v46 = vshll.u32 %v6462_v30, 16  ;;  %v9842_v29 = vpop.f32.mrf.mxu1  ;;  %v9844_v0 = vcombine.low %v1754_v48, %v1764_v47  ;;  %v6807_v2 = vcombine.low %v9632_v57, %v9646_v38  ;;  %v6808_v63 = vcombine.low %v9712_v45, %v9718_v4  ;;  %v9851_v19 = vld [vmem:[%s8083_s27 + $0xc0] sm:$0xf]  ;;  %v9859_v31 = vld [vmem:[%s8083_s27 + $0xc4] sm:$0xf] }
 0x188   : > { %11257 = vst [vmem:[#allocation64_spill] sm:$0xff] %v9842_v29  ;;  %v9853_v34 = vpop.f32.mrf.mxu0  ;;  %v1806_v35 = vor.u32 %v1805_v5, %v9826_v42  ;;  %v1833_v54 = vshll.u32 %v6463_v16, 16  ;;  %v1838_v30 = vshrl.u32 %v9829_v44, 16  ;;  %v1841_v52 = vshll.u32 %v9829_v44, 16  ;;  %v6464_v33 = vld [vmem:[%s8083_s27 + $0xbc] sm:$0x1] }
 0x189   : > { %11258 = vst [vmem:[#allocation55_spill] sm:$0xff] %v9844_v0  ;;  %11259 = vst [vmem:[#allocation13_spill] sm:$0xff] %v9853_v34  ;;  %v9861_v48 = vpop.f32.mrf.mxu1  ;;  %7675 = vmatmul.mubr.msk.bf16.gmra.mxu1 %vm2143_vm1, %v9813_v20  ;;  %v1820_v57 = vor.u32 %v1819_v22, %v1816_v25  ;;  %v1830_v38 = vor.u32 %v1829_v49, %v9835_v59  ;;  %v1847_v45 = vshll.u32 %v9840_v1, 16  ;;  %v1851_v4 = vshrl.u32 %v9840_v1, 16 }
 0x18a   : > { %11260 = vst [vmem:[#allocation19_spill] sm:$0xff] %v9861_v48  ;;  %7678 = vmatprep.mubr.msk.bf16.mxu1 %vm2143_vm1, %v9815_v3  ;;  %v9870_v23 = vpop.f32.mrf.mxu0  ;;  %v1778_v47 = vsel %vm8117_vm4, %v1773_v17, %v9781_v60  ;;  %v1788_v5 = vsel %vm8117_vm4, %v1783_v58, %v1787_v10  ;;  %v1797_v16 = vrot.slane %v1796_v41, 4  ;;  %v1811_v25 = vrot.slane %v1809_v46, 5 }
 0x18b   : > { %11261 = vst [vmem:[#allocation21_spill] sm:$0xff] %v9870_v23  ;;  %v9877_v22 = vpop.f32.mrf.mxu1  ;;  %v1862_v49 = vshrl.u32 %v9851_v19, 16  ;;  %v1865_v20 = vshll.u32 %v9851_v19, 16  ;;  %v1871_v3 = vshll.u32 %v9859_v31, 16  ;;  %v1875_v23 = vshrl.u32 %v9859_v31, 16 }
 0x18c   : > { %11262 = vst [vmem:[#allocation57_spill] sm:$0xff] %v9877_v22  ;;  %v9883_v34 = vpop.f32.mrf.mxu0  ;;  %v1807_v60 = vrot.slane %v1806_v35, 4  ;;  %v1835_v10 = vrot.slane %v1833_v54, 5  ;;  %v1840_v17 = vrot.slane %v1838_v30, 4  ;;  %v1843_v58 = vrot.slane %v1841_v52, 5 }
 0x18d   : > { %11263 = vst [vmem:[#allocation24_spill] sm:$0xff] %v9883_v34  ;;  %v9886_v41 = vpop.f32.mrf.mxu1  ;;  %v1821_v46 = vrot.slane %v1820_v57, 4  ;;  %v1831_v22 = vrot.slane %v1830_v38, 4  ;;  %v9890_v48 = vrot.slane %v1847_v45, 5  ;;  %v1853_v29 = vrot.slane %v1851_v4, 4 }
 0x18e   : > { %7645 = vmatmul.mubr.msk.bf16.gmra.mxu0 %vm2143_vm1, %v6807_v2  ;;  %v9892_v34 = vpop.f32.mrf.mxu0  ;;  %v9894_v43 = vcombine.low %v1778_v47, %v1788_v5  ;;  %v6809_v2 = vcombine.low %v9746_v12, %v9764_v50  ;;  %v9899_v35 = vld [vmem:[%s8083_s27 + $0xcc] sm:$0xf]  ;;  %v1864_v30 = vrot.slane %v1862_v49, 4  ;;  %v9903_v52 = vrot.slane %v1871_v3, 5  ;;  %v9906_v38 = vld [vmem:[%s8083_s27 + $0xd0] sm:$0xf] }
 0x18f   : > { %7648 = vmatprep.mubr.msk.bf16.mxu0 %vm2143_vm1, %v6808_v63  ;;  %11264 = vst [vmem:[#allocation61_spill] sm:$0xff] %v9892_v34  ;;  %v9901_v54 = vpop.f32.mrf.mxu1  ;;  %v1867_v63 = vrot.slane %v1865_v20, 5  ;;  %v1877_v57 = vrot.slane %v1875_v23, 4  ;;  %v1802_v4 = vsel %vm8117_vm4, %v1797_v16, %v9826_v42  ;;  %v1812_v12 = vsel %vm8117_vm4, %v1807_v60, %v1811_v25  ;;  %v6465_v5 = vld [vmem:[%s8083_s27 + $0xc8] sm:$0x1] }
 0x190   : > { %11265 = vst [vmem:[#allocation14_spill] sm:$0xff] %v9894_v43  ;;  %v9908_v45 = vpop.f32.mrf.mxu0  ;;  %v1844_v50 = vor.u32 %v1843_v58, %v1840_v17  ;;  %v1857_v47 = vshll.u32 %v6464_v33, 16  ;;  %v1826_v20 = vsel %vm8117_vm4, %v1821_v46, %v9835_v59  ;;  %v1836_v3 = vsel %vm8117_vm4, %v1831_v22, %v1835_v10 }
 0x191   : > { %11266 = vst [vmem:[#allocation2_spill] sm:$0xff] %v9908_v45  ;;  %v9916_v34 = vpop.f32.mrf.mxu1  ;;  %7679 = vmatmul.mubr.msk.bf16.gmra.mxu1 %vm2143_vm1, %v9844_v0  ;;  %v1854_v42 = vor.u32 %v1853_v29, %v9890_v48  ;;  %v6810_v23 = vcombine.low %v9777_v14, %v9786_v24  ;;  %v1886_v16 = vshrl.u32 %v9899_v35, 16  ;;  %v1889_v25 = vshll.u32 %v9899_v35, 16  ;;  %v9954_v45 = vld [vmem:[%s8083_s27 + $0xd4] sm:$0x1] }
 0x192   : > { %7682 = vmatprep.mubr.msk.bf16.mxu1 %vm2143_vm1, %v9894_v43  ;;  %v9930_v33 = vpop.f32.mrf.mxu0  ;;  %v1895_v49 = vshll.u32 %v9906_v38, 16  ;;  %v1899_v59 = vshrl.u32 %v9906_v38, 16  ;;  %v1868_v22 = vor.u32 %v1867_v63, %v1864_v30  ;;  %v1878_v29 = vor.u32 %v1877_v57, %v9903_v52 }
 0x193   : > { %11267 = vst [vmem:[#allocation22_spill] sm:$0xff] %v9930_v33  ;;  %v9936_v60 = vpop.f32.mrf.mxu1  ;;  %v1881_v10 = vshll.u32 %v6465_v5, 16  ;;  %v9939_v14 = vcombine.low %v1802_v4, %v1812_v12  ;;  %v9946_v58 = vcombine.low %v1826_v20, %v1836_v3  ;;  %v1845_v46 = vrot.slane %v1844_v50, 4 }
 0x194   : > { %v9941_v24 = vpop.f32.mrf.mxu0  ;;  %v1855_v43 = vrot.slane %v1854_v42, 4  ;;  %v1859_v0 = vrot.slane %v1857_v47, 5  ;;  %v1888_v63 = vrot.slane %v1886_v16, 4  ;;  %v1891_v57 = vrot.slane %v1889_v25, 5 }
 0x195   : > { %11268 = vst [vmem:[#allocation27_spill] sm:$0xff] %v9941_v24  ;;  %v9944_v17 = vpop.f32.mrf.mxu1  ;;  %v1897_v4 = vrot.slane %v1895_v49, 5  ;;  %v1901_v12 = vrot.slane %v1899_v59, 4  ;;  %v1869_v24 = vrot.slane %v1868_v22, 4  ;;  %v1883_v33 = vrot.slane %v1881_v10, 5 }
 0x196   : > { %7649 = vmatmul.mubr.msk.bf16.gmra.mxu0 %vm2143_vm1, %v6809_v2  ;;  %v9949_v30 = vpop.f32.mrf.mxu0  ;;  %v1879_v2 = vrot.slane %v1878_v29, 4  ;;  %v6811_v50 = vcombine.low %v9829_v44, %v9840_v1  ;;  %v1850_v3 = vsel %vm8117_vm4, %v1845_v46, %v9890_v48  ;;  %v6812_v42 = vcombine.low %v9851_v19, %v9859_v31 }
 0x197   : > { %7652 = vmatprep.mubr.msk.bf16.mxu0 %vm2143_vm1, %v6810_v23  ;;  %v9951_v5 = vpop.f32.mrf.mxu1  ;;  %v1860_v23 = vsel %vm8117_vm4, %v1855_v43, %v1859_v0  ;;  %v1892_v44 = vor.u32 %v1891_v57, %v1888_v63  ;;  %v1902_v1 = vor.u32 %v1901_v12, %v1897_v4  ;;  %v1905_v25 = vshll.u32 %v9954_v45, 16 }
 0x198   : > { %v9956_v20 = vpop.f32.mrf.mxu0  ;;  %v1874_v48 = vsel %vm8117_vm4, %v1869_v24, %v9903_v52  ;;  %v1884_v19 = vsel %vm8117_vm4, %v1879_v2, %v1883_v33  ;;  %v9988_v43 = vcombine.low %v1850_v3, %v1860_v23  ;;  %v6813_v46 = vcombine.low %v9899_v35, %v9906_v38 }
 0x199   : > { %v9960_v47 = vpop.f32.mrf.mxu1  ;;  %7683 = vmatmul.mubr.msk.bf16.gmra.mxu1 %vm2143_vm1, %v9939_v14  ;;  %v9993_v22 = vcombine.low %v1874_v48, %v1884_v19  ;;  %v1893_v29 = vrot.slane %v1892_v44, 4  ;;  %v1903_v10 = vrot.slane %v1902_v1, 4  ;;  %v1907_v52 = vrot.slane %v1905_v25, 5 }
 0x19a   : > { %7686 = vmatprep.mubr.msk.bf16.mxu1 %vm2143_vm1, %v9946_v58  ;;  %v9973_v16 = vpop.f32.mrf.mxu0  ;;  %v5622_v25 = vsel %vm2192_vm0, %v9588_v55, 0  ;;  %v3611_v19 = vadd.f32 %v9639_v9, %v9594_v51  ;;  %v5916_v51 = vsel %vm2192_vm0, %v9637_v53, 0  ;;  %v3614_v9 = vadd.f32 %v9675_v61, %v9628_v27  ;;  %v10069_v27 = vld [vmem:[%s11016_s2] ss:$0 sm:$0xff] }
 0x19b   : > { %v9976_v49 = vpop.f32.mrf.mxu1  ;;  %v1898_v57 = vsel %vm8117_vm4, %v1893_v29, %v1897_v4  ;;  %v1908_v12 = vsel %vm8117_vm4, %v1903_v10, %v1907_v52  ;;  %v11271_v10 = vld [vmem:[#allocation46_spill] sm:$0xff]  ;;  %v3627_v61 = vadd.f32 %v9729_v11, %v9666_v6  ;;  %v3619_v6 = vadd.f32 %v9743_v21, %v9698_v36 }
 0x19c   : > { %v9983_v31 = vpop.f32.mrf.mxu0  ;;  %v10020_v38 = vcombine.low %v1898_v57, %v1908_v12 }
 0x19d   : > { %v9986_v0 = vpop.f32.mrf.mxu1 }
 0x19e   : > { %7653 = vmatmul.mubr.msk.bf16.gmra.mxu0 %vm2143_vm1, %v6811_v50  ;;  %v9991_v59 = vpop.f32.mrf.mxu0  ;;  %11269 = vst [vmem:[#allocation29_spill] sm:$0xff] %v10020_v38 }
 0x19f   : > { %7656 = vmatprep.mubr.msk.bf16.mxu0 %vm2143_vm1, %v6812_v42  ;;  %v9995_v24 = vpop.f32.mrf.mxu1  ;;  %v11270_v42 = vld [vmem:[#allocation45_spill] sm:$0xff] }
 0x1a0   : > { %v9997_v33 = vpop.f32.mrf.mxu0 }
 0x1a1   : > { %v10001_v63 = vpop.f32.mrf.mxu1  ;;  %7687 = vmatmul.mubr.msk.bf16.gmra.mxu1 %vm2143_vm1, %v9988_v43 }
 0x1a2   : > { %7690 = vmatprep.mubr.msk.bf16.mxu1 %vm2143_vm1, %v9993_v22  ;;  %v10011_v2 = vpop.f32.mrf.mxu0 }
 0x1a3   : > { %v10013_v50 = vpop.f32.mrf.mxu1 }
 0x1a4   : > { %v10015_v3 = vpop.f32.mrf.mxu0 }
 0x1a5   : > { %v10018_v35 = vpop.f32.mrf.mxu1 }
 0x1a6   : > { %7657 = vmatmul.mubr.msk.bf16.gmra.mxu0 %vm2143_vm1, %v6813_v46  ;;  %v10024_v23 = vpop.f32.mrf.mxu0  ;;  %v11272_v46 = vld [vmem:[#allocation47_spill] sm:$0xff] }
 0x1a7   : > { %7696 = vmatprep.mubr.msk.bf16.mxu0 %vm2143_vm1, %v11270_v42  ;;  %v10026_v4 = vpop.f32.mrf.mxu1 }
 0x1a8   : > { %v10028_v40 = vpop.f32.mrf.mxu0 }
 0x1a9   : > { %v10030_v44 = vpop.f32.mrf.mxu1  ;;  %7691 = vmatmul.mubr.msk.bf16.gmra.mxu1 %vm2143_vm1, %v10020_v38 }
 0x1aa   : > { %7730 = vmatprep.mubr.msk.bf16.mxu1 %vm2143_vm1, %v8336_v13  ;;  %v10036_v1 = vpop.f32.mrf.mxu0  ;;  %v3603_v13 = vadd.f32 %v9656_v26, %v9615_v37 }
 0x1ab   : > { %v10040_v48 = vpop.f32.mrf.mxu1 }
 0x1ac   : > { %v7494_v29 = vpop.f32.mrf.mxu0 }
 0x1ad   : > { %v10046_v52 = vpop.f32.mrf.mxu1  ;;  %v3897_v57 = vadd.f32 %v7494_v29, %v3611_v19  ;;  %v11273_v29 = vld [vmem:[#allocation51_spill] sm:$0xff] }
 0x1ae   : > { %7697 = vmatmul.mubr.msk.bf16.vlgmr.msra.gmra.mxu0 %vm2143_vm1, %v11271_v10  ;;  %v3768_v55 = vpop.f32.mrf.mxu0 }
 0x1af   : > { %7763 = vmatpush3.bf16.msra.mxu0 %v5622_v25  ;;  %7700 = vmatprep.mubr.msk.bf16.mxu0 %vm2143_vm1, %v11272_v46  ;;  %v10052_v12 = vpop.f32.mrf.mxu1  ;;  %v3895_v42 = vadd.f32 %v3768_v55, %v3603_v13  ;;  %v3606_v25 = vadd.f32 %v9714_v39, %v9654_v32  ;;  %v11274_v46 = vld [vmem:[#allocation53_spill] sm:$0xff] }
 0x1b0   : > { %v7495_v10 = vpop.f32.mrf.mxu0 }
 0x1b1   : > { %v7528_v38 = vpop.f32.mrf.mxu1  ;;  %7731 = vmatmul.mubr.msk.bf16.vlgmr.msra.gmra.mxu1 %vm2143_vm1, %v8352_v18  ;;  %v3898_v26 = vadd.f32 %v7495_v10, %v3614_v9  ;;  %v3630_v9 = vadd.f32 %v9766_v15, %v9720_v56  ;;  %v11276_v15 = vld [vmem:[#allocation10_spill] sm:$0xff] }
 0x1b2   : > { %v4191_v37 = vadd.f32 %v7528_v38, %v3897_v57  ;;  %7797 = vmatpush3.bf16.msra.mxu1 %v5916_v51  ;;  %7734 = vmatprep.mubr.msk.bf16.mxu1 %vm2143_vm1, %v8378_v8  ;;  %v3771_v53 = vpop.f32.mrf.mxu0 }
 0x1b3   : > { %v4062_v19 = vpop.f32.mrf.mxu1  ;;  %v3896_v39 = vadd.f32 %v3771_v53, %v3606_v25 }
 0x1b4   : > { %v4223_v18 = vadd.f32 %v10069_v27, %v4191_v37  ;;  %v4189_v32 = vadd.f32 %v4062_v19, %v3895_v42  ;;  %v7498_v38 = vpop.f32.mrf.mxu0  ;;  %v11275_v37 = vld [vmem:[#allocation7_spill] sm:$0xff] }
 0x1b5   : > { %v7529_v8 = vpop.f32.mrf.mxu1  ;;  %v3901_v57 = vadd.f32 %v7498_v38, %v3627_v61 }
 0x1b6   : > { %7701 = vmatmul.mubr.msk.bf16.gmra.mxu0 %vm2143_vm1, %v11273_v29  ;;  %6733 = vst.msk [vmem:[%s9193_s28 + $0x110] sm:$0xff] %vm2143_vm1, %v4223_v18  ;;  %v4221_v11 = vadd.f32 %v10069_v27, %v4189_v32  ;;  %v4192_v13 = vadd.f32 %v7529_v8, %v3898_v26  ;;  %v3784_v55 = vpop.f32.mrf.mxu0  ;;  %v3622_v26 = vadd.f32 %v9788_v62, %v9739_v7  ;;  %v11277_v32 = vld [vmem:[#allocation48_spill] sm:$0xff] }
 0x1b7   : > { %7704 = vmatprep.mubr.msk.bf16.mxu0 %vm2143_vm1, %v11274_v46  ;;  %v4065_v51 = vpop.f32.mrf.mxu1  ;;  %v3899_v25 = vadd.f32 %v3784_v55, %v3619_v6  ;;  %v11279_v46 = vld [vmem:[#allocation58_spill] sm:$0xff] }
 0x1b8   : > { %6731 = vst.msk [vmem:[%s9193_s28 + $0x100] sm:$0xff] %vm2143_vm1, %v4221_v11  ;;  %v4224_v42 = vadd.f32 %v10069_v27, %v4192_v13  ;;  %v4190_v10 = vadd.f32 %v4065_v51, %v3896_v39  ;;  %v7499_v36 = vpop.f32.mrf.mxu0  ;;  %v11278_v39 = vld [vmem:[#allocation62_spill] sm:$0xff]  ;;  %v11280_v11 = vld [vmem:[#allocation60_spill] sm:$0xff]  ;;  %v11281_v13 = vld [vmem:[#allocation49_spill] sm:$0xff] }
 0x1b9   : > { %v7532_v21 = vpop.f32.mrf.mxu1  ;;  %7735 = vmatmul.mubr.msk.bf16.gmra.mxu1 %vm2143_vm1, %v11275_v37  ;;  %v3902_v19 = vadd.f32 %v7499_v36, %v3630_v9  ;;  %v3643_v38 = vadd.f32 %v11278_v39, %v11277_v32  ;;  %v11283_v36 = vld [vmem:[#allocation16_spill] sm:$0xff] }
 0x1ba   : > { %6734 = vst.msk [vmem:[%s9193_s28 + $0x118] sm:$0xff] %vm2143_vm1, %v4224_v42  ;;  %v4222_v53 = vadd.f32 %v10069_v27, %v4190_v10  ;;  %v4195_v56 = vadd.f32 %v7532_v21, %v3901_v57  ;;  %7738 = vmatprep.mubr.msk.bf16.mxu1 %vm2143_vm1, %v11276_v15  ;;  %v3787_v61 = vpop.f32.mrf.mxu0  ;;  %v3635_v57 = vadd.f32 %v9811_v28, %v11281_v13  ;;  %v11284_v15 = vld [vmem:[#allocation11_spill] sm:$0xff] }
 0x1bb   : > { %v4078_v18 = vpop.f32.mrf.mxu1  ;;  %v3900_v29 = vadd.f32 %v3787_v61, %v3622_v26  ;;  %v11285_v61 = vld [vmem:[#allocation50_spill] sm:$0xff] }
 0x1bc   : > { %6732 = vst.msk [vmem:[%s9193_s28 + $0x108] sm:$0xff] %vm2143_vm1, %v4222_v53  ;;  %v4227_v7 = vadd.f32 %v10069_v27, %v4195_v56  ;;  %v4193_v62 = vadd.f32 %v4078_v18, %v3899_v25  ;;  %v7502_v8 = vpop.f32.mrf.mxu0  ;;  %v11282_v25 = vld [vmem:[#allocation9_spill] sm:$0xff] }
 0x1bd   : > { %v7533_v6 = vpop.f32.mrf.mxu1  ;;  %v3905_v9 = vadd.f32 %v7502_v8, %v3643_v38  ;;  %v3646_v21 = vadd.f32 %v11283_v36, %v11282_v25  ;;  %v11287_v38 = vld [vmem:[#allocation15_spill] sm:$0xff]  ;;  %v11288_v8 = vld [vmem:[#allocation52_spill] sm:$0xff]  ;;  %v11293_v25 = vld [vmem:[#allocation57_spill] sm:$0xff] }
 0x1be   : > { %7705 = vmatmul.mubr.msk.bf16.gmra.mxu0 %vm2143_vm1, %v11279_v46  ;;  %6737 = vst.msk [vmem:[%s9193_s28 + $0x130] sm:$0xff] %vm2143_vm1, %v4227_v7  ;;  %v4225_v55 = vadd.f32 %v10069_v27, %v4193_v62  ;;  %v4196_v51 = vadd.f32 %v7533_v6, %v3902_v19  ;;  %v3800_v42 = vpop.f32.mrf.mxu0  ;;  %v11286_v19 = vld [vmem:[#allocation64_spill] sm:$0xff]  ;;  %v11289_v46 = vld [vmem:[#allocation19_spill] sm:$0xff] }
 0x1bf   : > { %7708 = vmatprep.mubr.msk.bf16.mxu0 %vm2143_vm1, %v11280_v11  ;;  %v4081_v10 = vpop.f32.mrf.mxu1  ;;  %v3903_v53 = vadd.f32 %v3800_v42, %v3635_v57  ;;  %v3638_v18 = vadd.f32 %v11286_v19, %v11285_v61  ;;  %v3659_v6 = vadd.f32 %v11289_v46, %v11288_v8  ;;  %v11291_v42 = vld [vmem:[#allocation17_spill] sm:$0xff]  ;;  %v11297_v8 = vld [vmem:[#allocation23_spill] sm:$0xff] }
 0x1c0   : > { %6735 = vst.msk [vmem:[%s9193_s28 + $0x120] sm:$0xff] %vm2143_vm1, %v4225_v55  ;;  %v4228_v37 = vadd.f32 %v10069_v27, %v4196_v51  ;;  %v4194_v26 = vadd.f32 %v4081_v10, %v3900_v29  ;;  %v7503_v28 = vpop.f32.mrf.mxu0  ;;  %v11290_v51 = vld [vmem:[#allocation20_spill] sm:$0xff]  ;;  %v11292_v10 = vld [vmem:[#allocation54_spill] sm:$0xff] }
 0x1c1   : > { %v7536_v56 = vpop.f32.mrf.mxu1  ;;  %7739 = vmatmul.mubr.msk.bf16.gmra.mxu1 %vm2143_vm1, %v11284_v15  ;;  %v3906_v7 = vadd.f32 %v7503_v28, %v3646_v21  ;;  %v3651_v36 = vadd.f32 %v11293_v25, %v11292_v10  ;;  %v11300_v25 = vld [vmem:[#allocation25_spill] sm:$0xff] }
 0x1c2   : > { %6738 = vst.msk [vmem:[%s9193_s28 + $0x138] sm:$0xff] %vm2143_vm1, %v4228_v37  ;;  %v4226_v32 = vadd.f32 %v10069_v27, %v4194_v26  ;;  %v4199_v39 = vadd.f32 %v7536_v56, %v3905_v9  ;;  %7742 = vmatprep.mubr.msk.bf16.mxu1 %vm2143_vm1, %v11287_v38  ;;  %v3803_v62 = vpop.f32.mrf.mxu0  ;;  %v11294_v56 = vld [vmem:[#allocation13_spill] sm:$0xff]  ;;  %v11295_v38 = vld [vmem:[#allocation18_spill] sm:$0xff] }
 0x1c3   : > { %v4094_v29 = vpop.f32.mrf.mxu1  ;;  %v3904_v57 = vadd.f32 %v3803_v62, %v3638_v18  ;;  %v3662_v15 = vadd.f32 %v9886_v41, %v11294_v56  ;;  %v11296_v62 = vld [vmem:[#allocation21_spill] sm:$0xff]  ;;  %v11302_v56 = vld [vmem:[#allocation2_spill] sm:$0xff] }
 0x1c4   : > { %6736 = vst.msk [vmem:[%s9193_s28 + $0x128] sm:$0xff] %vm2143_vm1, %v4226_v32  ;;  %v4231_v11 = vadd.f32 %v10069_v27, %v4199_v39  ;;  %v4197_v13 = vadd.f32 %v4094_v29, %v3903_v53  ;;  %v7506_v55 = vpop.f32.mrf.mxu0 }
 0x1c5   : > { %v7537_v9 = vpop.f32.mrf.mxu1  ;;  %v3909_v26 = vadd.f32 %v7506_v55, %v3659_v6 }
 0x1c6   : > { %7709 = vmatmul.mubr.msk.bf16.gmra.mxu0 %vm2143_vm1, %v11290_v51  ;;  %6741 = vst.msk [vmem:[%s9193_s28 + $0x150] sm:$0xff] %vm2143_vm1, %v4231_v11  ;;  %v4229_v21 = vadd.f32 %v10069_v27, %v4197_v13  ;;  %v4200_v37 = vadd.f32 %v7537_v9, %v3906_v7  ;;  %v3816_v53 = vpop.f32.mrf.mxu0  ;;  %v3654_v7 = vadd.f32 %v9901_v54, %v11296_v62  ;;  %v11298_v13 = vld [vmem:[#allocation24_spill] sm:$0xff] }
 0x1c7   : > { %7712 = vmatprep.mubr.msk.bf16.mxu0 %vm2143_vm1, %v11291_v42  ;;  %v4097_v28 = vpop.f32.mrf.mxu1  ;;  %v3907_v18 = vadd.f32 %v3816_v53, %v3651_v36  ;;  %v11299_v42 = vld [vmem:[#allocation28_spill] sm:$0xff]  ;;  %v11301_v36 = vld [vmem:[#allocation61_spill] sm:$0xff] }
 0x1c8   : > { %6739 = vst.msk [vmem:[%s9193_s28 + $0x140] sm:$0xff] %vm2143_vm1, %v4229_v21  ;;  %v4232_v61 = vadd.f32 %v10069_v27, %v4200_v37  ;;  %v4198_v19 = vadd.f32 %v4097_v28, %v3904_v57  ;;  %v7507_v32 = vpop.f32.mrf.mxu0  ;;  %v3675_v57 = vadd.f32 %v9916_v34, %v11298_v13  ;;  %v3667_v21 = vadd.f32 %v9936_v60, %v11301_v36 }
 0x1c9   : > { %v7540_v39 = vpop.f32.mrf.mxu1  ;;  %7743 = vmatmul.mubr.msk.bf16.gmra.mxu1 %vm2143_vm1, %v11295_v38  ;;  %v3910_v46 = vadd.f32 %v7507_v32, %v3662_v15  ;;  %v3678_v15 = vadd.f32 %v9944_v17, %v11302_v56  ;;  %v11304_v38 = vld [vmem:[#allocation22_spill] sm:$0xff]  ;;  %v7965_v56 = vld [vmem:[%s8083_s27 + $0x1c] sm:$0xf] }
 0x1ca   : > { %6742 = vst.msk [vmem:[%s9193_s28 + $0x158] sm:$0xff] %vm2143_vm1, %v4232_v61  ;;  %v4230_v29 = vadd.f32 %v10069_v27, %v4198_v19  ;;  %v4203_v41 = vadd.f32 %v7540_v39, %v3909_v26  ;;  %7746 = vmatprep.mubr.msk.bf16.mxu1 %vm2143_vm1, %v11297_v8  ;;  %v3819_v6 = vpop.f32.mrf.mxu0  ;;  %v11303_v39 = vld [vmem:[#allocation26_spill] sm:$0xff]  ;;  %v3670_v62 = vadd.f32 %v9951_v5, %v11304_v38 }
 0x1cb   : > { %v4110_v11 = vpop.f32.mrf.mxu1  ;;  %v3908_v51 = vadd.f32 %v3819_v6, %v3654_v7  ;;  %v11306_v6 = vld [vmem:[#allocation27_spill] sm:$0xff]  ;;  %v3707_v38 = vadd.f32 %v10001_v63, %v9983_v31  ;;  %v3699_v31 = vadd.f32 %v10013_v50, %v9991_v59 }
 0x1cc   : > { %6740 = vst.msk [vmem:[%s9193_s28 + $0x148] sm:$0xff] %vm2143_vm1, %v4230_v29  ;;  %v4235_v54 = vadd.f32 %v10069_v27, %v4203_v41  ;;  %v4201_v55 = vadd.f32 %v4110_v11, %v3907_v18  ;;  %v7510_v9 = vpop.f32.mrf.mxu0  ;;  %v11305_v29 = vld [vmem:[#allocation31_spill] sm:$0xff]  ;;  %v3691_v11 = vadd.f32 %v9960_v47, %v11306_v6  ;;  %v7966_v6 = vld [vmem:[%s8083_s27 + $0x20] sm:$0x1] }
 0x1cd   : > { %v7541_v10 = vpop.f32.mrf.mxu1  ;;  %v3913_v26 = vadd.f32 %v7510_v9, %v3675_v57  ;;  %v11308_v9 = vld [vmem:[#allocation65_spill] sm:$0xff] }
 0x1ce   : > { %7713 = vmatmul.mubr.msk.bf16.gmra.mxu0 %vm2143_vm1, %v11299_v42  ;;  %6745 = vst.msk [vmem:[%s9193_s28 + $0x170] sm:$0xff] %vm2143_vm1, %v4235_v54  ;;  %v4233_v34 = vadd.f32 %v10069_v27, %v4201_v55  ;;  %v4204_v37 = vadd.f32 %v7541_v10, %v3910_v46  ;;  %v3832_v53 = vpop.f32.mrf.mxu0  ;;  %v11307_v55 = vld [vmem:[#allocation30_spill] sm:$0xff]  ;;  %v3683_v42 = vadd.f32 %v9976_v49, %v9949_v30 }
 0x1cf   : > { %7716 = vmatprep.mubr.msk.bf16.mxu0 %vm2143_vm1, %v11300_v25  ;;  %v4113_v28 = vpop.f32.mrf.mxu1  ;;  %v3911_v18 = vadd.f32 %v3832_v53, %v3667_v21 }
 0x1d0   : > { %6743 = vst.msk [vmem:[%s9193_s28 + $0x160] sm:$0xff] %vm2143_vm1, %v4233_v34  ;;  %v4236_v61 = vadd.f32 %v10069_v27, %v4204_v37  ;;  %v4202_v19 = vadd.f32 %v4113_v28, %v3908_v51  ;;  %v7511_v60 = vpop.f32.mrf.mxu0  ;;  %v3694_v34 = vadd.f32 %v9986_v0, %v9956_v20  ;;  %v11309_v28 = vld [vmem:[#allocation32_spill] sm:$0xff] }
 0x1d1   : > { %v7544_v32 = vpop.f32.mrf.mxu1  ;;  %7747 = vmatmul.mubr.msk.bf16.gmra.mxu1 %vm2143_vm1, %v11303_v39  ;;  %v3914_v41 = vadd.f32 %v7511_v60, %v3678_v15  ;;  %v1975_v15 = vrot.slane %v7965_v56, 5  ;;  %v7968_v56 = vld [vmem:[%s8083_s27 + $0x34] sm:$0xf] }
 0x1d2   : > { %6746 = vst.msk [vmem:[%s9193_s28 + $0x178] sm:$0xff] %vm2143_vm1, %v4236_v61  ;;  %v4234_v7 = vadd.f32 %v10069_v27, %v4202_v19  ;;  %v4207_v17 = vadd.f32 %v7544_v32, %v3913_v26  ;;  %7750 = vmatprep.mubr.msk.bf16.mxu1 %vm2143_vm1, %v11305_v29  ;;  %v3835_v8 = vpop.f32.mrf.mxu0  ;;  %v3686_v61 = vadd.f32 %v9995_v24, %v9973_v16  ;;  %v11310_v19 = vld [vmem:[#allocation35_spill] sm:$0xff]  ;;  %v6467_v32 = vld [vmem:[%s8083_s27 + $0x18] sm:$0xe] }
 0x1d3   : > { %v4126_v46 = vpop.f32.mrf.mxu1  ;;  %v3912_v57 = vadd.f32 %v3835_v8, %v3670_v62  ;;  %v6483_v8 = vrot.slane %v6467_v32, 9 }
 0x1d4   : > { %6744 = vst.msk [vmem:[%s9193_s28 + $0x168] sm:$0xff] %vm2143_vm1, %v4234_v7  ;;  %v4239_v5 = vadd.f32 %v10069_v27, %v4207_v17  ;;  %v4205_v13 = vadd.f32 %v4126_v46, %v3911_v18  ;;  %v7514_v54 = vpop.f32.mrf.mxu0  ;;  %v11311_v17 = vld [vmem:[#allocation42_spill] sm:$0xff]  ;;  %v1977_v46 = vrot.slane %v1975_v15, 4 }
 0x1d5   : > { %v7545_v51 = vpop.f32.mrf.mxu1  ;;  %v3917_v25 = vadd.f32 %v7514_v54, %v3691_v11  ;;  %v1978_v11 = vrot.slane %v7966_v6, 5  ;;  %v7970_v6 = vld [vmem:[%s8083_s27 + $0x38] sm:$0x1] }
 0x1d6   : > { %7717 = vmatmul.mubr.msk.bf16.gmra.mxu0 %vm2143_vm1, %v11307_v55  ;;  %6749 = vst.msk [vmem:[%s9193_s28 + $0x190] sm:$0xff] %vm2143_vm1, %v4239_v5  ;;  %v4237_v47 = vadd.f32 %v10069_v27, %v4205_v13  ;;  %v4208_v10 = vadd.f32 %v7545_v51, %v3914_v41  ;;  %v3848_v36 = vpop.f32.mrf.mxu0  ;;  %v11312_v41 = vld [vmem:[#allocation43_spill] sm:$0xff]  ;;  %v3710_v55 = vadd.f32 %v10018_v35, %v9997_v33 }
 0x1d7   : > { %7720 = vmatprep.mubr.msk.bf16.mxu0 %vm2143_vm1, %v11308_v9  ;;  %v4129_v21 = vpop.f32.mrf.mxu1  ;;  %v3915_v53 = vadd.f32 %v3848_v36, %v3683_v42  ;;  %v1979_v33 = vsel %vm8642_vm7, %v1977_v46, %v1978_v11  ;;  %v7967_v35 = vld [vmem:[%s8083_s27 + $0x28] sm:$0xf]  ;;  %v1992_v11 = vrot.slane %v7970_v6, 5 }
 0x1d8   : > { %6747 = vst.msk [vmem:[%s9193_s28 + $0x180] sm:$0xff] %vm2143_vm1, %v4237_v47  ;;  %v4240_v37 = vadd.f32 %v10069_v27, %v4208_v10  ;;  %v4206_v26 = vadd.f32 %v4129_v21, %v3912_v57  ;;  %v7515_v30 = vpop.f32.mrf.mxu0  ;;  %v11313_v47 = vld [vmem:[#allocation36_spill] sm:$0xff]  ;;  %v1982_v36 = vrot.slane %v7967_v35, 5  ;;  %v3702_v21 = vadd.f32 %v10026_v4, %v10011_v2 }
 0x1d9   : > { %v7548_v49 = vpop.f32.mrf.mxu1  ;;  %7751 = vmatmul.mubr.msk.bf16.gmra.mxu1 %vm2143_vm1, %v11309_v28  ;;  %v3918_v18 = vadd.f32 %v7515_v30, %v3694_v34 }
 0x1da   : > { %6750 = vst.msk [vmem:[%s9193_s28 + $0x198] sm:$0xff] %vm2143_vm1, %v4240_v37  ;;  %v4238_v20 = vadd.f32 %v10069_v27, %v4206_v26  ;;  %v4211_v0 = vadd.f32 %v7548_v49, %v3917_v25  ;;  %7754 = vmatprep.mubr.msk.bf16.mxu1 %vm2143_vm1, %v11310_v19  ;;  %v3851_v60 = vpop.f32.mrf.mxu0  ;;  %v1976_v25 = vsel %vm8642_vm7, %v6483_v8, %v1975_v15  ;;  %v11315_v26 = vld [vmem:[#allocation39_spill] sm:$0xff]  ;;  %v6468_v49 = vld [vmem:[%s8083_s27 + $0x24] sm:$0xe]  ;;  %v1989_v15 = vrot.slane %v7968_v56, 5  ;;  %v11316_v19 = vld [vmem:[#allocation44_spill] sm:$0xff] }
 0x1db   : > { %v4142_v39 = vpop.f32.mrf.mxu1  ;;  %v3916_v62 = vadd.f32 %v3851_v60, %v3686_v61  ;;  %v3723_v61 = vadd.f32 %v10030_v44, %v10015_v3  ;;  %v6947_v32 = vcombine.low %v1976_v25, %v1979_v33  ;;  %v11317_v44 = vld [vmem:[#allocation3_spill] sm:$0xff] }
 0x1dc   : > { %6748 = vst.msk [vmem:[%s9193_s28 + $0x188] sm:$0xff] %vm2143_vm1, %v4238_v20  ;;  %v4243_v16 = vadd.f32 %v10069_v27, %v4211_v0  ;;  %v4209_v24 = vadd.f32 %v4142_v39, %v3915_v53  ;;  %v7518_v7 = vpop.f32.mrf.mxu0  ;;  %v6484_v39 = vrot.slane %v6468_v49, 9  ;;  %v1991_v46 = vrot.slane %v1989_v15, 4 }
 0x1dd   : > { %v7549_v29 = vpop.f32.mrf.mxu1  ;;  %v3921_v13 = vadd.f32 %v7518_v7, %v3707_v38  ;;  %v1984_v38 = vrot.slane %v1982_v36, 4 }
 0x1de   : > { %7721 = vmatmul.mubr.msk.bf16.gmra.mxu0 %vm2143_vm1, %v11311_v17  ;;  %6753 = vst.msk [vmem:[%s9193_s28 + $0x1b0] sm:$0xff] %vm2143_vm1, %v4243_v16  ;;  %v4241_v63 = vadd.f32 %v10069_v27, %v4209_v24  ;;  %v4212_v5 = vadd.f32 %v7549_v29, %v3918_v18  ;;  %v3864_v57 = vpop.f32.mrf.mxu0  ;;  %v6469_v18 = vld [vmem:[%s8083_s27 + $0x30] sm:$0xe]  ;;  %v7969_v16 = vld [vmem:[%s8083_s27 + $0x2c] sm:$0x1]  ;;  %v3715_v24 = vadd.f32 %v10040_v48, %v10024_v23 }
 0x1df   : > { %7724 = vmatprep.mubr.msk.bf16.mxu0 %vm2143_vm1, %v11312_v41  ;;  %v4145_v54 = vpop.f32.mrf.mxu1  ;;  %v3919_v59 = vadd.f32 %v3864_v57, %v3699_v31  ;;  %v1985_v3 = vrot.slane %v7969_v16, 5  ;;  %v6485_v8 = vrot.slane %v6469_v18, 9  ;;  %v3726_v31 = vadd.f32 %v10046_v52, %v10028_v40  ;;  %v11318_v57 = vld [vmem:[#allocation41_spill] sm:$0xff]  ;;  %v7971_v40 = vld [vmem:[%s8083_s27 + $0x40] sm:$0xf] }
 0x1e0   : > { %6751 = vst.msk [vmem:[%s9193_s28 + $0x1a0] sm:$0xff] %vm2143_vm1, %v4241_v63  ;;  %v4244_v51 = vadd.f32 %v10069_v27, %v4212_v5  ;;  %v4210_v9 = vadd.f32 %v4145_v54, %v3916_v62  ;;  %v7519_v50 = vpop.f32.mrf.mxu0  ;;  %v1983_v54 = vsel %vm8642_vm7, %v6484_v39, %v1982_v36  ;;  %v1996_v52 = vrot.slane %v7971_v40, 5  ;;  %v7974_v39 = vld [vmem:[%s8083_s27 + $0x50] sm:$0x1] }
 0x1e1   : > { %v7552_v42 = vpop.f32.mrf.mxu1  ;;  %7755 = vmatmul.mubr.msk.bf16.gmra.mxu1 %vm2143_vm1, %v11313_v47  ;;  %v3922_v53 = vadd.f32 %v7519_v50, %v3710_v55  ;;  %v1986_v55 = vsel %vm8642_vm7, %v1984_v38, %v1985_v3  ;;  %v6470_v47 = vld [vmem:[%s8083_s27 + $0x3c] sm:$0xe]  ;;  %v1990_v33 = vsel %vm8642_vm7, %v6485_v8, %v1989_v15  ;;  %v1993_v35 = vsel %vm8642_vm7, %v1991_v46, %v1992_v11 }
 0x1e2   : > { %6754 = vst.msk [vmem:[%s9193_s28 + $0x1b8] sm:$0xff] %vm2143_vm1, %v4244_v51  ;;  %v4242_v34 = vadd.f32 %v10069_v27, %v4210_v9  ;;  %v4215_v37 = vadd.f32 %v7552_v42, %v3921_v13  ;;  %7758 = vmatprep.mubr.msk.bf16.mxu1 %vm2143_vm1, %v11315_v26  ;;  %v3867_v30 = vpop.f32.mrf.mxu0  ;;  %v3718_v51 = vadd.f32 %v10052_v12, %v10036_v1  ;;  %v7972_v1 = vld [vmem:[%s8083_s27 + $0x4c] sm:$0xf]  ;;  %v11319_v26 = vld [vmem:[#allocation4_spill] sm:$0xff]  ;;  %v1998_v56 = vrot.slane %v1996_v52, 4  ;;  %v11320_v15 = vld [vmem:[#allocation5_spill] sm:$0xff] }
 0x1e3   : > { %v4158_v28 = vpop.f32.mrf.mxu1  ;;  %v3920_v20 = vadd.f32 %v3867_v30, %v3702_v21  ;;  %v2003_v12 = vrot.slane %v7972_v1, 5  ;;  %v6948_v49 = vcombine.low %v1983_v54, %v1986_v55  ;;  %v2006_v38 = vrot.slane %v7974_v39, 5  ;;  %v11322_v55 = vld [vmem:[#allocation8_spill] sm:$0xff] }
 0x1e4   : > { %6752 = vst.msk [vmem:[%s9193_s28 + $0x1a8] sm:$0xff] %vm2143_vm1, %v4242_v34  ;;  %v4247_v2 = vadd.f32 %v10069_v27, %v4215_v37  ;;  %v4213_v4 = vadd.f32 %v4158_v28, %v3919_v59  ;;  %v7522_v0 = vpop.f32.mrf.mxu0  ;;  %v6486_v28 = vrot.slane %v6470_v47, 9 }
 0x1e5   : > { %v7553_v60 = vpop.f32.mrf.mxu1  ;;  %v3925_v17 = vadd.f32 %v7522_v0, %v3723_v61  ;;  %v7973_v0 = vld [vmem:[%s8083_s27 + $0x44] sm:$0x1] }
 0x1e6   : > { %7725 = vmatmul.mubr.msk.bf16.gmra.mxu0 %vm2143_vm1, %v11316_v19  ;;  %6757 = vst.msk [vmem:[%s9193_s28 + $0x1d0] sm:$0xff] %vm2143_vm1, %v4247_v2  ;;  %v4245_v62 = vadd.f32 %v10069_v27, %v4213_v4  ;;  %v4216_v7 = vadd.f32 %v7553_v60, %v3922_v53  ;;  %v3880_v29 = vpop.f32.mrf.mxu0  ;;  %v6471_v53 = vld [vmem:[%s8083_s27 + $0x48] sm:$0xe]  ;;  %v1999_v19 = vrot.slane %v7973_v0, 5  ;;  %v6475_v0 = vld [vmem:[%s8083_s27 + $0x78] sm:$0xe] }
 0x1e7   : > { %7764 = vmatprep.mubr.msk.bf16.mxu0 %vm2143_vm1, %v11317_v44  ;;  %v4161_v41 = vpop.f32.mrf.mxu1  ;;  %v3923_v63 = vadd.f32 %v3880_v29, %v3715_v24  ;;  %v6487_v60 = vrot.slane %v6471_v53, 9 }
 0x1e8   : > { %6755 = vst.msk [vmem:[%s9193_s28 + $0x1c0] sm:$0xff] %vm2143_vm1, %v4245_v62  ;;  %v4248_v23 = vadd.f32 %v10069_v27, %v4216_v7  ;;  %v4214_v48 = vadd.f32 %v4161_v41, %v3920_v20  ;;  %v7523_v5 = vpop.f32.mrf.mxu0  ;;  %v6949_v20 = vcombine.low %v1990_v33, %v1993_v35  ;;  %v1997_v7 = vsel %vm8642_vm7, %v6486_v28, %v1996_v52  ;;  %v7975_v41 = vld [vmem:[%s8083_s27 + $0x58] sm:$0xf]  ;;  %v7978_v33 = vld [vmem:[%s8083_s27 + $0x68] sm:$0x1] }
 0x1e9   : > { %v7556_v13 = vpop.f32.mrf.mxu1  ;;  %7759 = vmatmul.mubr.msk.bf16.gmra.mxu1 %vm2143_vm1, %v11318_v57  ;;  %v3926_v50 = vadd.f32 %v7523_v5, %v3726_v31  ;;  %v2010_v8 = vrot.slane %v7975_v41, 5  ;;  %v2004_v6 = vsel %vm8642_vm7, %v6487_v60, %v2003_v12  ;;  %v6472_v31 = vld [vmem:[%s8083_s27 + $0x54] sm:$0xe]  ;;  %v11321_v5 = vld [vmem:[#allocation6_spill] sm:$0xff]  ;;  %v2020_v35 = vrot.slane %v7978_v33, 5  ;;  %v11324_v60 = vld [vmem:[#allocation59_spill] sm:$0xff] }
 0x1ea   : > { %6758 = vst.msk [vmem:[%s9193_s28 + $0x1d8] sm:$0xff] %vm2143_vm1, %v4248_v23  ;;  %v4246_v9 = vadd.f32 %v10069_v27, %v4214_v48  ;;  %v4219_v59 = vadd.f32 %v7556_v13, %v3925_v17  ;;  %7798 = vmatprep.mubr.msk.bf16.mxu1 %vm2143_vm1, %v6947_v32  ;;  %v3883_v42 = vpop.f32.mrf.mxu0  ;;  %v2005_v32 = vrot.slane %v2003_v12, 4  ;;  %v2000_v17 = vsel %vm8642_vm7, %v1998_v56, %v1999_v19  ;;  %v7976_v23 = vld [vmem:[%s8083_s27 + $0x64] sm:$0xf]  ;;  %v6473_v13 = vld [vmem:[%s8083_s27 + $0x60] sm:$0xe] }
 0x1eb   : > { %v4174_v25 = vpop.f32.mrf.mxu1  ;;  %v3924_v34 = vadd.f32 %v3883_v42, %v3718_v51  ;;  %v2017_v48 = vrot.slane %v7976_v23, 5  ;;  %v6950_v54 = vcombine.low %v1997_v7, %v2000_v17  ;;  %v6488_v51 = vrot.slane %v6472_v31, 9  ;;  %v6474_v56 = vld [vmem:[%s8083_s27 + $0x6c] sm:$0xe]  ;;  %v6477_v33 = vld [vmem:[%s8083_s27 + $0x90] sm:$0xe] }
 0x1ec   : > { %6756 = vst.msk [vmem:[%s9193_s28 + $0x1c8] sm:$0xff] %vm2143_vm1, %v4246_v9  ;;  %v4251_v36 = vadd.f32 %v10069_v27, %v4219_v59  ;;  %v4217_v21 = vadd.f32 %v4174_v25, %v3923_v63  ;;  %v10289_v37 = vpop.f32.mrf.mxu0  ;;  %v2007_v11 = vsel %vm8642_vm7, %v2005_v32, %v2006_v38  ;;  %v2012_v9 = vrot.slane %v2010_v8, 4  ;;  %v7977_v59 = vld [vmem:[%s8083_s27 + $0x5c] sm:$0x1] }
 0x1ed   : > { %v7557_v30 = vpop.f32.mrf.mxu1  ;;  %v6951_v52 = vcombine.low %v2004_v6, %v2007_v11  ;;  %v6489_v47 = vrot.slane %v6473_v13, 9  ;;  %v2019_v25 = vrot.slane %v2017_v48, 4  ;;  %v6490_v38 = vrot.slane %v6474_v56, 9  ;;  %v7983_v13 = vld [vmem:[%s8083_s27 + $0x88] sm:$0xf] }
 0x1ee   : > { %7765 = vmatmul.mubr.msk.bf16.vlgmr.msra.gmra.mxu0 %vm2143_vm1, %v11319_v26  ;;  %6761 = vst.msk [vmem:[%s9193_s28 + $0x1f0] sm:$0xff] %vm2143_vm1, %v4251_v36  ;;  %v4249_v61 = vadd.f32 %v10069_v27, %v4217_v21  ;;  %v4220_v2 = vadd.f32 %v7557_v30, %v3926_v50  ;;  %v10299_v4 = vpop.f32.mrf.mxu0  ;;  %v2013_v50 = vrot.slane %v7977_v59, 5  ;;  %v2011_v36 = vsel %vm8642_vm7, %v6488_v51, %v2010_v8  ;;  %v7979_v26 = vld [vmem:[%s8083_s27 + $0x70] sm:$0xf]  ;;  %v7982_v8 = vld [vmem:[%s8083_s27 + $0x80] sm:$0x1] }
 0x1ef   : > { %7768 = vmatprep.mubr.msk.bf16.mxu0 %vm2143_vm1, %v11320_v15  ;;  %v4177_v18 = vpop.f32.mrf.mxu1  ;;  %v2024_v53 = vrot.slane %v7979_v26, 5  ;;  %v2021_v28 = vsel %vm8642_vm7, %v2019_v25, %v2020_v35  ;;  %v7980_v15 = vld [vmem:[%s8083_s27 + $0x7c] sm:$0xf]  ;;  %v6491_v17 = vrot.slane %v6475_v0, 9  ;;  %v2034_v6 = vrot.slane %v7982_v8, 5  ;;  %v11325_v25 = vld [vmem:[#allocation12_spill] sm:$0xff] }
 0x1f0   : > { %6759 = vst.msk [vmem:[%s9193_s28 + $0x1e0] sm:$0xff] %vm2143_vm1, %v4249_v61  ;;  %v4252_v16 = vadd.f32 %v10069_v27, %v4220_v2  ;;  %v4218_v3 = vadd.f32 %v4177_v18, %v3924_v34  ;;  %v10306_v44 = vpop.f32.mrf.mxu0  ;;  %v2014_v21 = vsel %vm8642_vm7, %v2012_v9, %v2013_v50  ;;  %v2031_v61 = vrot.slane %v7980_v15, 5  ;;  %v6476_v9 = vld [vmem:[%s8083_s27 + $0x84] sm:$0xe]  ;;  %v7984_v59 = vld [vmem:[%s8083_s27 + $0x94] sm:$0xf] }
 0x1f1   : > { %v10308_v24 = vpop.f32.mrf.mxu1  ;;  %7799 = vmatmul.mubr.msk.bf16.vlgmr.msra.gmra.mxu1 %vm2143_vm1, %v6948_v49  ;;  %v2018_v49 = vsel %vm8642_vm7, %v6489_v47, %v2017_v48  ;;  %v6952_v18 = vcombine.low %v2011_v36, %v2014_v21  ;;  %v2025_v23 = vsel %vm8642_vm7, %v6490_v38, %v2024_v53  ;;  %v2045_v50 = vrot.slane %v7984_v59, 5  ;;  %v11326_v21 = vld [vmem:[#allocation63_spill] sm:$0xff] }
 0x1f2   : > { %6762 = vst.msk [vmem:[%s9193_s28 + $0x1f8] sm:$0xff] %vm2143_vm1, %v4252_v16  ;;  %v4250_v62 = vadd.f32 %v10069_v27, %v4218_v3  ;;  %7802 = vmatprep.mubr.msk.bf16.mxu1 %vm2143_vm1, %v6949_v20  ;;  %v10319_v29 = vpop.f32.mrf.mxu0  ;;  %v11323_v20 = vld [vmem:[#allocation56_spill] sm:$0xff]  ;;  %v6953_v39 = vcombine.low %v2018_v49, %v2021_v28  ;;  %v2026_v16 = vrot.slane %v2024_v53, 4  ;;  %v2033_v41 = vrot.slane %v2031_v61, 4  ;;  %v7985_v56 = vld [vmem:[%s8083_s27 + $0x8c] sm:$0x1] }
 0x1f3   : > { %v10322_v46 = vpop.f32.mrf.mxu1  ;;  %v7981_v3 = vld [vmem:[%s8083_s27 + $0x74] sm:$0x1]  ;;  %v6492_v49 = vrot.slane %v6476_v9, 9  ;;  %v2041_v15 = vrot.slane %v7985_v56, 5  ;;  %v2047_v0 = vrot.slane %v2045_v50, 4 }
 0x1f4   : > { %6760 = vst.msk [vmem:[%s9193_s28 + $0x1e8] sm:$0xff] %vm2143_vm1, %v4250_v62  ;;  %v10332_v63 = vpop.f32.mrf.mxu0  ;;  %v2027_v62 = vrot.slane %v7981_v3, 5  ;;  %v2035_v51 = vsel %vm8642_vm7, %v2033_v41, %v2034_v6  ;;  %v6479_v9 = vld [vmem:[%s8083_s27 + $0xa8] sm:$0xe] }
 0x1f5   : > { %v10337_v57 = vpop.f32.mrf.mxu1 }
 0x1f6   : > { %7769 = vmatmul.mubr.msk.bf16.gmra.mxu0 %vm2143_vm1, %v11321_v5  ;;  %v10341_v40 = vpop.f32.mrf.mxu0  ;;  %v2028_v48 = vsel %vm8642_vm7, %v2026_v16, %v2027_v62 }
 0x1f7   : > { %7772 = vmatprep.mubr.msk.bf16.mxu0 %vm2143_vm1, %v11322_v55  ;;  %v10344_v42 = vpop.f32.mrf.mxu1  ;;  %v6954_v36 = vcombine.low %v2025_v23, %v2028_v48  ;;  %v6478_v48 = vld [vmem:[%s8083_s27 + $0x9c] sm:$0xe] }
 0x1f8   : > { %v10347_v1 = vpop.f32.mrf.mxu0 }
 0x1f9   : > { %v10349_v12 = vpop.f32.mrf.mxu1  ;;  %7803 = vmatmul.mubr.msk.bf16.gmra.mxu1 %vm2143_vm1, %v6950_v54  ;;  %v2038_v54 = vrot.slane %v7983_v13, 5  ;;  %v7988_v13 = vld [vmem:[%s8083_s27 + $0xac] sm:$0xf] }
 0x1fa   : > { %7806 = vmatprep.mubr.msk.bf16.mxu1 %vm2143_vm1, %v6951_v52  ;;  %v10357_v34 = vpop.f32.mrf.mxu0  ;;  %v2032_v52 = vsel %vm8642_vm7, %v6491_v17, %v2031_v61  ;;  %v7987_v17 = vld [vmem:[%s8083_s27 + $0xa0] sm:$0xf] }
 0x1fb   : > { %v10360_v30 = vpop.f32.mrf.mxu1  ;;  %v6955_v53 = vcombine.low %v2032_v52, %v2035_v51  ;;  %v2040_v28 = vrot.slane %v2038_v54, 4  ;;  %v2039_v16 = vsel %vm8642_vm7, %v6492_v49, %v2038_v54  ;;  %v2052_v41 = vrot.slane %v7987_v17, 5  ;;  %v11327_v51 = vld [vmem:[#allocation55_spill] sm:$0xff]  ;;  %v7989_v49 = vld [vmem:[%s8083_s27 + $0xa4] sm:$0x1] }
 0x1fc   : > { %v10368_v2 = vpop.f32.mrf.mxu0  ;;  %v2059_v52 = vrot.slane %v7988_v13, 5 }
 0x1fd   : > { %v10373_v19 = vpop.f32.mrf.mxu1  ;;  %v2042_v3 = vsel %vm8642_vm7, %v2040_v28, %v2041_v15  ;;  %v2055_v28 = vrot.slane %v7989_v49, 5  ;;  %v6495_v15 = vrot.slane %v6479_v9, 9 }
 0x1fe   : > { %7773 = vmatmul.mubr.msk.bf16.gmra.mxu0 %vm2143_vm1, %v11323_v20  ;;  %v10377_v32 = vpop.f32.mrf.mxu0  ;;  %v6493_v20 = vrot.slane %v6477_v33, 9  ;;  %v11328_v33 = vld [vmem:[#allocation14_spill] sm:$0xff] }
 0x1ff   : > { %7776 = vmatprep.mubr.msk.bf16.mxu0 %vm2143_vm1, %v11324_v60  ;;  %v10380_v7 = vpop.f32.mrf.mxu1 }
 0x200   : > { %v10383_v11 = vpop.f32.mrf.mxu0  ;;  %v2046_v6 = vsel %vm8642_vm7, %v6493_v20, %v2045_v50  ;;  %v2061_v20 = vrot.slane %v2059_v52, 4 }
 0x201   : > { %v10385_v31 = vpop.f32.mrf.mxu1  ;;  %7807 = vmatmul.mubr.msk.bf16.gmra.mxu1 %vm2143_vm1, %v6952_v18  ;;  %v7986_v18 = vld [vmem:[%s8083_s27 + $0x98] sm:$0x1] }
 0x202   : > { %7810 = vmatprep.mubr.msk.bf16.mxu1 %vm2143_vm1, %v6953_v39  ;;  %v10393_v5 = vpop.f32.mrf.mxu0  ;;  %v2048_v60 = vrot.slane %v7986_v18, 5 }
 0x203   : > { %v10396_v55 = vpop.f32.mrf.mxu1 }
 0x204   : > { %v10404_v47 = vpop.f32.mrf.mxu0  ;;  %v2049_v23 = vsel %vm8642_vm7, %v2047_v0, %v2048_v60  ;;  %v7990_v0 = vld [vmem:[%s8083_s27 + $0xb0] sm:$0x1] }
 0x205   : > { %v10409_v35 = vpop.f32.mrf.mxu1  ;;  %v2062_v18 = vrot.slane %v7990_v0, 5  ;;  %v7993_v0 = vld [vmem:[%s8083_s27 + $0xbc] sm:$0x1] }
 0x206   : > { %7777 = vmatmul.mubr.msk.bf16.gmra.mxu0 %vm2143_vm1, %v11325_v25  ;;  %v10413_v26 = vpop.f32.mrf.mxu0  ;;  %v6956_v25 = vcombine.low %v2039_v16, %v2042_v3 }
 0x207   : > { %7780 = vmatprep.mubr.msk.bf16.mxu0 %vm2143_vm1, %v11326_v21  ;;  %v10416_v61 = vpop.f32.mrf.mxu1  ;;  %v6494_v21 = vrot.slane %v6478_v48, 9  ;;  %v2063_v9 = vsel %vm8642_vm7, %v2061_v20, %v2062_v18  ;;  %v2069_v18 = vrot.slane %v7993_v0, 5  ;;  %v6482_v0 = vld [vmem:[%s8083_s27 + $0xcc] sm:$0xe] }
 0x208   : > { %v10419_v39 = vpop.f32.mrf.mxu0 }
 0x209   : > { %v10421_v38 = vpop.f32.mrf.mxu1  ;;  %7811 = vmatmul.mubr.msk.bf16.gmra.mxu1 %vm2143_vm1, %v6954_v36  ;;  %v6957_v36 = vcombine.low %v2046_v6, %v2049_v23  ;;  %v2053_v3 = vsel %vm8642_vm7, %v6494_v21, %v2052_v41  ;;  %v7991_v23 = vld [vmem:[%s8083_s27 + $0xb8] sm:$0xf]  ;;  %v6481_v21 = vld [vmem:[%s8083_s27 + $0xc0] sm:$0xe] }
 0x20a   : > { %7814 = vmatprep.mubr.msk.bf16.mxu1 %vm2143_vm1, %v6955_v53  ;;  %v10429_v62 = vpop.f32.mrf.mxu0  ;;  %v2054_v53 = vrot.slane %v2052_v41, 4  ;;  %v2066_v48 = vrot.slane %v7991_v23, 5 }
 0x20b   : > { %v10432_v8 = vpop.f32.mrf.mxu1 }
 0x20c   : > { %v10440_v54 = vpop.f32.mrf.mxu0  ;;  %v2056_v17 = vsel %vm8642_vm7, %v2054_v53, %v2055_v28  ;;  %v2068_v20 = vrot.slane %v2066_v48, 4 }
 0x20d   : > { %v10445_v59 = vpop.f32.mrf.mxu1  ;;  %v6958_v49 = vcombine.low %v2053_v3, %v2056_v17 }
 0x20e   : > { %7781 = vmatmul.mubr.msk.bf16.gmra.mxu0 %vm2143_vm1, %v11327_v51  ;;  %v10449_v50 = vpop.f32.mrf.mxu0  ;;  %v2060_v51 = vsel %vm8642_vm7, %v6495_v15, %v2059_v52  ;;  %v2070_v17 = vsel %vm8642_vm7, %v2068_v20, %v2069_v18 }
 0x20f   : > { %7784 = vmatprep.mubr.msk.bf16.mxu0 %vm2143_vm1, %v11328_v33  ;;  %v10452_v56 = vpop.f32.mrf.mxu1  ;;  %v7992_v33 = vld [vmem:[%s8083_s27 + $0xc4] sm:$0xf]  ;;  %v6959_v28 = vcombine.low %v2060_v51, %v2063_v9  ;;  %v7995_v9 = vld [vmem:[%s8083_s27 + $0xd0] sm:$0xf] }
 0x210   : > { %v10455_v60 = vpop.f32.mrf.mxu0 }
 0x211   : > { %v10457_v16 = vpop.f32.mrf.mxu1  ;;  %7815 = vmatmul.mubr.msk.bf16.gmra.mxu1 %vm2143_vm1, %v6956_v25  ;;  %v6480_v25 = vld [vmem:[%s8083_s27 + $0xb4] sm:$0xe] }
 0x212   : > { %7818 = vmatprep.mubr.msk.bf16.mxu1 %vm2143_vm1, %v6957_v36  ;;  %v10465_v6 = vpop.f32.mrf.mxu0  ;;  %v2073_v36 = vrot.slane %v7992_v33, 5  ;;  %v6496_v15 = vrot.slane %v6480_v25, 9  ;;  %v6497_v33 = vrot.slane %v6481_v21, 9  ;;  %v2080_v25 = vrot.slane %v7995_v9, 5 }
 0x213   : > { %11329 = vst [vmem:[#allocation33_spill] sm:$0xff] %v10465_v6  ;;  %v10468_v13 = vpop.f32.mrf.mxu1  ;;  %v6498_v9 = vrot.slane %v6482_v0, 9 }
 0x214   : > { %v10476_v41 = vpop.f32.mrf.mxu0 }
 0x215   : > { %11330 = vst [vmem:[#allocation34_spill] sm:$0xff] %v10476_v41  ;;  %v10481_v53 = vpop.f32.mrf.mxu1  ;;  %v7994_v41 = vld [vmem:[%s8083_s27 + $0xc8] sm:$0x1] }
 0x216   : > { %7785 = vmatmul.mubr.msk.bf16.gmra.mxu0 %vm2143_vm1, %v9939_v14  ;;  %11331 = vst [vmem:[#allocation37_spill] sm:$0xff] %v10481_v53  ;;  %v10485_v52 = vpop.f32.mrf.mxu0  ;;  %v2075_v14 = vrot.slane %v2073_v36, 4  ;;  %v2076_v6 = vrot.slane %v7994_v41, 5  ;;  %v2074_v41 = vsel %vm8642_vm7, %v6497_v33, %v2073_v36  ;;  %v2082_v36 = vrot.slane %v2080_v25, 4 }
 0x217   : > { %7788 = vmatprep.mubr.msk.bf16.mxu0 %vm2143_vm1, %v9946_v58  ;;  %v10488_v23 = vpop.f32.mrf.mxu1  ;;  %v2067_v58 = vsel %vm8642_vm7, %v6496_v15, %v2066_v48  ;;  %v2083_v33 = vrot.slane %v9954_v45, 5 }
 0x218   : > { %v10491_v53 = vpop.f32.mrf.mxu0  ;;  %v6960_v15 = vcombine.low %v2067_v58, %v2070_v17 }
 0x219   : > { %v10493_v3 = vpop.f32.mrf.mxu1  ;;  %7819 = vmatmul.mubr.msk.bf16.gmra.mxu1 %vm2143_vm1, %v6958_v49  ;;  %v2077_v49 = vsel %vm8642_vm7, %v2075_v14, %v2076_v6 }
 0x21a   : > { %7822 = vmatprep.mubr.msk.bf16.mxu1 %vm2143_vm1, %v6959_v28  ;;  %v10501_v51 = vpop.f32.mrf.mxu0  ;;  %v6961_v18 = vcombine.low %v2074_v41, %v2077_v49  ;;  %v11335_v41 = vld [vmem:[#allocation29_spill] sm:$0xff] }
 0x21b   : > { %v10504_v21 = vpop.f32.mrf.mxu1 }
 0x21c   : > { %v10511_v28 = vpop.f32.mrf.mxu0 }
 0x21d   : > { %11332 = vst [vmem:[#allocation38_spill] sm:$0xff] %v10511_v28  ;;  %v10515_v48 = vpop.f32.mrf.mxu1 }
 0x21e   : > { %7789 = vmatmul.mubr.msk.bf16.gmra.mxu0 %vm2143_vm1, %v9988_v43  ;;  %v10519_v20 = vpop.f32.mrf.mxu0  ;;  %v2081_v43 = vsel %vm8642_vm7, %v6498_v9, %v2080_v25 }
 0x21f   : > { %7792 = vmatprep.mubr.msk.bf16.mxu0 %vm2143_vm1, %v9993_v22  ;;  %v10522_v6 = vpop.f32.mrf.mxu1  ;;  %v2084_v22 = vsel %vm8642_vm7, %v2082_v36, %v2083_v33  ;;  %v4500_v33 = vadd.f32 %v10308_v24, %v10289_v37  ;;  %v4495_v37 = vadd.f32 %v10344_v42, %v10319_v29 }
 0x220   : > { %v10524_v14 = vpop.f32.mrf.mxu0  ;;  %v6962_v0 = vcombine.low %v2081_v43, %v2084_v22  ;;  %v4492_v43 = vadd.f32 %v10322_v46, %v10299_v4  ;;  %v4516_v4 = vadd.f32 %v10349_v12, %v10332_v63  ;;  %v4519_v63 = vadd.f32 %v10373_v19, %v10347_v1 }
 0x221   : > { %v10526_v28 = vpop.f32.mrf.mxu1  ;;  %7823 = vmatmul.mubr.msk.bf16.gmra.mxu1 %vm2143_vm1, %v6960_v15  ;;  %v4532_v19 = vadd.f32 %v10385_v31, %v10368_v2  ;;  %v4535_v31 = vadd.f32 %v10409_v35, %v10383_v11 }
 0x222   : > { %7826 = vmatprep.mubr.msk.bf16.mxu1 %vm2143_vm1, %v6961_v18  ;;  %v10534_v58 = vpop.f32.mrf.mxu0 }
 0x223   : > { %11333 = vst [vmem:[#allocation45_spill] sm:$0xff] %v10534_v58  ;;  %v10536_v17 = vpop.f32.mrf.mxu1 }
 0x224   : > { %v10538_v45 = vpop.f32.mrf.mxu0 }
 0x225   : > { %11334 = vst [vmem:[#allocation46_spill] sm:$0xff] %v10538_v45  ;;  %v10542_v49 = vpop.f32.mrf.mxu1 }
 0x226   : > { %7793 = vmatmul.mubr.msk.bf16.gmra.mxu0 %vm2143_vm1, %v11335_v41  ;;  %v10544_v15 = vpop.f32.mrf.mxu0 }
 0x227   : > { %11336 = vst [vmem:[#allocation47_spill] sm:$0xff] %v10544_v15  ;;  %v10546_v18 = vpop.f32.mrf.mxu1 }
 0x228   : > { %11337 = vst [vmem:[#allocation51_spill] sm:$0xff] %v10546_v18  ;;  %v10548_v25 = vpop.f32.mrf.mxu0 }
 0x229   : > { %11338 = vst [vmem:[#allocation53_spill] sm:$0xff] %v10548_v25  ;;  %v10550_v10 = vpop.f32.mrf.mxu1  ;;  %7827 = vmatmul.mubr.msk.bf16.gmra.mxu1 %vm2143_vm1, %v6962_v0  ;;  %v4503_v0 = vadd.f32 %v10337_v57, %v10306_v44 }
 0x22a   : > { %11339 = vst [vmem:[#allocation7_spill] sm:$0xff] %v10550_v10  ;;  %v10553_v9 = vpop.f32.mrf.mxu0 }
 0x22b   : > { %11340 = vst [vmem:[#allocation10_spill] sm:$0xff] %v10553_v9  ;;  %v10555_v36 = vpop.f32.mrf.mxu1 }
 0x22c   : > { %11341 = vst [vmem:[#allocation48_spill] sm:$0xff] %v10555_v36  ;;  %v7630_v41 = vpop.f32.mrf.mxu0 }
 0x22d   : > { %v10559_v45 = vpop.f32.mrf.mxu1  ;;  %v4898_v22 = vadd.f32 %v7630_v41, %v4500_v33 }
 0x22e   : > { %11342 = vst [vmem:[#allocation62_spill] sm:$0xff] %v10559_v45  ;;  %v4769_v15 = vpop.f32.mrf.mxu0 }
 0x22f   : > { %v10563_v25 = vpop.f32.mrf.mxu1  ;;  %v4896_v9 = vadd.f32 %v4769_v15, %v4492_v43  ;;  %v4508_v15 = vadd.f32 %v10360_v30, %v10341_v40  ;;  %v4511_v30 = vadd.f32 %v10380_v7, %v10357_v34  ;;  %v4524_v7 = vadd.f32 %v10396_v55, %v10377_v32 }
 0x230   : > { %v7631_v10 = vpop.f32.mrf.mxu0 }
 0x231   : > { %v7664_v36 = vpop.f32.mrf.mxu1  ;;  %v4899_v18 = vadd.f32 %v7631_v10, %v4503_v0 }
 0x232   : > { %v5192_v24 = vadd.f32 %v7664_v36, %v4898_v22  ;;  %v4772_v45 = vpop.f32.mrf.mxu0 }
 0x233   : > { %v5063_v58 = vpop.f32.mrf.mxu1  ;;  %v4897_v41 = vadd.f32 %v4772_v45, %v4495_v37 }
 0x234   : > { %v5224_v46 = vadd.f32 %v10069_v27, %v5192_v24  ;;  %v5190_v33 = vadd.f32 %v5063_v58, %v4896_v9 }
 0x235   : > { %v7634_v44 = vpop.f32.mrf.mxu0  ;;  %v7665_v57 = vpop.f32.mrf.mxu1 }
 0x236   : > { %6865 = vst.msk [vmem:[%s9193_s28 + $0x210] sm:$0xff] %vm2143_vm1, %v5224_v46  ;;  %v5222_v29 = vadd.f32 %v10069_v27, %v5190_v33  ;;  %v5193_v42 = vadd.f32 %v7665_v57, %v4899_v18  ;;  %v4902_v10 = vadd.f32 %v7634_v44, %v4516_v4 }
 0x237   : > { %v4785_v36 = vpop.f32.mrf.mxu0  ;;  %v5066_v43 = vpop.f32.mrf.mxu1 }
 0x238   : > { %6863 = vst.msk [vmem:[%s9193_s28 + $0x200] sm:$0xff] %vm2143_vm1, %v5222_v29  ;;  %v5225_v12 = vadd.f32 %v10069_v27, %v5193_v42  ;;  %v5191_v58 = vadd.f32 %v5066_v43, %v4897_v41  ;;  %v4900_v45 = vadd.f32 %v4785_v36, %v4508_v15  ;;  %v10604_v29 = vld [vmem:[%s11016_s2] ss:$0 sm:$0xff]  ;;  %v4527_v36 = vadd.f32 %v10416_v61, %v10393_v5 }
 0x239   : > { %v7635_v9 = vpop.f32.mrf.mxu0  ;;  %v7668_v40 = vpop.f32.mrf.mxu1  ;;  %v4540_v61 = vadd.f32 %v10432_v8, %v10413_v26  ;;  %v4543_v8 = vadd.f32 %v10452_v56, %v10429_v62  ;;  %v4556_v56 = vadd.f32 %v10468_v13, %v10449_v50  ;;  %v11344_v13 = vld [vmem:[#allocation33_spill] sm:$0xff] }
 0x23a   : > { %6866 = vst.msk [vmem:[%s9193_s28 + $0x218] sm:$0xff] %vm2143_vm1, %v5225_v12  ;;  %v5223_v18 = vadd.f32 %v10069_v27, %v5191_v58  ;;  %v5196_v22 = vadd.f32 %v7668_v40, %v4902_v10  ;;  %v4903_v0 = vadd.f32 %v7635_v9, %v4519_v63  ;;  %v4548_v58 = vadd.f32 %v10421_v38, %v10404_v47 }
 0x23b   : > { %v4788_v37 = vpop.f32.mrf.mxu0  ;;  %v5079_v1 = vpop.f32.mrf.mxu1  ;;  %v4551_v38 = vadd.f32 %v10445_v59, %v10419_v39  ;;  %v4564_v59 = vadd.f32 %v10457_v16, %v10440_v54  ;;  %v11343_v16 = vld [vmem:[#allocation37_spill] sm:$0xff] }
 0x23c   : > { %6864 = vst.msk [vmem:[%s9193_s28 + $0x208] sm:$0xff] %vm2143_vm1, %v5223_v18  ;;  %v5228_v24 = vadd.f32 %v10069_v27, %v5196_v22  ;;  %v5194_v4 = vadd.f32 %v5079_v1, %v4900_v45  ;;  %v4901_v46 = vadd.f32 %v4788_v37, %v4511_v30 }
 0x23d   : > { %v7669_v34 = vpop.f32.mrf.mxu1 }
 0x23e   : > { %v7638_v33 = vpop.f32.mrf.mxu0  ;;  %6869 = vst.msk [vmem:[%s9193_s28 + $0x230] sm:$0xff] %vm2143_vm1, %v5228_v24  ;;  %v5226_v41 = vadd.f32 %v10069_v27, %v5194_v4  ;;  %v5197_v44 = vadd.f32 %v7669_v34, %v4903_v0 }
 0x23f   : > { %v4906_v57 = vadd.f32 %v7638_v33, %v4532_v19  ;;  %v5082_v2 = vpop.f32.mrf.mxu1 }
 0x240   : > { %v4801_v15 = vpop.f32.mrf.mxu0  ;;  %6867 = vst.msk [vmem:[%s9193_s28 + $0x220] sm:$0xff] %vm2143_vm1, %v5226_v41  ;;  %v5229_v32 = vadd.f32 %v10604_v29, %v5197_v44  ;;  %v5195_v55 = vadd.f32 %v5082_v2, %v4901_v46 }
 0x241   : > { %v4904_v42 = vadd.f32 %v4801_v15, %v4524_v7  ;;  %v7672_v10 = vpop.f32.mrf.mxu1 }
 0x242   : > { %v7639_v27 = vpop.f32.mrf.mxu0  ;;  %6870 = vst.msk [vmem:[%s9193_s28 + $0x238] sm:$0xff] %vm2143_vm1, %v5229_v32  ;;  %v5227_v11 = vadd.f32 %v10604_v29, %v5195_v55  ;;  %v5200_v35 = vadd.f32 %v7672_v10, %v4906_v57 }
 0x243   : > { %v4907_v43 = vadd.f32 %v7639_v27, %v4535_v31  ;;  %v5095_v12 = vpop.f32.mrf.mxu1 }
 0x244   : > { %v4804_v63 = vpop.f32.mrf.mxu0  ;;  %6868 = vst.msk [vmem:[%s9193_s28 + $0x228] sm:$0xff] %vm2143_vm1, %v5227_v11  ;;  %v5232_v45 = vadd.f32 %v10604_v29, %v5200_v35  ;;  %v5198_v9 = vadd.f32 %v5095_v12, %v4904_v42  ;;  %v4567_v42 = vadd.f32 %v11343_v16, %v10455_v60  ;;  %v4559_v35 = vadd.f32 %v10488_v23, %v11344_v13 }
 0x245   : > { %v4905_v40 = vadd.f32 %v4804_v63, %v4527_v36  ;;  %v7673_v5 = vpop.f32.mrf.mxu1 }
 0x246   : > { %v7642_v30 = vpop.f32.mrf.mxu0  ;;  %6873 = vst.msk [vmem:[%s9193_s28 + $0x250] sm:$0xff] %vm2143_vm1, %v5232_v45  ;;  %v5230_v18 = vadd.f32 %v10604_v29, %v5198_v9  ;;  %v5201_v22 = vadd.f32 %v7673_v5, %v4907_v43  ;;  %v11345_v45 = vld [vmem:[#allocation34_spill] sm:$0xff] }
 0x247   : > { %v4910_v0 = vadd.f32 %v7642_v30, %v4548_v58  ;;  %v5098_v47 = vpop.f32.mrf.mxu1  ;;  %v4580_v9 = vadd.f32 %v10493_v3, %v11345_v45 }
 0x248   : > { %v4817_v37 = vpop.f32.mrf.mxu0  ;;  %6871 = vst.msk [vmem:[%s9193_s28 + $0x240] sm:$0xff] %vm2143_vm1, %v5230_v18  ;;  %v5233_v1 = vadd.f32 %v10604_v29, %v5201_v22  ;;  %v5199_v19 = vadd.f32 %v5098_v47, %v4905_v40  ;;  %v4572_v18 = vadd.f32 %v10504_v21, %v10485_v52  ;;  %v4575_v21 = vadd.f32 %v10522_v6, %v10501_v51 }
 0x249   : > { %v4908_v24 = vadd.f32 %v4817_v37, %v4540_v61  ;;  %v7676_v26 = vpop.f32.mrf.mxu1  ;;  %v4588_v6 = vadd.f32 %v10536_v17, %v10519_v20  ;;  %v11347_v17 = vld [vmem:[#allocation45_spill] sm:$0xff] }
 0x24a   : > { %v7643_v4 = vpop.f32.mrf.mxu0  ;;  %6874 = vst.msk [vmem:[%s9193_s28 + $0x258] sm:$0xff] %vm2143_vm1, %v5233_v1  ;;  %v5231_v46 = vadd.f32 %v10604_v29, %v5199_v19  ;;  %v5204_v33 = vadd.f32 %v7676_v26, %v4910_v0 }
 0x24b   : > { %v4911_v34 = vadd.f32 %v7643_v4, %v4551_v38  ;;  %v5111_v39 = vpop.f32.mrf.mxu1  ;;  %v4583_v38 = vadd.f32 %v10515_v48, %v10491_v53  ;;  %v11346_v48 = vld [vmem:[#allocation38_spill] sm:$0xff] }
 0x24c   : > { %v4820_v7 = vpop.f32.mrf.mxu0  ;;  %6872 = vst.msk [vmem:[%s9193_s28 + $0x248] sm:$0xff] %vm2143_vm1, %v5231_v46  ;;  %v5236_v41 = vadd.f32 %v10604_v29, %v5204_v33  ;;  %v5202_v44 = vadd.f32 %v5111_v39, %v4908_v24 }
 0x24d   : > { %v4909_v57 = vadd.f32 %v4820_v7, %v4543_v8  ;;  %v7677_v62 = vpop.f32.mrf.mxu1 }
 0x24e   : > { %v7646_v15 = vpop.f32.mrf.mxu0  ;;  %6877 = vst.msk [vmem:[%s9193_s28 + $0x270] sm:$0xff] %vm2143_vm1, %v5236_v41  ;;  %v5234_v2 = vadd.f32 %v10604_v29, %v5202_v44  ;;  %v5205_v31 = vadd.f32 %v7677_v62, %v4911_v34  ;;  %v4596_v34 = vadd.f32 %v10526_v28, %v11346_v48 }
 0x24f   : > { %v4914_v32 = vadd.f32 %v7646_v15, %v4564_v59  ;;  %v5114_v54 = vpop.f32.mrf.mxu1 }
 0x250   : > { %v4833_v55 = vpop.f32.mrf.mxu0  ;;  %6875 = vst.msk [vmem:[%s9193_s28 + $0x260] sm:$0xff] %vm2143_vm1, %v5234_v2  ;;  %v5237_v27 = vadd.f32 %v10604_v29, %v5205_v31  ;;  %v5203_v10 = vadd.f32 %v5114_v54, %v4909_v57  ;;  %v11348_v54 = vld [vmem:[#allocation51_spill] sm:$0xff] }
 0x251   : > { %v4912_v36 = vadd.f32 %v4833_v55, %v4556_v56  ;;  %v7680_v50 = vpop.f32.mrf.mxu1  ;;  %v4599_v56 = vadd.f32 %v10542_v49, %v10524_v14  ;;  %v4591_v16 = vadd.f32 %v11348_v54, %v11347_v17  ;;  %v11349_v49 = vld [vmem:[#allocation46_spill] sm:$0xff] }
 0x252   : > { %v7647_v11 = vpop.f32.mrf.mxu0  ;;  %6878 = vst.msk [vmem:[%s9193_s28 + $0x278] sm:$0xff] %vm2143_vm1, %v5237_v27  ;;  %v5235_v43 = vadd.f32 %v10604_v29, %v5203_v10  ;;  %v5208_v63 = vadd.f32 %v7680_v50, %v4914_v32 }
 0x253   : > { %v4915_v12 = vadd.f32 %v7647_v11, %v4567_v42  ;;  %v5127_v60 = vpop.f32.mrf.mxu1  ;;  %v11350_v11 = vld [vmem:[#allocation7_spill] sm:$0xff] }
 0x254   : > { %v4836_v58 = vpop.f32.mrf.mxu0  ;;  %6876 = vst.msk [vmem:[%s9193_s28 + $0x268] sm:$0xff] %vm2143_vm1, %v5235_v43  ;;  %v5240_v40 = vadd.f32 %v10604_v29, %v5208_v63  ;;  %v5206_v30 = vadd.f32 %v5127_v60, %v4912_v36  ;;  %v4612_v50 = vadd.f32 %v11350_v11, %v11349_v49  ;;  %v11352_v60 = vld [vmem:[#allocation48_spill] sm:$0xff] }
 0x255   : > { %v4913_v5 = vadd.f32 %v4836_v58, %v4559_v35  ;;  %v7681_v23 = vpop.f32.mrf.mxu1  ;;  %v11351_v58 = vld [vmem:[#allocation47_spill] sm:$0xff] }
 0x256   : > { %v7650_v61 = vpop.f32.mrf.mxu0  ;;  %6881 = vst.msk [vmem:[%s9193_s28 + $0x290] sm:$0xff] %vm2143_vm1, %v5240_v40  ;;  %v5238_v22 = vadd.f32 %v10604_v29, %v5206_v30  ;;  %v5209_v0 = vadd.f32 %v7681_v23, %v4915_v12  ;;  %v4604_v45 = vadd.f32 %v11352_v60, %v11351_v58  ;;  %v11353_v23 = vld [vmem:[#allocation53_spill] sm:$0xff] }
 0x257   : > { %v4918_v37 = vadd.f32 %v7650_v61, %v4580_v9  ;;  %v5130_v3 = vpop.f32.mrf.mxu1 }
 0x258   : > { %v4849_v47 = vpop.f32.mrf.mxu0  ;;  %6879 = vst.msk [vmem:[%s9193_s28 + $0x280] sm:$0xff] %vm2143_vm1, %v5238_v22  ;;  %v5241_v1 = vadd.f32 %v10604_v29, %v5209_v0  ;;  %v5207_v19 = vadd.f32 %v5130_v3, %v4913_v5 }
 0x259   : > { %v4916_v24 = vadd.f32 %v4849_v47, %v4572_v18  ;;  %v7684_v52 = vpop.f32.mrf.mxu1  ;;  %v11354_v18 = vld [vmem:[#allocation62_spill] sm:$0xff] }
 0x25a   : > { %v7651_v4 = vpop.f32.mrf.mxu0  ;;  %6882 = vst.msk [vmem:[%s9193_s28 + $0x298] sm:$0xff] %vm2143_vm1, %v5241_v1  ;;  %v5239_v26 = vadd.f32 %v10604_v29, %v5207_v19  ;;  %v5212_v8 = vadd.f32 %v7684_v52, %v4918_v37  ;;  %v4615_v22 = vadd.f32 %v11354_v18, %v11353_v23  ;;  %v11355_v1 = vld [vmem:[#allocation10_spill] sm:$0xff] }
 0x25b   : > { %v4919_v46 = vadd.f32 %v7651_v4, %v4583_v38  ;;  %v5143_v53 = vpop.f32.mrf.mxu1  ;;  %v4607_v19 = vadd.f32 %v10563_v25, %v11355_v1 }
 0x25c   : > { %v4852_v33 = vpop.f32.mrf.mxu0  ;;  %6880 = vst.msk [vmem:[%s9193_s28 + $0x288] sm:$0xff] %vm2143_vm1, %v5239_v26  ;;  %v5244_v7 = vadd.f32 %v10604_v29, %v5212_v8  ;;  %v5210_v39 = vadd.f32 %v5143_v53, %v4916_v24 }
 0x25d   : > { %v4917_v59 = vadd.f32 %v4852_v33, %v4575_v21  ;;  %v7685_v51 = vpop.f32.mrf.mxu1 }
 0x25e   : > { %v7654_v41 = vpop.f32.mrf.mxu0  ;;  %6885 = vst.msk [vmem:[%s9193_s28 + $0x2b0] sm:$0xff] %vm2143_vm1, %v5244_v7  ;;  %v5242_v44 = vadd.f32 %v10604_v29, %v5210_v39  ;;  %v5213_v57 = vadd.f32 %v7685_v51, %v4919_v46 }
 0x25f   : > { %v4922_v15 = vadd.f32 %v7654_v41, %v4596_v34  ;;  %v5146_v28 = vpop.f32.mrf.mxu1 }
 0x260   : > { %v4865_v62 = vpop.f32.mrf.mxu0  ;;  %6883 = vst.msk [vmem:[%s9193_s28 + $0x2a0] sm:$0xff] %vm2143_vm1, %v5242_v44  ;;  %v5245_v2 = vadd.f32 %v10604_v29, %v5213_v57  ;;  %v5211_v31 = vadd.f32 %v5146_v28, %v4917_v59 }
 0x261   : > { %v4920_v32 = vadd.f32 %v4865_v62, %v4588_v6  ;;  %v7688_v20 = vpop.f32.mrf.mxu1 }
 0x262   : > { %v7655_v55 = vpop.f32.mrf.mxu0  ;;  %6886 = vst.msk [vmem:[%s9193_s28 + $0x2b8] sm:$0xff] %vm2143_vm1, %v5245_v2  ;;  %v5243_v42 = vadd.f32 %v10604_v29, %v5211_v31  ;;  %v5216_v27 = vadd.f32 %v7688_v20, %v4922_v15 }
 0x263   : > { %v4923_v10 = vadd.f32 %v7655_v55, %v4599_v56  ;;  %v5159_v14 = vpop.f32.mrf.mxu1 }
 0x264   : > { %v4868_v36 = vpop.f32.mrf.mxu0  ;;  %6884 = vst.msk [vmem:[%s9193_s28 + $0x2a8] sm:$0xff] %vm2143_vm1, %v5243_v42  ;;  %v5248_v13 = vadd.f32 %v10604_v29, %v5216_v27  ;;  %v5214_v35 = vadd.f32 %v5159_v14, %v4920_v32 }
 0x265   : > { %v4921_v43 = vadd.f32 %v4868_v36, %v4591_v16  ;;  %v7689_v12 = vpop.f32.mrf.mxu1 }
 0x266   : > { %v7658_v63 = vpop.f32.mrf.mxu0  ;;  %6889 = vst.msk [vmem:[%s9193_s28 + $0x2d0] sm:$0xff] %vm2143_vm1, %v5248_v13  ;;  %v5246_v9 = vadd.f32 %v10604_v29, %v5214_v35  ;;  %v5217_v40 = vadd.f32 %v7689_v12, %v4923_v10 }
 0x267   : > { %v4926_v30 = vadd.f32 %v7658_v63, %v4612_v50  ;;  %v5162_v61 = vpop.f32.mrf.mxu1 }
 0x268   : > { %v4881_v5 = vpop.f32.mrf.mxu0  ;;  %6887 = vst.msk [vmem:[%s9193_s28 + $0x2c0] sm:$0xff] %vm2143_vm1, %v5246_v9  ;;  %v5249_v0 = vadd.f32 %v10604_v29, %v5217_v40  ;;  %v5215_v37 = vadd.f32 %v5162_v61, %v4921_v43 }
 0x269   : > { %v4924_v47 = vadd.f32 %v4881_v5, %v4604_v45  ;;  %v7692_v38 = vpop.f32.mrf.mxu1 }
 0x26a   : > { %v7659_v3 = vpop.f32.mrf.mxu0  ;;  %6890 = vst.msk [vmem:[%s9193_s28 + $0x2d8] sm:$0xff] %vm2143_vm1, %v5249_v0  ;;  %v5247_v24 = vadd.f32 %v10604_v29, %v5215_v37  ;;  %v5220_v4 = vadd.f32 %v7692_v38, %v4926_v30 }
 0x26b   : > { %v4927_v52 = vadd.f32 %v7659_v3, %v4615_v22  ;;  %v5175_v26 = vpop.f32.mrf.mxu1 }
 0x26c   : > { %v4884_v21 = vpop.f32.mrf.mxu0  ;;  %6888 = vst.msk [vmem:[%s9193_s28 + $0x2c8] sm:$0xff] %vm2143_vm1, %v5247_v24  ;;  %v5252_v8 = vadd.f32 %v10604_v29, %v5220_v4  ;;  %v5218_v46 = vadd.f32 %v5175_v26, %v4924_v47 }
 0x26d   : > { %v4925_v33 = vadd.f32 %v4884_v21, %v4607_v19  ;;  %v7693_v25 = vpop.f32.mrf.mxu1 }
 0x26e   : > { %v10715_v53 = vpop.f32.mrf.mxu0  ;;  %6893 = vst.msk [vmem:[%s9193_s28 + $0x2f0] sm:$0xff] %vm2143_vm1, %v5252_v8  ;;  %v5250_v48 = vadd.f32 %v10604_v29, %v5218_v46  ;;  %v5221_v34 = vadd.f32 %v7693_v25, %v4927_v52 }
 0x26f   : > { %v5178_v39 = vpop.f32.mrf.mxu1 }
 0x270   : > { %v10720_v7 = vpop.f32.mrf.mxu0  ;;  %6891 = vst.msk [vmem:[%s9193_s28 + $0x2e0] sm:$0xff] %vm2143_vm1, %v5250_v48  ;;  %v5253_v59 = vadd.f32 %v10604_v29, %v5221_v34  ;;  %v5219_v41 = vadd.f32 %v5178_v39, %v4925_v33 }
 0x271   : > { %v7732_v6 = vpop.f32.mrf.mxu1 }
 0x272   : > { %v10725_v51 = vpop.f32.mrf.mxu0  ;;  %6894 = vst.msk [vmem:[%s9193_s28 + $0x2f8] sm:$0xff] %vm2143_vm1, %v5253_v59  ;;  %v5251_v44 = vadd.f32 %v10604_v29, %v5219_v41 }
 0x273   : > { %v5492_v15 = vpop.f32.mrf.mxu1 }
 0x274   : > { %v10730_v57 = vpop.f32.mrf.mxu0  ;;  %6892 = vst.msk [vmem:[%s9193_s28 + $0x2e8] sm:$0xff] %vm2143_vm1, %v5251_v44  ;;  %v5501_v44 = vadd.f32 %v7732_v6, %v10715_v53 }
 0x275   : > { %v7733_v28 = vpop.f32.mrf.mxu1 }
 0x276   : > { %v10734_v62 = vpop.f32.mrf.mxu0 }
 0x277   : > { %v10738_v2 = vpop.f32.mrf.mxu1 }
 0x278   : > { %v10736_v56 = vpop.f32.mrf.mxu0 }
 0x279   : > { %v10742_v32 = vpop.f32.mrf.mxu1 }
 0x27a   : > { %v10740_v31 = vpop.f32.mrf.mxu0 }
 0x27b   : > { %v10746_v20 = vpop.f32.mrf.mxu1 }
 0x27c   : > { %v10744_v55 = vpop.f32.mrf.mxu0 }
 0x27d   : > { %v10750_v54 = vpop.f32.mrf.mxu1 }
 0x27e   : > { %v10748_v17 = vpop.f32.mrf.mxu0 }
 0x27f   : > { %v10754_v42 = vpop.f32.mrf.mxu1 }
 0x280   : > { %v10752_v16 = vpop.f32.mrf.mxu0 }
 0x281   : > { %v10758_v10 = vpop.f32.mrf.mxu1 }
 0x282   : > { %v10756_v27 = vpop.f32.mrf.mxu0 }
 0x283   : > { %v10762_v14 = vpop.f32.mrf.mxu1 }
 0x284   : > { %v10760_v36 = vpop.f32.mrf.mxu0 }
 0x285   : > { %v10766_v11 = vpop.f32.mrf.mxu1 }
 0x286   : > { %v10764_v49 = vpop.f32.mrf.mxu0 }
 0x287   : > { %v10770_v13 = vpop.f32.mrf.mxu1 }
 0x288   : > { %v10768_v50 = vpop.f32.mrf.mxu0 }
 0x289   : > { %v10774_v43 = vpop.f32.mrf.mxu1 }
 0x28a   : > { %v10772_v35 = vpop.f32.mrf.mxu0 }
 0x28b   : > { %v10778_v12 = vpop.f32.mrf.mxu1 }
 0x28c   : > { %v10776_v63 = vpop.f32.mrf.mxu0 }
 0x28d   : > { %v10782_v60 = vpop.f32.mrf.mxu1 }
 0x28e   : > { %v10780_v58 = vpop.f32.mrf.mxu0 }
 0x28f   : > { %v10786_v9 = vpop.f32.mrf.mxu1 }
 0x290   : > { %v10784_v45 = vpop.f32.mrf.mxu0 }
 0x291   : > { %v10790_v30 = vpop.f32.mrf.mxu1 }
 0x292   : > { %v10788_v40 = vpop.f32.mrf.mxu0 }
 0x293   : > { %v10794_v61 = vpop.f32.mrf.mxu1 }
 0x294   : > { %v10792_v5 = vpop.f32.mrf.mxu0 }
 0x295   : > { %v10798_v18 = vpop.f32.mrf.mxu1 }
 0x296   : > { %v10796_v23 = vpop.f32.mrf.mxu0 }
 0x297   : > { %v10802_v0 = vpop.f32.mrf.mxu1 }
 0x298   : > { %v10800_v22 = vpop.f32.mrf.mxu0 }
 0x299   : > { %v10806_v47 = vpop.f32.mrf.mxu1 }
 0x29a   : > { %v10804_v37 = vpop.f32.mrf.mxu0 }
 0x29b   : > { %v10810_v38 = vpop.f32.mrf.mxu1 }
 0x29c   : > { %v10808_v3 = vpop.f32.mrf.mxu0 }
 0x29d   : > { %v10814_v19 = vpop.f32.mrf.mxu1 }
 0x29e   : > { %v10812_v1 = vpop.f32.mrf.mxu0 }
 0x29f   : > { %v10818_v4 = vpop.f32.mrf.mxu1 }
 0x2a0   : > { %v10816_v24 = vpop.f32.mrf.mxu0 }
 0x2a1   : > { %11356 = vst [vmem:[#allocation58_spill] sm:$0xff] %v10816_v24  ;;  %v10822_v21 = vpop.f32.mrf.mxu1 }
 0x2a2   : > { %v10820_v52 = vpop.f32.mrf.mxu0 }
 0x2a3   : > { %11357 = vst [vmem:[#allocation60_spill] sm:$0xff] %v10820_v52  ;;  %v10826_v8 = vpop.f32.mrf.mxu1 }
 0x2a4   : > { %v10824_v26 = vpop.f32.mrf.mxu0  ;;  %11359 = vst [vmem:[#allocation9_spill] sm:$0xff] %v10826_v8 }
 0x2a5   : > { %11358 = vst [vmem:[#allocation49_spill] sm:$0xff] %v10824_v26  ;;  %v10830_v33 = vpop.f32.mrf.mxu1 }
 0x2a6   : > { %v10828_v46 = vpop.f32.mrf.mxu0  ;;  %11361 = vst [vmem:[#allocation11_spill] sm:$0xff] %v10830_v33 }
 0x2a7   : > { %11360 = vst [vmem:[#allocation16_spill] sm:$0xff] %v10828_v46  ;;  %v10834_v48 = vpop.f32.mrf.mxu1  ;;  %v5493_v46 = vadd.f32 %v5492_v15, %v10720_v7  ;;  %v5517_v7 = vadd.f32 %v10742_v32, %v10734_v62  ;;  %v5520_v62 = vadd.f32 %v10750_v54, %v10740_v31  ;;  %v5533_v54 = vadd.f32 %v10758_v10, %v10748_v17 }
 0x2a8   : > { %v10832_v25 = vpop.f32.mrf.mxu0  ;;  %11363 = vst [vmem:[#allocation64_spill] sm:$0xff] %v10834_v48  ;;  %v5504_v48 = vadd.f32 %v7733_v28, %v10725_v51  ;;  %v5536_v10 = vadd.f32 %v10766_v11, %v10756_v27  ;;  %v5549_v11 = vadd.f32 %v10774_v43, %v10764_v49  ;;  %v5552_v43 = vadd.f32 %v10782_v60, %v10772_v35 }
 0x2a9   : > { %11362 = vst [vmem:[#allocation50_spill] sm:$0xff] %v10832_v25  ;;  %v10838_v39 = vpop.f32.mrf.mxu1  ;;  %v5565_v60 = vadd.f32 %v10790_v30, %v10780_v58  ;;  %v5568_v30 = vadd.f32 %v10798_v18, %v10788_v40  ;;  %v5581_v18 = vadd.f32 %v10806_v47, %v10796_v23  ;;  %v5584_v47 = vadd.f32 %v10814_v19, %v10804_v37 }
 0x2aa   : > { %v10836_v34 = vpop.f32.mrf.mxu0  ;;  %11365 = vst [vmem:[#allocation52_spill] sm:$0xff] %v10838_v39  ;;  %v5597_v19 = vadd.f32 %v10822_v21, %v10812_v1  ;;  %v11371_v21 = vld [vmem:[#allocation60_spill] sm:$0xff] }
 0x2ab   : > { %11364 = vst [vmem:[#allocation15_spill] sm:$0xff] %v10836_v34  ;;  %v10842_v41 = vpop.f32.mrf.mxu1 }
 0x2ac   : > { %v10840_v59 = vpop.f32.mrf.mxu0  ;;  %11367 = vst [vmem:[#allocation20_spill] sm:$0xff] %v10842_v41 }
 0x2ad   : > { %11366 = vst [vmem:[#allocation19_spill] sm:$0xff] %v10840_v59  ;;  %v10845_v52 = vpop.f32.mrf.mxu1  ;;  %v5496_v59 = vadd.f32 %v10738_v2, %v10730_v57 }
 0x2ae   : > { %v7766_v26 = vpop.f32.mrf.mxu0  ;;  %11368 = vst [vmem:[#allocation17_spill] sm:$0xff] %v10845_v52 }
 0x2af   : > { %v5787_v33 = vadd.f32 %v7766_v26, %v5501_v44  ;;  %v10848_v25 = vpop.f32.mrf.mxu1 }
 0x2b0   : > { %v5658_v8 = vpop.f32.mrf.mxu0 }
 0x2b1   : > { %v5785_v34 = vadd.f32 %v5658_v8, %v5493_v46  ;;  %v7800_v24 = vpop.f32.mrf.mxu1  ;;  %v5509_v8 = vadd.f32 %v10746_v20, %v10736_v56  ;;  %v5512_v20 = vadd.f32 %v10754_v42, %v10744_v55  ;;  %v5525_v42 = vadd.f32 %v10762_v14, %v10752_v16 }
 0x2b2   : > { %v7767_v39 = vpop.f32.mrf.mxu0  ;;  %v6081_v41 = vadd.f32 %v7800_v24, %v5787_v33  ;;  %v5528_v14 = vadd.f32 %v10770_v13, %v10760_v36  ;;  %v5541_v13 = vadd.f32 %v10778_v12, %v10768_v50  ;;  %v5544_v12 = vadd.f32 %v10786_v9, %v10776_v63 }
 0x2b3   : > { %v5788_v53 = vadd.f32 %v7767_v39, %v5504_v48  ;;  %v5952_v52 = vpop.f32.mrf.mxu1  ;;  %v5557_v9 = vadd.f32 %v10794_v61, %v10784_v45  ;;  %v5560_v61 = vadd.f32 %v10802_v0, %v10792_v5  ;;  %v5573_v0 = vadd.f32 %v10810_v38, %v10800_v22 }
 0x2b4   : > { %v5661_v6 = vpop.f32.mrf.mxu0  ;;  %v6113_v15 = vadd.f32 %v10604_v29, %v6081_v41  ;;  %v6079_v26 = vadd.f32 %v5952_v52, %v5785_v34  ;;  %v5576_v38 = vadd.f32 %v10818_v4, %v10808_v3  ;;  %v11369_v4 = vld [vmem:[#allocation58_spill] sm:$0xff] }
 0x2b5   : > { %v5786_v44 = vadd.f32 %v5661_v6, %v5496_v59  ;;  %v7801_v28 = vpop.f32.mrf.mxu1 }
 0x2b6   : > { %v7770_v51 = vpop.f32.mrf.mxu0  ;;  %6981 = vst.msk [vmem:[%s9193_s28 + $0x310] sm:$0xff] %vm2143_vm1, %v6113_v15  ;;  %v6111_v57 = vadd.f32 %v10604_v29, %v6079_v26  ;;  %v6082_v2 = vadd.f32 %v7801_v28, %v5788_v53 }
 0x2b7   : > { %v5791_v24 = vadd.f32 %v7770_v51, %v5517_v7  ;;  %v5955_v33 = vpop.f32.mrf.mxu1 }
 0x2b8   : > { %v5674_v46 = vpop.f32.mrf.mxu0  ;;  %6979 = vst.msk [vmem:[%s9193_s28 + $0x300] sm:$0xff] %vm2143_vm1, %v6111_v57  ;;  %v6114_v32 = vadd.f32 %v10604_v29, %v6082_v2  ;;  %v6080_v52 = vadd.f32 %v5955_v33, %v5786_v44 }
 0x2b9   : > { %v5789_v48 = vadd.f32 %v5674_v46, %v5509_v8  ;;  %v7804_v56 = vpop.f32.mrf.mxu1 }
 0x2ba   : > { %v7771_v34 = vpop.f32.mrf.mxu0  ;;  %6982 = vst.msk [vmem:[%s9193_s28 + $0x318] sm:$0xff] %vm2143_vm1, %v6114_v32  ;;  %v6112_v39 = vadd.f32 %v10604_v29, %v6080_v52  ;;  %v6085_v59 = vadd.f32 %v7804_v56, %v5791_v24 }
 0x2bb   : > { %v5792_v41 = vadd.f32 %v7771_v34, %v5520_v62  ;;  %v5968_v31 = vpop.f32.mrf.mxu1 }
 0x2bc   : > { %v5677_v53 = vpop.f32.mrf.mxu0  ;;  %6980 = vst.msk [vmem:[%s9193_s28 + $0x308] sm:$0xff] %vm2143_vm1, %v6112_v39  ;;  %v6117_v6 = vadd.f32 %v10604_v29, %v6085_v59  ;;  %v6083_v7 = vadd.f32 %v5968_v31, %v5789_v48 }
 0x2bd   : > { %v5790_v15 = vadd.f32 %v5677_v53, %v5512_v20  ;;  %v7805_v55 = vpop.f32.mrf.mxu1 }
 0x2be   : > { %v7774_v26 = vpop.f32.mrf.mxu0  ;;  %6985 = vst.msk [vmem:[%s9193_s28 + $0x330] sm:$0xff] %vm2143_vm1, %v6117_v6  ;;  %v6115_v44 = vadd.f32 %v10604_v29, %v6083_v7  ;;  %v6086_v51 = vadd.f32 %v7805_v55, %v5792_v41 }
 0x2bf   : > { %v5795_v28 = vadd.f32 %v7774_v26, %v5533_v54  ;;  %v5971_v17 = vpop.f32.mrf.mxu1 }
 0x2c0   : > { %v5690_v8 = vpop.f32.mrf.mxu0  ;;  %6983 = vst.msk [vmem:[%s9193_s28 + $0x320] sm:$0xff] %vm2143_vm1, %v6115_v44  ;;  %v6118_v57 = vadd.f32 %v10604_v29, %v6086_v51  ;;  %v6084_v2 = vadd.f32 %v5971_v17, %v5790_v15 }
 0x2c1   : > { %v5793_v24 = vadd.f32 %v5690_v8, %v5525_v42  ;;  %v7808_v16 = vpop.f32.mrf.mxu1 }
 0x2c2   : > { %v7775_v46 = vpop.f32.mrf.mxu0  ;;  %6986 = vst.msk [vmem:[%s9193_s28 + $0x338] sm:$0xff] %vm2143_vm1, %v6118_v57  ;;  %v6116_v33 = vadd.f32 %v10604_v29, %v6084_v2  ;;  %v6089_v62 = vadd.f32 %v7808_v16, %v5795_v28 }
 0x2c3   : > { %v5796_v32 = vadd.f32 %v7775_v46, %v5536_v10  ;;  %v5984_v27 = vpop.f32.mrf.mxu1 }
 0x2c4   : > { %v5693_v52 = vpop.f32.mrf.mxu0  ;;  %6984 = vst.msk [vmem:[%s9193_s28 + $0x328] sm:$0xff] %vm2143_vm1, %v6116_v33  ;;  %v6121_v48 = vadd.f32 %v10604_v29, %v6089_v62  ;;  %v6087_v34 = vadd.f32 %v5984_v27, %v5793_v24 }
 0x2c5   : > { %v5794_v56 = vadd.f32 %v5693_v52, %v5528_v14  ;;  %v7809_v36 = vpop.f32.mrf.mxu1 }
 0x2c6   : > { %v7778_v20 = vpop.f32.mrf.mxu0  ;;  %6989 = vst.msk [vmem:[%s9193_s28 + $0x350] sm:$0xff] %vm2143_vm1, %v6121_v48  ;;  %v6119_v39 = vadd.f32 %v10604_v29, %v6087_v34  ;;  %v6090_v59 = vadd.f32 %v7809_v36, %v5796_v32 }
 0x2c7   : > { %v5799_v41 = vadd.f32 %v7778_v20, %v5549_v11  ;;  %v5987_v49 = vpop.f32.mrf.mxu1 }
 0x2c8   : > { %v5706_v53 = vpop.f32.mrf.mxu0  ;;  %6987 = vst.msk [vmem:[%s9193_s28 + $0x340] sm:$0xff] %vm2143_vm1, %v6119_v39  ;;  %v6122_v31 = vadd.f32 %v10604_v29, %v6090_v59  ;;  %v6088_v54 = vadd.f32 %v5987_v49, %v5794_v56 }
 0x2c9   : > { %v5797_v6 = vadd.f32 %v5706_v53, %v5541_v13  ;;  %v7812_v50 = vpop.f32.mrf.mxu1 }
 0x2ca   : > { %v7779_v7 = vpop.f32.mrf.mxu0  ;;  %6990 = vst.msk [vmem:[%s9193_s28 + $0x358] sm:$0xff] %vm2143_vm1, %v6122_v31  ;;  %v6120_v15 = vadd.f32 %v10604_v29, %v6088_v54  ;;  %v6093_v26 = vadd.f32 %v7812_v50, %v5799_v41 }
 0x2cb   : > { %v5800_v55 = vadd.f32 %v7779_v7, %v5552_v43  ;;  %v6000_v35 = vpop.f32.mrf.mxu1 }
 0x2cc   : > { %v5709_v42 = vpop.f32.mrf.mxu0  ;;  %6988 = vst.msk [vmem:[%s9193_s28 + $0x348] sm:$0xff] %vm2143_vm1, %v6120_v15  ;;  %v6125_v44 = vadd.f32 %v10604_v29, %v6093_v26  ;;  %v6091_v51 = vadd.f32 %v6000_v35, %v5797_v6  ;;  %v11370_v15 = vld [vmem:[#allocation9_spill] sm:$0xff] }
 0x2cd   : > { %v5798_v28 = vadd.f32 %v5709_v42, %v5544_v12  ;;  %v7813_v63 = vpop.f32.mrf.mxu1  ;;  %v5589_v26 = vadd.f32 %v11370_v15, %v11369_v4 }
 0x2ce   : > { %v7782_v8 = vpop.f32.mrf.mxu0  ;;  %6993 = vst.msk [vmem:[%s9193_s28 + $0x370] sm:$0xff] %vm2143_vm1, %v6125_v44  ;;  %v6123_v17 = vadd.f32 %v10604_v29, %v6091_v51  ;;  %v6094_v10 = vadd.f32 %v7813_v63, %v5800_v55  ;;  %v11372_v44 = vld [vmem:[#allocation11_spill] sm:$0xff] }
 0x2cf   : > { %v5803_v57 = vadd.f32 %v7782_v8, %v5565_v60  ;;  %v6003_v58 = vpop.f32.mrf.mxu1  ;;  %v5600_v51 = vadd.f32 %v11372_v44, %v11371_v21 }
 0x2d0   : > { %v5722_v2 = vpop.f32.mrf.mxu0  ;;  %6991 = vst.msk [vmem:[%s9193_s28 + $0x360] sm:$0xff] %vm2143_vm1, %v6123_v17  ;;  %v6126_v24 = vadd.f32 %v10604_v29, %v6094_v10  ;;  %v6092_v46 = vadd.f32 %v6003_v58, %v5798_v28  ;;  %v11373_v10 = vld [vmem:[#allocation49_spill] sm:$0xff] }
 0x2d1   : > { %v5801_v16 = vadd.f32 %v5722_v2, %v5557_v9  ;;  %v7816_v45 = vpop.f32.mrf.mxu1 }
 0x2d2   : > { %v7783_v14 = vpop.f32.mrf.mxu0  ;;  %6994 = vst.msk [vmem:[%s9193_s28 + $0x378] sm:$0xff] %vm2143_vm1, %v6126_v24  ;;  %v6124_v33 = vadd.f32 %v10604_v29, %v6092_v46  ;;  %v6097_v62 = vadd.f32 %v7816_v45, %v5803_v57  ;;  %v11374_v57 = vld [vmem:[#allocation64_spill] sm:$0xff] }
 0x2d3   : > { %v5804_v32 = vadd.f32 %v7783_v14, %v5568_v30  ;;  %v6016_v40 = vpop.f32.mrf.mxu1  ;;  %v5592_v2 = vadd.f32 %v11374_v57, %v11373_v10  ;;  %v11375_v14 = vld [vmem:[#allocation16_spill] sm:$0xff] }
 0x2d4   : > { %v5725_v52 = vpop.f32.mrf.mxu0  ;;  %6992 = vst.msk [vmem:[%s9193_s28 + $0x368] sm:$0xff] %vm2143_vm1, %v6124_v33  ;;  %v6129_v27 = vadd.f32 %v10604_v29, %v6097_v62  ;;  %v6095_v11 = vadd.f32 %v6016_v40, %v5801_v16  ;;  %v11376_v45 = vld [vmem:[#allocation52_spill] sm:$0xff] }
 0x2d5   : > { %v5802_v48 = vadd.f32 %v5725_v52, %v5560_v61  ;;  %v7817_v5 = vpop.f32.mrf.mxu1  ;;  %v5613_v61 = vadd.f32 %v11376_v45, %v11375_v14 }
 0x2d6   : > { %v7786_v34 = vpop.f32.mrf.mxu0  ;;  %6997 = vst.msk [vmem:[%s9193_s28 + $0x390] sm:$0xff] %vm2143_vm1, %v6129_v27  ;;  %v6127_v56 = vadd.f32 %v10604_v29, %v6095_v11  ;;  %v6098_v20 = vadd.f32 %v7817_v5, %v5804_v32  ;;  %v11378_v27 = vld [vmem:[#allocation20_spill] sm:$0xff] }
 0x2d7   : > { %v5807_v36 = vadd.f32 %v7786_v34, %v5581_v18  ;;  %v6019_v23 = vpop.f32.mrf.mxu1  ;;  %v11377_v18 = vld [vmem:[#allocation50_spill] sm:$0xff] }
 0x2d8   : > { %v5738_v13 = vpop.f32.mrf.mxu0  ;;  %6995 = vst.msk [vmem:[%s9193_s28 + $0x380] sm:$0xff] %vm2143_vm1, %v6127_v56  ;;  %v6130_v39 = vadd.f32 %v10604_v29, %v6098_v20  ;;  %v6096_v59 = vadd.f32 %v6019_v23, %v5802_v48  ;;  %v5605_v11 = vadd.f32 %v11378_v27, %v11377_v18  ;;  %v11379_v20 = vld [vmem:[#allocation15_spill] sm:$0xff] }
 0x2d9   : > { %v5805_v41 = vadd.f32 %v5738_v13, %v5573_v0  ;;  %v7820_v22 = vpop.f32.mrf.mxu1 }
 0x2da   : > { %v7787_v53 = vpop.f32.mrf.mxu0  ;;  %6998 = vst.msk [vmem:[%s9193_s28 + $0x398] sm:$0xff] %vm2143_vm1, %v6130_v39  ;;  %v6128_v49 = vadd.f32 %v10604_v29, %v6096_v59  ;;  %v6101_v43 = vadd.f32 %v7820_v22, %v5807_v36  ;;  %v11380_v36 = vld [vmem:[#allocation17_spill] sm:$0xff] }
 0x2db   : > { %v5808_v31 = vadd.f32 %v7787_v53, %v5584_v47  ;;  %v6032_v37 = vpop.f32.mrf.mxu1  ;;  %v5616_v13 = vadd.f32 %v11380_v36, %v11379_v20  ;;  %v11381_v53 = vld [vmem:[#allocation19_spill] sm:$0xff] }
 0x2dc   : > { %v5741_v54 = vpop.f32.mrf.mxu0  ;;  %6996 = vst.msk [vmem:[%s9193_s28 + $0x388] sm:$0xff] %vm2143_vm1, %v6128_v49  ;;  %v6133_v6 = vadd.f32 %v10604_v29, %v6101_v43  ;;  %v6099_v7 = vadd.f32 %v6032_v37, %v5805_v41  ;;  %v5608_v22 = vadd.f32 %v10848_v25, %v11381_v53 }
 0x2dd   : > { %v5806_v50 = vadd.f32 %v5741_v54, %v5576_v38  ;;  %v7821_v3 = vpop.f32.mrf.mxu1 }
 0x2de   : > { %v7790_v12 = vpop.f32.mrf.mxu0  ;;  %7001 = vst.msk [vmem:[%s9193_s28 + $0x3b0] sm:$0xff] %vm2143_vm1, %v6133_v6  ;;  %v6131_v55 = vadd.f32 %v10604_v29, %v6099_v7  ;;  %v6102_v42 = vadd.f32 %v7821_v3, %v5808_v31 }
 0x2df   : > { %v5811_v35 = vadd.f32 %v7790_v12, %v5597_v19  ;;  %v6035_v1 = vpop.f32.mrf.mxu1 }
 0x2e0   : > { %v5754_v60 = vpop.f32.mrf.mxu0  ;;  %6999 = vst.msk [vmem:[%s9193_s28 + $0x3a0] sm:$0xff] %vm2143_vm1, %v6131_v55  ;;  %v6134_v28 = vadd.f32 %v10604_v29, %v6102_v42  ;;  %v6100_v8 = vadd.f32 %v6035_v1, %v5806_v50 }
 0x2e1   : > { %v5809_v63 = vadd.f32 %v5754_v60, %v5589_v26  ;;  %v7824_v17 = vpop.f32.mrf.mxu1 }
 0x2e2   : > { %v7791_v9 = vpop.f32.mrf.mxu0  ;;  %7002 = vst.msk [vmem:[%s9193_s28 + $0x3b8] sm:$0xff] %vm2143_vm1, %v6134_v28  ;;  %v6132_v58 = vadd.f32 %v10604_v29, %v6100_v8  ;;  %v6105_v30 = vadd.f32 %v7824_v17, %v5811_v35 }
 0x2e3   : > { %v5812_v24 = vadd.f32 %v7791_v9, %v5600_v51  ;;  %v6048_v16 = vpop.f32.mrf.mxu1 }
 0x2e4   : > { %v5757_v46 = vpop.f32.mrf.mxu0  ;;  %7000 = vst.msk [vmem:[%s9193_s28 + $0x3a8] sm:$0xff] %vm2143_vm1, %v6132_v58  ;;  %v6137_v33 = vadd.f32 %v10604_v29, %v6105_v30  ;;  %v6103_v62 = vadd.f32 %v6048_v16, %v5809_v63 }
 0x2e5   : > { %v5810_v32 = vadd.f32 %v5757_v46, %v5592_v2  ;;  %v7825_v40 = vpop.f32.mrf.mxu1 }
 0x2e6   : > { %v7794_v52 = vpop.f32.mrf.mxu0  ;;  %7005 = vst.msk [vmem:[%s9193_s28 + $0x3d0] sm:$0xff] %vm2143_vm1, %v6137_v33  ;;  %v6135_v48 = vadd.f32 %v10604_v29, %v6103_v62  ;;  %v6106_v34 = vadd.f32 %v7825_v40, %v5812_v24 }
 0x2e7   : > { %v5815_v5 = vadd.f32 %v7794_v52, %v5613_v61  ;;  %v6051_v56 = vpop.f32.mrf.mxu1 }
 0x2e8   : > { %v5770_v0 = vpop.f32.mrf.mxu0  ;;  %7003 = vst.msk [vmem:[%s9193_s28 + $0x3c0] sm:$0xff] %vm2143_vm1, %v6135_v48  ;;  %v6138_v23 = vadd.f32 %v10604_v29, %v6106_v34  ;;  %v6104_v47 = vadd.f32 %v6051_v56, %v5810_v32 }
 0x2e9   : > { %v5813_v39 = vadd.f32 %v5770_v0, %v5605_v11  ;;  %v7828_v41 = vpop.f32.mrf.mxu1 }
 0x2ea   : > { %v7795_v59 = vpop.f32.mrf.mxu0  ;;  %7006 = vst.msk [vmem:[%s9193_s28 + $0x3d8] sm:$0xff] %vm2143_vm1, %v6138_v23  ;;  %v6136_v38 = vadd.f32 %v10604_v29, %v6104_v47  ;;  %v6109_v49 = vadd.f32 %v7828_v41, %v5815_v5 }
 0x2eb   : > { %v5816_v43 = vadd.f32 %v7795_v59, %v5616_v13  ;;  %v6064_v54 = vpop.f32.mrf.mxu1 }
 0x2ec   : > { %v5773_v31 = vpop.f32.mrf.mxu0  ;;  %7004 = vst.msk [vmem:[%s9193_s28 + $0x3c8] sm:$0xff] %vm2143_vm1, %v6136_v38  ;;  %v6141_v37 = vadd.f32 %v10604_v29, %v6109_v49  ;;  %v6107_v19 = vadd.f32 %v6064_v54, %v5813_v39 }
 0x2ed   : > { %v5814_v6 = vadd.f32 %v5773_v31, %v5608_v22  ;;  %v7829_v7 = vpop.f32.mrf.mxu1 }
 0x2ee   : > { %7009 = vst.msk [vmem:[%s9193_s28 + $0x3f0] sm:$0xff] %vm2143_vm1, %v6141_v37  ;;  %v6139_v25 = vadd.f32 %v10604_v29, %v6107_v19  ;;  %v6110_v50 = vadd.f32 %v7829_v7, %v5816_v43 }
 0x2ef   : > { %v6067_v12 = vpop.f32.mrf.mxu1 }
 0x2f0   : > { %7007 = vst.msk [vmem:[%s9193_s28 + $0x3e0] sm:$0xff] %vm2143_vm1, %v6139_v25  ;;  %v6142_v3 = vadd.f32 %v10604_v29, %v6110_v50  ;;  %v6108_v4 = vadd.f32 %v6067_v12, %v5814_v6 }
 0x2f2   : > { %7010 = vst.msk [vmem:[%s9193_s28 + $0x3f8] sm:$0xff] %vm2143_vm1, %v6142_v3  ;;  %v6140_v15 = vadd.f32 %v10604_v29, %v6108_v4 }
 0x2f4   : > { %7008 = vst.msk [vmem:[%s9193_s28 + $0x3e8] sm:$0xff] %vm2143_vm1, %v6140_v15 }
 0x2f5 PF: > { %s13_s14 = sadd.s32 1, %s8019_s14   ;;  %s11382_s12 = smov %s8015_s13 }
 0x2f6   : > { %p10_p5 = scmp.ge.s32.totalorder %s13_s14, 4   ;;  %s11383_s13 = smov %s11385_s15 }
 0x2f8   :  { %12 = sbr.rel (!%p10_p5) target bundleno = 2 (0x2), region = 89 }

</bundles_post_ra>
